<compile_context>
chip_gen: v7x
topology: tpu7x:2x2x1
jax: 0.10.0
libtpu: 0.0.40
codegen_flags: <defaults>
</compile_context>

<pallas_src>
import functools
import math

import jax
import jax.numpy as jnp
from jax.experimental import pallas as pl
from jax.experimental.pallas import tpu as pltpu

LN_EPS = 1e-12          # matches LayerNorm(variance_epsilon=1e-12), added to std (not var)
MASK_FILL = -1e10       # matches masked_fill(mask == 0, -1e10)
TM_DEFAULT = 256        # M-tile for row-tiled kernels (multiple of 8; v7x 64 MiB VMEM safe)


# ----------------------------------------------------------------------------
# In-kernel helpers
# ----------------------------------------------------------------------------
def _layernorm_rows(x, gamma, beta):
    """Custom LayerNorm: (x - mean) / (unbiased_std + eps) * gamma + beta (row-wise)."""
    D = x.shape[-1]
    mean = jnp.mean(x, axis=-1, keepdims=True)
    diff = x - mean
    var = jnp.sum(diff * diff, axis=-1, keepdims=True) / (D - 1)   # torch.std: unbiased
    std = jnp.sqrt(var)
    return gamma * (diff / (std + LN_EPS)) + beta


def _m_tile(M):
    # Full array dim when small (always legal); otherwise a multiple-of-8 tile.
    return M if M <= TM_DEFAULT else TM_DEFAULT


# ----------------------------------------------------------------------------
# Pallas kernels
# ----------------------------------------------------------------------------
def _linear_kernel(x_ref, w_ref, b_ref, o_ref, *, relu):
    y = jnp.dot(x_ref[...], w_ref[...], preferred_element_type=jnp.float32) + b_ref[...]
    if relu:
        y = jnp.maximum(y, 0.0)
    o_ref[...] = y


def pallas_linear(x2d, w, b, relu=False):
    """y = x @ w + b (optional ReLU). x2d: [M,K], w: [K,N], b: [N]. Tiled over M."""
    M, K = x2d.shape
    N = w.shape[1]
    tm = _m_tile(M)
    return pl.pallas_call(
        functools.partial(_linear_kernel, relu=relu),
        grid=(pl.cdiv(M, tm),),
        in_specs=[
            pl.BlockSpec((tm, K), lambda i: (i, 0)),
            pl.BlockSpec((K, N), lambda i: (0, 0)),
            pl.BlockSpec((1, N), lambda i: (0, 0)),
        ],
        out_specs=pl.BlockSpec((tm, N), lambda i: (i, 0)),
        out_shape=jax.ShapeDtypeStruct((M, N), jnp.float32),
        compiler_params=pltpu.CompilerParams(dimension_semantics=("parallel",)),
    )(x2d, w, b.reshape(1, N))


def _proj_add_ln_kernel(x_ref, w_ref, b_ref, res_ref, g_ref, be_ref, o_ref):
    y = jnp.dot(x_ref[...], w_ref[...], preferred_element_type=jnp.float32) + b_ref[...]
    o_ref[...] = _layernorm_rows(res_ref[...] + y, g_ref[...], be_ref[...])


def pallas_proj_add_ln(x2d, w, b, res2d, gamma, beta):
    """LN(res + x @ w + b): fused attention output projection + residual + LayerNorm."""
    M, K = x2d.shape
    N = w.shape[1]
    tm = _m_tile(M)
    return pl.pallas_call(
        _proj_add_ln_kernel,
        grid=(pl.cdiv(M, tm),),
        in_specs=[
            pl.BlockSpec((tm, K), lambda i: (i, 0)),
            pl.BlockSpec((K, N), lambda i: (0, 0)),
            pl.BlockSpec((1, N), lambda i: (0, 0)),
            pl.BlockSpec((tm, N), lambda i: (i, 0)),
            pl.BlockSpec((1, N), lambda i: (0, 0)),
            pl.BlockSpec((1, N), lambda i: (0, 0)),
        ],
        out_specs=pl.BlockSpec((tm, N), lambda i: (i, 0)),
        out_shape=jax.ShapeDtypeStruct((M, N), jnp.float32),
        compiler_params=pltpu.CompilerParams(dimension_semantics=("parallel",)),
    )(x2d, w, b.reshape(1, N), res2d, gamma.reshape(1, N), beta.reshape(1, N))


def _post_attn_ffn_kernel(ctx_ref, wo_ref, bo_ref, res_ref, g1_ref, be1_ref,
                          w1_ref, b1_ref, w2_ref, b2_ref, g2_ref, be2_ref, o_ref):
    # x = LN1(res + ctx @ Wo + bo)
    proj = jnp.dot(ctx_ref[...], wo_ref[...], preferred_element_type=jnp.float32) + bo_ref[...]
    x = _layernorm_rows(res_ref[...] + proj, g1_ref[...], be1_ref[...])
    # out = LN2(x + W2 @ relu(W1 @ x))
    h = jnp.maximum(
        jnp.dot(x, w1_ref[...], preferred_element_type=jnp.float32) + b1_ref[...], 0.0)
    y = jnp.dot(h, w2_ref[...], preferred_element_type=jnp.float32) + b2_ref[...]
    o_ref[...] = _layernorm_rows(x + y, g2_ref[...], be2_ref[...])


def pallas_post_attn_ffn(ctx2d, wo, bo, res2d, g1, be1, w1, b1, w2, b2, g2, be2):
    """Fused: attention output projection + residual + LN + FFN + residual + LN (row-wise)."""
    M, K = ctx2d.shape
    N = wo.shape[1]
    P = w1.shape[1]
    tm = _m_tile(M)
    return pl.pallas_call(
        _post_attn_ffn_kernel,
        grid=(pl.cdiv(M, tm),),
        in_specs=[
            pl.BlockSpec((tm, K), lambda i: (i, 0)),
            pl.BlockSpec((K, N), lambda i: (0, 0)),
            pl.BlockSpec((1, N), lambda i: (0, 0)),
            pl.BlockSpec((tm, N), lambda i: (i, 0)),
            pl.BlockSpec((1, N), lambda i: (0, 0)),
            pl.BlockSpec((1, N), lambda i: (0, 0)),
            pl.BlockSpec((N, P), lambda i: (0, 0)),
            pl.BlockSpec((1, P), lambda i: (0, 0)),
            pl.BlockSpec((P, N), lambda i: (0, 0)),
            pl.BlockSpec((1, N), lambda i: (0, 0)),
            pl.BlockSpec((1, N), lambda i: (0, 0)),
            pl.BlockSpec((1, N), lambda i: (0, 0)),
        ],
        out_specs=pl.BlockSpec((tm, N), lambda i: (i, 0)),
        out_shape=jax.ShapeDtypeStruct((M, N), jnp.float32),
        compiler_params=pltpu.CompilerParams(dimension_semantics=("parallel",)),
    )(ctx2d, wo, bo.reshape(1, N), res2d, g1.reshape(1, N), be1.reshape(1, N),
      w1, b1.reshape(1, P), w2, b2.reshape(1, N), g2.reshape(1, N), be2.reshape(1, N))


def _attn_body(q_ref, k_ref, v_ref, bias_ref, inv_scale):
    q = q_ref[0]          # [H, Lq, Dh]
    k = k_ref[0]          # [H, Lk, Dh]
    v = v_ref[0]          # [H, Lk, Dh]
    bias = bias_ref[0]    # [1, Lk] additive mask bias (0 keep / -1e10 masked)
    e = jnp.einsum("hqd,hkd->hqk", q, k,
                   preferred_element_type=jnp.float32) * inv_scale
    e = e + bias          # broadcasts over heads and query rows
    # NOTE: for a fully-masked row this yields softmax over the raw energies rather than a
    # uniform distribution; for non-degenerate (0/1) padding masks it is numerically
    # identical to masked_fill(-1e10) + softmax in f32.
    m = jnp.max(e, axis=-1, keepdims=True)
    p = jnp.exp(e - m)
    denom = jnp.sum(p, axis=-1, keepdims=True)
    a = p * pl.reciprocal(denom, approx=True)
    ctx = jnp.einsum("hqk,hkd->hqd", a, v, preferred_element_type=jnp.float32)
    return ctx, a


def _attn_kernel_ctx(q_ref, k_ref, v_ref, bias_ref, ctx_ref, *, inv_scale):
    ctx, _ = _attn_body(q_ref, k_ref, v_ref, bias_ref, inv_scale)
    ctx_ref[0] = ctx


def _attn_kernel_ctx_probs(q_ref, k_ref, v_ref, bias_ref, ctx_ref, attn_ref, *, inv_scale):
    ctx, a = _attn_body(q_ref, k_ref, v_ref, bias_ref, inv_scale)
    ctx_ref[0] = ctx
    attn_ref[0] = a


def _attn_kernel_ctx_meanprobs(q_ref, k_ref, v_ref, bias_ref, ctx_ref, attn_ref, *, inv_scale):
    ctx, a = _attn_body(q_ref, k_ref, v_ref, bias_ref, inv_scale)
    ctx_ref[0] = ctx
    attn_ref[0] = jnp.mean(a, axis=0, keepdims=True)   # head-mean, written once to HBM


def pallas_attention(Q, K, V, bias, inv_scale, attn_mode):
    """Q,K,V: [B,H,L,Dh]. bias: [B,1,Lk] additive.
    attn_mode: 'none' -> ctx only; 'full' -> also [B,H,Lq,Lk] probs;
               'mean' -> also head-mean probs [B,1,Lq,Lk]."""
    B, H, Lq, Dh = Q.shape
    Lk = K.shape[2]
    in_specs = [
        pl.BlockSpec((1, H, Lq, Dh), lambda b: (b, 0, 0, 0)),
        pl.BlockSpec((1, H, Lk, Dh), lambda b: (b, 0, 0, 0)),
        pl.BlockSpec((1, H, Lk, Dh), lambda b: (b, 0, 0, 0)),
        pl.BlockSpec((1, 1, Lk), lambda b: (b, 0, 0)),
    ]
    cparams = pltpu.CompilerParams(dimension_semantics=("parallel",))
    ctx_spec = pl.BlockSpec((1, H, Lq, Dh), lambda b: (b, 0, 0, 0))
    ctx_shape = jax.ShapeDtypeStruct((B, H, Lq, Dh), jnp.float32)

    if attn_mode == "none":
        ctx = pl.pallas_call(
            functools.partial(_attn_kernel_ctx, inv_scale=inv_scale),
            grid=(B,),
            in_specs=in_specs,
            out_specs=ctx_spec,
            out_shape=ctx_shape,
            compiler_params=cparams,
        )(Q, K, V, bias)
        return ctx, None

    if attn_mode == "full":
        kernel = _attn_kernel_ctx_probs
        a_heads = H
    elif attn_mode == "mean":
        kernel = _attn_kernel_ctx_meanprobs
        a_heads = 1
    else:
        raise ValueError(f"unknown attn_mode: {attn_mode}")

    ctx, attn = pl.pallas_call(
        functools.partial(kernel, inv_scale=inv_scale),
        grid=(B,),
        in_specs=in_specs,
        out_specs=[
            ctx_spec,
            pl.BlockSpec((1, a_heads, Lq, Lk), lambda b: (b, 0, 0, 0)),
        ],
        out_shape=[
            ctx_shape,
            jax.ShapeDtypeStruct((B, a_heads, Lq, Lk), jnp.float32),
        ],
        compiler_params=cparams,
    )(Q, K, V, bias)
    return ctx, attn


def _head_mlp_kernel(x_ref, w1_ref, b1_ref, w2_ref, b2_ref,
                     w3_ref, b3_ref, w4_ref, b4_ref, o_ref):
    h = jnp.maximum(
        jnp.dot(x_ref[...], w1_ref[...], preferred_element_type=jnp.float32) + b1_ref[...], 0.0)
    h = jnp.maximum(
        jnp.dot(h, w2_ref[...], preferred_element_type=jnp.float32) + b2_ref[...], 0.0)
    h = jnp.maximum(
        jnp.dot(h, w3_ref[...], preferred_element_type=jnp.float32) + b3_ref[...], 0.0)
    o_ref[...] = jnp.dot(h, w4_ref[...], preferred_element_type=jnp.float32) + b4_ref[...]


def pallas_head_mlp(x2d, w1, b1, w2, b2, w3, b3, w4, b4):
    """Fused decoder output head: Linear-ReLU x3 then Linear."""
    M, K = x2d.shape
    d1, d2, d3, d4 = w1.shape[1], w2.shape[1], w3.shape[1], w4.shape[1]
    return pl.pallas_call(
        _head_mlp_kernel,
        grid=(1,),
        in_specs=[
            pl.BlockSpec((M, K), lambda i: (0, 0)),
            pl.BlockSpec((K, d1), lambda i: (0, 0)),
            pl.BlockSpec((1, d1), lambda i: (0, 0)),
            pl.BlockSpec((d1, d2), lambda i: (0, 0)),
            pl.BlockSpec((1, d2), lambda i: (0, 0)),
            pl.BlockSpec((d2, d3), lambda i: (0, 0)),
            pl.BlockSpec((1, d3), lambda i: (0, 0)),
            pl.BlockSpec((d3, d4), lambda i: (0, 0)),
            pl.BlockSpec((1, d4), lambda i: (0, 0)),
        ],
        out_specs=pl.BlockSpec((M, d4), lambda i: (0, 0)),
        out_shape=jax.ShapeDtypeStruct((M, d4), jnp.float32),
        compiler_params=pltpu.CompilerParams(dimension_semantics=("arbitrary",)),
    )(x2d, w1, b1.reshape(1, d1), w2, b2.reshape(1, d2),
      w3, b3.reshape(1, d3), w4, b4.reshape(1, d4))


# ----------------------------------------------------------------------------
# Model glue (plain JAX orchestrating the Pallas kernels)
# ----------------------------------------------------------------------------
def mask_to_bias(mask):
    """[B,1,1,Lk] 0/1 mask -> [B,1,Lk] additive bias (0 keep, -1e10 masked), built once."""
    B = mask.shape[0]
    return jnp.where(mask == 0.0, MASK_FILL, 0.0).astype(jnp.float32).reshape(B, 1, -1)


def attention_ctx(p, query, key_value, bias, n_heads, attn_mode):
    """Multi-head attention up to (but not including) the output projection.
    Returns ctx as [B*Lq, D] (ready for the fused projection+LN kernel) and attn probs."""
    B, Lq, D = query.shape
    Lk = key_value.shape[1]
    Dh = D // n_heads
    if "wqkv" in p:   # self-attention: one fused QKV matmul
        qkv = pallas_linear(query.reshape(B * Lq, D), p["wqkv"], p["bqkv"])
        q2d, k2d, v2d = jnp.split(qkv, 3, axis=-1)
    else:             # cross-attention: Q on query stream, fused K|V on key/value stream
        q2d = pallas_linear(query.reshape(B * Lq, D), p["wq"], p["bq"])
        kv = pallas_linear(key_value.reshape(B * Lk, D), p["wkv"], p["bkv"])
        k2d, v2d = jnp.split(kv, 2, axis=-1)
    Q = q2d.reshape(B, Lq, n_heads, Dh).transpose(0, 2, 1, 3)
    K = k2d.reshape(B, Lk, n_heads, Dh).transpose(0, 2, 1, 3)
    V = v2d.reshape(B, Lk, n_heads, Dh).transpose(0, 2, 1, 3)
    ctx, attn = pallas_attention(Q, K, V, bias, 1.0 / math.sqrt(Dh), attn_mode)
    ctx2d = ctx.transpose(0, 2, 1, 3).reshape(B * Lq, D)
    return ctx2d, attn


def encoder_layer(p, trg, bias, n_heads, need_attn):
    B, L, D = trg.shape
    ctx2d, attn = attention_ctx(p["sa"], trg, trg, bias, n_heads,
                                "full" if need_attn else "none")
    # one fused kernel: trg = LN2(x + FFN(x)),  x = LN1(trg + fc(ctx))
    out2d = pallas_post_attn_ffn(ctx2d, p["sa"]["wo"], p["sa"]["bo"],
                                 trg.reshape(B * L, D), p["ln1_g"], p["ln1_b"],
                                 p["pf"]["w1"], p["pf"]["b1"],
                                 p["pf"]["w2"], p["pf"]["b2"],
                                 p["ln2_g"], p["ln2_b"])
    return out2d.reshape(B, L, D), attn


def encoder_forward(p, x, bias, n_heads):
    B, L, Din = x.shape
    hid = p["ft_w"].shape[1]
    h = pallas_linear(x.reshape(B * L, Din), p["ft_w"], p["ft_b"]).reshape(B, L, hid)
    attention = None
    n_layers = len(p["layers"])
    for li, lp in enumerate(p["layers"]):
        h, attn = encoder_layer(lp, h, bias, n_heads, need_attn=(li == n_layers - 1))
        if attn is not None:
            attention = attn
    return h, attention


def decoder_layer(p, trg, src, trg_bias, cross_bias, n_heads, need_attn):
    B, Ld, D = trg.shape
    # self-attention + fused projection/residual/LN1  (attn map discarded -> not written)
    ctx2d, _ = attention_ctx(p["sa"], trg, trg, trg_bias, n_heads, "none")
    trg2d = pallas_proj_add_ln(ctx2d, p["sa"]["wo"], p["sa"]["bo"],
                               trg.reshape(B * Ld, D), p["ln1_g"], p["ln1_b"])
    trg3d = trg2d.reshape(B, Ld, D)
    # cross-attention (head-mean probs written only on the last layer)
    ctx2d, attn = attention_ctx(p["ea"], trg3d, src, cross_bias, n_heads,
                                "mean" if need_attn else "none")
    # one fused kernel: projection + residual + LN2 + FFN + residual + LN3
    out2d = pallas_post_attn_ffn(ctx2d, p["ea"]["wo"], p["ea"]["bo"],
                                 trg2d, p["ln2_g"], p["ln2_b"],
                                 p["pf"]["w1"], p["pf"]["b1"],
                                 p["pf"]["w2"], p["pf"]["b2"],
                                 p["ln3_g"], p["ln3_b"])
    return out2d.reshape(B, Ld, D), attn


def decoder_forward(p, trg, src, trg_bias, cross_bias, n_heads):
    B, Ld, hid = trg.shape
    trg = pallas_linear(trg.reshape(B * Ld, hid), p["ft_w"], p["ft_b"]).reshape(B, Ld, hid)
    attention = None
    n_layers = len(p["layers"])
    for li, lp in enumerate(p["layers"]):
        trg, attn = decoder_layer(lp, trg, src, trg_bias, cross_bias, n_heads,
                                  need_attn=(li == n_layers - 1))
        if attn is not None:
            attention = attn
    # `attention` is already the head-mean [B,1,Ld,Lp] (computed inside the kernel)
    x = jnp.max(attention, axis=2)                               # [B,1,Lp]
    y = jnp.max(attention, axis=3)                               # [B,1,Ld]
    label = jnp.concatenate((x, y), axis=2)                      # [B,1,Lp+Ld]
    flat = label.reshape(B, -1)
    out = pallas_head_mlp(flat,
                          p["out_w1"], p["out_b1"], p["out_w2"], p["out_b2"],
                          p["out_w3"], p["out_b3"], p["out_w4"], p["out_b4"])
    return out.reshape(B, 1, 1), attention


def predictor_forward(params, dna, protein, dna_mask, protein_mask, cross_attn_mask, n_heads):
    prot_bias = mask_to_bias(protein_mask)
    dna_bias = mask_to_bias(dna_mask)
    cross_bias = mask_to_bias(cross_attn_mask)
    enc_src, attention_protein = encoder_forward(params["encoder1"], protein, prot_bias, n_heads)
    enc_trg, attention_dna = encoder_forward(params["encoder2"], dna, dna_bias, n_heads)
    out, attention_cross = decoder_forward(
        params["decoder"], enc_trg, enc_src, dna_bias, cross_bias, n_heads)
    return out, attention_protein, attention_dna, attention_cross


# ----------------------------------------------------------------------------
# Deterministic parameter initialization
# ----------------------------------------------------------------------------
class KeyGen:
    def __init__(self, key):
        self.key = key

    def __call__(self):
        self.key, sub = jax.random.split(self.key)
        return sub


def _init_linear(key, fan_in, fan_out):
    kw, kb = jax.random.split(key)
    w = jax.random.normal(kw, (fan_in, fan_out), jnp.float32) * 0.05
    b = jax.random.normal(kb, (fan_out,), jnp.float32) * 0.05
    return w, b


def _init_ln(hid):
    return jnp.ones((hid,), jnp.float32), jnp.zeros((hid,), jnp.float32)


def init_attention_params(kg, hid, cross=False):
    wq, bq = _init_linear(kg(), hid, hid)
    wk, bk = _init_linear(kg(), hid, hid)
    wv, bv = _init_linear(kg(), hid, hid)
    wo, bo = _init_linear(kg(), hid, hid)
    if cross:
        # K|V fused (applied to the key/value stream); Q stays separate (query stream)
        return dict(wq=wq, bq=bq,
                    wkv=jnp.concatenate([wk, wv], axis=1),
                    bkv=jnp.concatenate([bk, bv]),
                    wo=wo, bo=bo)
    # Q|K|V fused into a single [hid, 3*hid] matmul
    return dict(wqkv=jnp.concatenate([wq, wk, wv], axis=1),
                bqkv=jnp.concatenate([bq, bk, bv]),
                wo=wo, bo=bo)


def init_ffn_params(kg, hid, pf):
    w1, b1 = _init_linear(kg(), hid, pf)
    w2, b2 = _init_linear(kg(), pf, hid)
    return dict(w1=w1, b1=b1, w2=w2, b2=b2)


def init_encoder_layer(kg, hid, pf):
    g1, b1 = _init_ln(hid)
    g2, b2 = _init_ln(hid)
    return dict(sa=init_attention_params(kg, hid), pf=init_ffn_params(kg, hid, pf),
                ln1_g=g1, ln1_b=b1, ln2_g=g2, ln2_b=b2)


def init_encoder(kg, in_dim, hid, pf, n_layers):
    ft_w, ft_b = _init_linear(kg(), in_dim, hid)
    return dict(ft_w=ft_w, ft_b=ft_b,
                layers=[init_encoder_layer(kg, hid, pf) for _ in range(n_layers)])


def init_decoder_layer(kg, hid, pf):
    g1, b1 = _init_ln(hid)
    g2, b2 = _init_ln(hid)
    g3, b3 = _init_ln(hid)
    return dict(sa=init_attention_params(kg, hid),
                ea=init_attention_params(kg, hid, cross=True),
                pf=init_ffn_params(kg, hid, pf),
                ln1_g=g1, ln1_b=b1, ln2_g=g2, ln2_b=b2, ln3_g=g3, ln3_b=b3)


def init_decoder(kg, hid, pf, n_layers, flatten_dim):
    # TODO(synk): Decoder.icnn (Conv2d/MaxPool stack), Decoder.sa and Decoder.ln are defined
    # in __init__ but never used in forward(); they are intentionally not instantiated here.
    ft_w, ft_b = _init_linear(kg(), hid, hid)
    layers = [init_decoder_layer(kg, hid, pf) for _ in range(n_layers)]
    out_w1, out_b1 = _init_linear(kg(), flatten_dim, 256)
    out_w2, out_b2 = _init_linear(kg(), 256, 64)
    out_w3, out_b3 = _init_linear(kg(), 64, 32)
    out_w4, out_b4 = _init_linear(kg(), 32, 1)
    return dict(ft_w=ft_w, ft_b=ft_b, layers=layers,
                out_w1=out_w1, out_b1=out_b1, out_w2=out_w2, out_b2=out_b2,
                out_w3=out_w3, out_b3=out_b3, out_w4=out_w4, out_b4=out_b4)


# ----------------------------------------------------------------------------
if __name__ == "__main__":
    # Small config consistent with Predictor(**config); dropout acts as identity (eval mode).
    B = 2
    L_dna, L_prot = 8, 10
    protein_dim, dna_dim = 12, 6
    hid_dim, n_heads, pf_dim, n_layers = 32, 4, 64, 2
    flatten_dim = L_prot + L_dna  # cross-attention key-len + query-len

    root = jax.random.PRNGKey(0)
    kg = KeyGen(root)

    params = dict(
        encoder1=init_encoder(kg, protein_dim, hid_dim, pf_dim, n_layers),
        encoder2=init_encoder(kg, dna_dim, hid_dim, pf_dim, n_layers),
        decoder=init_decoder(kg, hid_dim, pf_dim, n_layers, flatten_dim),
    )

    dna = jax.random.normal(kg(), (B, L_dna, dna_dim), jnp.float32)
    protein = jax.random.normal(kg(), (B, L_prot, protein_dim), jnp.float32)
    # masks broadcast over [B, heads, q_len, k_len]; 0 => masked position
    dna_mask = jnp.ones((B, 1, 1, L_dna), jnp.float32).at[1, 0, 0, L_dna - 1].set(0.0)
    protein_mask = jnp.ones((B, 1, 1, L_prot), jnp.float32).at[1, 0, 0, L_prot - 1].set(0.0)
    cross_attn_mask = jnp.ones((B, 1, 1, L_prot), jnp.float32).at[1, 0, 0, L_prot - 1].set(0.0)

    fwd = jax.jit(functools.partial(predictor_forward, n_heads=n_heads))
    out, attn_protein, attn_dna, attn_cross = fwd(
        params, dna, protein, dna_mask, protein_mask, cross_attn_mask)
    jax.block_until_ready((out, attn_protein, attn_dna, attn_cross))

    assert out.shape == (B, 1, 1)
    assert attn_protein.shape == (B, n_heads, L_prot, L_prot)
    assert attn_dna.shape == (B, n_heads, L_dna, L_dna)
    assert attn_cross.shape == (B, 1, L_dna, L_prot)
    assert bool(jnp.all(jnp.isfinite(out)))
    assert bool(jnp.all(jnp.isfinite(attn_cross)))

    print("KERNEL_OK")
</pallas_src>

<mosaic_0001>
module attributes {stable_mosaic.version = 11 : i64} {
  func.func @_linear_kernel(%arg0: i32, %arg1: memref<16x6xf32, #tpu.memory_space<vmem>>, %arg2: memref<6x32xf32, #tpu.memory_space<vmem>>, %arg3: memref<1x32xf32, #tpu.memory_space<vmem>>, %arg4: memref<16x32xf32, #tpu.memory_space<vmem>>) attributes {dimension_semantics = [#tpu.dimension_semantics<parallel>], iteration_bounds = array<i64: 1>, scalar_prefetch = 0 : i64, scratch_operands = 0 : i64, tpu.core_type = #tpu.core_type<tc>, window_params = [{transform_indices = @transform_0, window_bounds = array<i64: 16, 6>}, {pipeline_mode = #tpu.pipeline_mode<synchronous>, transform_indices = @transform_1, window_bounds = array<i64: 6, 32>}, {pipeline_mode = #tpu.pipeline_mode<synchronous>, transform_indices = @transform_2, window_bounds = array<i64: 1, 32>}, {transform_indices = @transform_3, window_bounds = array<i64: 16, 32>}]} {
    %c0 = arith.constant 0 : index
    %c0_0 = arith.constant 0 : index
    %0 = vector.load %arg1[%c0, %c0_0] : memref<16x6xf32, #tpu.memory_space<vmem>>, vector<16x6xf32>
    %c0_1 = arith.constant 0 : index
    %c0_2 = arith.constant 0 : index
    %1 = vector.load %arg2[%c0_1, %c0_2] : memref<6x32xf32, #tpu.memory_space<vmem>>, vector<6x32xf32>
    %cst = arith.constant dense<0.000000e+00> : vector<16x32xf32>
    %2 = tpu.matmul %0, %1, %cst {dimension_numbers = #tpu.dot_dimension_numbers<[1], [0], [0], [1], [0, 0, 1, 1], [], []>} : vector<16x6xf32>, vector<6x32xf32>, vector<16x32xf32> -> vector<16x32xf32>
    %c0_3 = arith.constant 0 : index
    %c0_4 = arith.constant 0 : index
    %3 = vector.load %arg3[%c0_3, %c0_4] : memref<1x32xf32, #tpu.memory_space<vmem>>, vector<1x32xf32>
    %4 = vector.broadcast %3 : vector<1x32xf32> to vector<16x32xf32>
    %5 = arith.addf %2, %4 : vector<16x32xf32>
    %c0_5 = arith.constant 0 : index
    %c0_6 = arith.constant 0 : index
    %6 = vector.load %arg4[%c0_5, %c0_6] : memref<16x32xf32, #tpu.memory_space<vmem>>, vector<16x32xf32>
    tpu.vector_store %arg4[%c0_5, %c0_6], %5 {strides = array<i32>} : memref<16x32xf32, #tpu.memory_space<vmem>>, vector<16x32xf32>,
    return
  }
  func.func @transform_0(%arg0: i32) -> (i32, i32) {
    %c0_i32 = arith.constant 0 : i32
    %c0_i32_0 = arith.constant 0 : i32
    return %arg0, %c0_i32 : i32, i32
  }
  func.func @transform_1(%arg0: i32) -> (i32, i32) {
    %c0_i32 = arith.constant 0 : i32
    %c0_i32_0 = arith.constant 0 : i32
    %c0_i32_1 = arith.constant 0 : i32
    return %c0_i32, %c0_i32_0 : i32, i32
  }
  func.func @transform_2(%arg0: i32) -> (i32, i32) {
    %c0_i32 = arith.constant 0 : i32
    %c0_i32_0 = arith.constant 0 : i32
    %c0_i32_1 = arith.constant 0 : i32
    return %c0_i32, %c0_i32_0 : i32, i32
  }
  func.func @transform_3(%arg0: i32) -> (i32, i32) {
    %c0_i32 = arith.constant 0 : i32
    %c0_i32_0 = arith.constant 0 : i32
    return %arg0, %c0_i32 : i32, i32
  }
}

module attributes {stable_mosaic.version = 11 : i64} {
  func.func @_linear_kernel(%arg0: i32, %arg1: memref<16x32xf32, #tpu.memory_space<vmem>>, %arg2: memref<32x96xf32, #tpu.memory_space<vmem>>, %arg3: memref<1x96xf32, #tpu.memory_space<vmem>>, %arg4: memref<16x96xf32, #tpu.memory_space<vmem>>) attributes {dimension_semantics = [#tpu.dimension_semantics<parallel>], iteration_bounds = array<i64: 1>, scalar_prefetch = 0 : i64, scratch_operands = 0 : i64, tpu.core_type = #tpu.core_type<tc>, window_params = [{transform_indices = @transform_0, window_bounds = array<i64: 16, 32>}, {pipeline_mode = #tpu.pipeline_mode<synchronous>, transform_indices = @transform_1, window_bounds = array<i64: 32, 96>}, {pipeline_mode = #tpu.pipeline_mode<synchronous>, transform_indices = @transform_2, window_bounds = array<i64: 1, 96>}, {transform_indices = @transform_3, window_bounds = array<i64: 16, 96>}]} {
    %c0 = arith.constant 0 : index
    %c0_0 = arith.constant 0 : index
    %0 = vector.load %arg1[%c0, %c0_0] : memref<16x32xf32, #tpu.memory_space<vmem>>, vector<16x32xf32>
    %c0_1 = arith.constant 0 : index
    %c0_2 = arith.constant 0 : index
    %1 = vector.load %arg2[%c0_1, %c0_2] : memref<32x96xf32, #tpu.memory_space<vmem>>, vector<32x96xf32>
    %cst = arith.constant dense<0.000000e+00> : vector<16x96xf32>
    %2 = tpu.matmul %0, %1, %cst {dimension_numbers = #tpu.dot_dimension_numbers<[1], [0], [0], [1], [0, 0, 1, 1], [], []>} : vector<16x32xf32>, vector<32x96xf32>, vector<16x96xf32> -> vector<16x96xf32>
    %c0_3 = arith.constant 0 : index
    %c0_4 = arith.constant 0 : index
    %3 = vector.load %arg3[%c0_3, %c0_4] : memref<1x96xf32, #tpu.memory_space<vmem>>, vector<1x96xf32>
    %4 = vector.broadcast %3 : vector<1x96xf32> to vector<16x96xf32>
    %5 = arith.addf %2, %4 : vector<16x96xf32>
    %c0_5 = arith.constant 0 : index
    %c0_6 = arith.constant 0 : index
    %6 = vector.load %arg4[%c0_5, %c0_6] : memref<16x96xf32, #tpu.memory_space<vmem>>, vector<16x96xf32>
    tpu.vector_store %arg4[%c0_5, %c0_6], %5 {strides = array<i32>} : memref<16x96xf32, #tpu.memory_space<vmem>>, vector<16x96xf32>,
    return
  }
  func.func @transform_0(%arg0: i32) -> (i32, i32) {
    %c0_i32 = arith.constant 0 : i32
    %c0_i32_0 = arith.constant 0 : i32
    return %arg0, %c0_i32 : i32, i32
  }
  func.func @transform_1(%arg0: i32) -> (i32, i32) {
    %c0_i32 = arith.constant 0 : i32
    %c0_i32_0 = arith.constant 0 : i32
    %c0_i32_1 = arith.constant 0 : i32
    return %c0_i32, %c0_i32_0 : i32, i32
  }
  func.func @transform_2(%arg0: i32) -> (i32, i32) {
    %c0_i32 = arith.constant 0 : i32
    %c0_i32_0 = arith.constant 0 : i32
    %c0_i32_1 = arith.constant 0 : i32
    return %c0_i32, %c0_i32_0 : i32, i32
  }
  func.func @transform_3(%arg0: i32) -> (i32, i32) {
    %c0_i32 = arith.constant 0 : i32
    %c0_i32_0 = arith.constant 0 : i32
    return %arg0, %c0_i32 : i32, i32
  }
}

module attributes {stable_mosaic.version = 11 : i64} {
  func.func @_attn_kernel_ctx(%arg0: i32, %arg1: memref<1x4x8x8xf32, #tpu.memory_space<vmem>>, %arg2: memref<1x4x8x8xf32, #tpu.memory_space<vmem>>, %arg3: memref<1x4x8x8xf32, #tpu.memory_space<vmem>>, %arg4: memref<1x1x8xf32, #tpu.memory_space<vmem>>, %arg5: memref<1x4x8x8xf32, #tpu.memory_space<vmem>>) attributes {dimension_semantics = [#tpu.dimension_semantics<parallel>], iteration_bounds = array<i64: 2>, scalar_prefetch = 0 : i64, scratch_operands = 0 : i64, tpu.core_type = #tpu.core_type<tc>, window_params = [{transform_indices = @transform_0, window_bounds = array<i64: 1, 4, 8, 8>}, {transform_indices = @transform_1, window_bounds = array<i64: 1, 4, 8, 8>}, {transform_indices = @transform_2, window_bounds = array<i64: 1, 4, 8, 8>}, {transform_indices = @transform_3, window_bounds = array<i64: 1, 1, 8>}, {transform_indices = @transform_4, window_bounds = array<i64: 1, 4, 8, 8>}]} {
    %c0 = arith.constant 0 : index
    %c0_0 = arith.constant 0 : index
    %c0_1 = arith.constant 0 : index
    %c0_2 = arith.constant 0 : index
    %0 = vector.load %arg1[%c0, %c0_0, %c0_1, %c0_2] : memref<1x4x8x8xf32, #tpu.memory_space<vmem>>, vector<1x4x8x8xf32>
    %1 = vector.shape_cast %0 : vector<1x4x8x8xf32> to vector<4x8x8xf32>
    %c0_3 = arith.constant 0 : index
    %c0_4 = arith.constant 0 : index
    %c0_5 = arith.constant 0 : index
    %c0_6 = arith.constant 0 : index
    %2 = vector.load %arg2[%c0_3, %c0_4, %c0_5, %c0_6] : memref<1x4x8x8xf32, #tpu.memory_space<vmem>>, vector<1x4x8x8xf32>
    %3 = vector.shape_cast %2 : vector<1x4x8x8xf32> to vector<4x8x8xf32>
    %c0_7 = arith.constant 0 : index
    %c0_8 = arith.constant 0 : index
    %c0_9 = arith.constant 0 : index
    %c0_10 = arith.constant 0 : index
    %4 = vector.load %arg3[%c0_7, %c0_8, %c0_9, %c0_10] : memref<1x4x8x8xf32, #tpu.memory_space<vmem>>, vector<1x4x8x8xf32>
    %5 = vector.shape_cast %4 : vector<1x4x8x8xf32> to vector<4x8x8xf32>
    %c0_11 = arith.constant 0 : index
    %c0_12 = arith.constant 0 : index
    %c0_13 = arith.constant 0 : index
    %6 = vector.load %arg4[%c0_11, %c0_12, %c0_13] : memref<1x1x8xf32, #tpu.memory_space<vmem>>, vector<1x1x8xf32>
    %7 = vector.shape_cast %6 : vector<1x1x8xf32> to vector<1x8xf32>
    "tpu.trace_start"() <{level = 10 : i32, message = "hqd,hkd->hqk"}> : () -> ()
    %cst = arith.constant dense<0.000000e+00> : vector<4x8x8xf32>
    %8 = tpu.matmul %1, %3, %cst {dimension_numbers = #tpu.dot_dimension_numbers<[2], [2], [1], [1], [0, 0, 0, 1, 1, 1], [0], [0]>} : vector<4x8x8xf32>, vector<4x8x8xf32>, vector<4x8x8xf32> -> vector<4x8x8xf32>
    "tpu.trace_stop"() : () -> ()
    %cst_14 = arith.constant 0.353553385 : f32
    %9 = vector.broadcast %cst_14 : f32 to vector<4x8x8xf32>
    %10 = arith.mulf %8, %9 : vector<4x8x8xf32>
    %11 = vector.shape_cast %7 : vector<1x8xf32> to vector<1x1x8xf32>
    %12 = vector.broadcast %11 : vector<1x1x8xf32> to vector<4x8x8xf32>
    %13 = arith.addf %10, %12 : vector<4x8x8xf32>
    %cst_15 = arith.constant dense<0xFF800000> : vector<4x8xf32>
    %14 = vector.multi_reduction <maximumf>, %13, %cst_15 [2] : vector<4x8x8xf32> to vector<4x8xf32>
    %15 = vector.shape_cast %14 : vector<4x8xf32> to vector<4x8x1xf32>
    %16 = vector.broadcast %15 : vector<4x8x1xf32> to vector<4x8x8xf32>
    %17 = arith.subf %13, %16 : vector<4x8x8xf32>
    %18 = math.exp %17 : vector<4x8x8xf32>
    %cst_16 = arith.constant dense<0.000000e+00> : vector<4x8xf32>
    %19 = vector.multi_reduction <add>, %18, %cst_16 [2] : vector<4x8x8xf32> to vector<4x8xf32>
    %20 = vector.shape_cast %19 : vector<4x8xf32> to vector<4x8x1xf32>
    %21 = tpu.reciprocal %20 {approx = true} : vector<4x8x1xf32> -> vector<4x8x1xf32>
    %22 = vector.broadcast %21 : vector<4x8x1xf32> to vector<4x8x8xf32>
    %23 = arith.mulf %18, %22 : vector<4x8x8xf32>
    "tpu.trace_start"() <{level = 10 : i32, message = "hqk,hkd->hqd"}> : () -> ()
    %cst_17 = arith.constant dense<0.000000e+00> : vector<4x8x8xf32>
    %24 = tpu.matmul %23, %5, %cst_17 {dimension_numbers = #tpu.dot_dimension_numbers<[2], [1], [1], [2], [0, 0, 0, 1, 1, 2], [0], [0]>} : vector<4x8x8xf32>, vector<4x8x8xf32>, vector<4x8x8xf32> -> vector<4x8x8xf32>
    "tpu.trace_stop"() : () -> ()
    %c0_18 = arith.constant 0 : index
    %c0_19 = arith.constant 0 : index
    %c0_20 = arith.constant 0 : index
    %c0_21 = arith.constant 0 : index
    %25 = vector.load %arg5[%c0_18, %c0_19, %c0_20, %c0_21] : memref<1x4x8x8xf32, #tpu.memory_space<vmem>>, vector<1x4x8x8xf32>
    %26 = vector.shape_cast %25 : vector<1x4x8x8xf32> to vector<4x8x8xf32>
    %27 = vector.shape_cast %24 : vector<4x8x8xf32> to vector<1x4x8x8xf32>
    tpu.vector_store %arg5[%c0_18, %c0_19, %c0_20, %c0_21], %27 {strides = array<i32>} : memref<1x4x8x8xf32, #tpu.memory_space<vmem>>, vector<1x4x8x8xf32>,
    return
  }
  func.func @transform_0(%arg0: i32) -> (i32, i32, i32, i32) {
    %c0_i32 = arith.constant 0 : i32
    %c0_i32_0 = arith.constant 0 : i32
    %c0_i32_1 = arith.constant 0 : i32
    %c0_i32_2 = arith.constant 0 : i32
    return %arg0, %c0_i32, %c0_i32_0, %c0_i32_1 : i32, i32, i32, i32
  }
  func.func @transform_1(%arg0: i32) -> (i32, i32, i32, i32) {
    %c0_i32 = arith.constant 0 : i32
    %c0_i32_0 = arith.constant 0 : i32
    %c0_i32_1 = arith.constant 0 : i32
    %c0_i32_2 = arith.constant 0 : i32
    return %arg0, %c0_i32, %c0_i32_0, %c0_i32_1 : i32, i32, i32, i32
  }
  func.func @transform_2(%arg0: i32) -> (i32, i32, i32, i32) {
    %c0_i32 = arith.constant 0 : i32
    %c0_i32_0 = arith.constant 0 : i32
    %c0_i32_1 = arith.constant 0 : i32
    %c0_i32_2 = arith.constant 0 : i32
    return %arg0, %c0_i32, %c0_i32_0, %c0_i32_1 : i32, i32, i32, i32
  }
  func.func @transform_3(%arg0: i32) -> (i32, i32, i32) {
    %c0_i32 = arith.constant 0 : i32
    %c0_i32_0 = arith.constant 0 : i32
    %c0_i32_1 = arith.constant 0 : i32
    return %arg0, %c0_i32, %c0_i32_0 : i32, i32, i32
  }
  func.func @transform_4(%arg0: i32) -> (i32, i32, i32, i32) {
    %c0_i32 = arith.constant 0 : i32
    %c0_i32_0 = arith.constant 0 : i32
    %c0_i32_1 = arith.constant 0 : i32
    %c0_i32_2 = arith.constant 0 : i32
    return %arg0, %c0_i32, %c0_i32_0, %c0_i32_1 : i32, i32, i32, i32
  }
}

module attributes {stable_mosaic.version = 11 : i64} {
  func.func @_attn_kernel_ctx_probs(%arg0: i32, %arg1: memref<1x4x8x8xf32, #tpu.memory_space<vmem>>, %arg2: memref<1x4x8x8xf32, #tpu.memory_space<vmem>>, %arg3: memref<1x4x8x8xf32, #tpu.memory_space<vmem>>, %arg4: memref<1x1x8xf32, #tpu.memory_space<vmem>>, %arg5: memref<1x4x8x8xf32, #tpu.memory_space<vmem>>, %arg6: memref<1x4x8x8xf32, #tpu.memory_space<vmem>>) attributes {dimension_semantics = [#tpu.dimension_semantics<parallel>], iteration_bounds = array<i64: 2>, scalar_prefetch = 0 : i64, scratch_operands = 0 : i64, tpu.core_type = #tpu.core_type<tc>, window_params = [{transform_indices = @transform_0, window_bounds = array<i64: 1, 4, 8, 8>}, {transform_indices = @transform_1, window_bounds = array<i64: 1, 4, 8, 8>}, {transform_indices = @transform_2, window_bounds = array<i64: 1, 4, 8, 8>}, {transform_indices = @transform_3, window_bounds = array<i64: 1, 1, 8>}, {transform_indices = @transform_4, window_bounds = array<i64: 1, 4, 8, 8>}, {transform_indices = @transform_5, window_bounds = array<i64: 1, 4, 8, 8>}]} {
    %c0 = arith.constant 0 : index
    %c0_0 = arith.constant 0 : index
    %c0_1 = arith.constant 0 : index
    %c0_2 = arith.constant 0 : index
    %0 = vector.load %arg1[%c0, %c0_0, %c0_1, %c0_2] : memref<1x4x8x8xf32, #tpu.memory_space<vmem>>, vector<1x4x8x8xf32>
    %1 = vector.shape_cast %0 : vector<1x4x8x8xf32> to vector<4x8x8xf32>
    %c0_3 = arith.constant 0 : index
    %c0_4 = arith.constant 0 : index
    %c0_5 = arith.constant 0 : index
    %c0_6 = arith.constant 0 : index
    %2 = vector.load %arg2[%c0_3, %c0_4, %c0_5, %c0_6] : memref<1x4x8x8xf32, #tpu.memory_space<vmem>>, vector<1x4x8x8xf32>
    %3 = vector.shape_cast %2 : vector<1x4x8x8xf32> to vector<4x8x8xf32>
    %c0_7 = arith.constant 0 : index
    %c0_8 = arith.constant 0 : index
    %c0_9 = arith.constant 0 : index
    %c0_10 = arith.constant 0 : index
    %4 = vector.load %arg3[%c0_7, %c0_8, %c0_9, %c0_10] : memref<1x4x8x8xf32, #tpu.memory_space<vmem>>, vector<1x4x8x8xf32>
    %5 = vector.shape_cast %4 : vector<1x4x8x8xf32> to vector<4x8x8xf32>
    %c0_11 = arith.constant 0 : index
    %c0_12 = arith.constant 0 : index
    %c0_13 = arith.constant 0 : index
    %6 = vector.load %arg4[%c0_11, %c0_12, %c0_13] : memref<1x1x8xf32, #tpu.memory_space<vmem>>, vector<1x1x8xf32>
    %7 = vector.shape_cast %6 : vector<1x1x8xf32> to vector<1x8xf32>
    "tpu.trace_start"() <{level = 10 : i32, message = "hqd,hkd->hqk"}> : () -> ()
    %cst = arith.constant dense<0.000000e+00> : vector<4x8x8xf32>
    %8 = tpu.matmul %1, %3, %cst {dimension_numbers = #tpu.dot_dimension_numbers<[2], [2], [1], [1], [0, 0, 0, 1, 1, 1], [0], [0]>} : vector<4x8x8xf32>, vector<4x8x8xf32>, vector<4x8x8xf32> -> vector<4x8x8xf32>
    "tpu.trace_stop"() : () -> ()
    %cst_14 = arith.constant 0.353553385 : f32
    %9 = vector.broadcast %cst_14 : f32 to vector<4x8x8xf32>
    %10 = arith.mulf %8, %9 : vector<4x8x8xf32>
    %11 = vector.shape_cast %7 : vector<1x8xf32> to vector<1x1x8xf32>
    %12 = vector.broadcast %11 : vector<1x1x8xf32> to vector<4x8x8xf32>
    %13 = arith.addf %10, %12 : vector<4x8x8xf32>
    %cst_15 = arith.constant dense<0xFF800000> : vector<4x8xf32>
    %14 = vector.multi_reduction <maximumf>, %13, %cst_15 [2] : vector<4x8x8xf32> to vector<4x8xf32>
    %15 = vector.shape_cast %14 : vector<4x8xf32> to vector<4x8x1xf32>
    %16 = vector.broadcast %15 : vector<4x8x1xf32> to vector<4x8x8xf32>
    %17 = arith.subf %13, %16 : vector<4x8x8xf32>
    %18 = math.exp %17 : vector<4x8x8xf32>
    %cst_16 = arith.constant dense<0.000000e+00> : vector<4x8xf32>
    %19 = vector.multi_reduction <add>, %18, %cst_16 [2] : vector<4x8x8xf32> to vector<4x8xf32>
    %20 = vector.shape_cast %19 : vector<4x8xf32> to vector<4x8x1xf32>
    %21 = tpu.reciprocal %20 {approx = true} : vector<4x8x1xf32> -> vector<4x8x1xf32>
    %22 = vector.broadcast %21 : vector<4x8x1xf32> to vector<4x8x8xf32>
    %23 = arith.mulf %18, %22 : vector<4x8x8xf32>
    "tpu.trace_start"() <{level = 10 : i32, message = "hqk,hkd->hqd"}> : () -> ()
    %cst_17 = arith.constant dense<0.000000e+00> : vector<4x8x8xf32>
    %24 = tpu.matmul %23, %5, %cst_17 {dimension_numbers = #tpu.dot_dimension_numbers<[2], [1], [1], [2], [0, 0, 0, 1, 1, 2], [0], [0]>} : vector<4x8x8xf32>, vector<4x8x8xf32>, vector<4x8x8xf32> -> vector<4x8x8xf32>
    "tpu.trace_stop"() : () -> ()
    %c0_18 = arith.constant 0 : index
    %c0_19 = arith.constant 0 : index
    %c0_20 = arith.constant 0 : index
    %c0_21 = arith.constant 0 : index
    %25 = vector.load %arg5[%c0_18, %c0_19, %c0_20, %c0_21] : memref<1x4x8x8xf32, #tpu.memory_space<vmem>>, vector<1x4x8x8xf32>
    %26 = vector.shape_cast %25 : vector<1x4x8x8xf32> to vector<4x8x8xf32>
    %27 = vector.shape_cast %24 : vector<4x8x8xf32> to vector<1x4x8x8xf32>
    tpu.vector_store %arg5[%c0_18, %c0_19, %c0_20, %c0_21], %27 {strides = array<i32>} : memref<1x4x8x8xf32, #tpu.memory_space<vmem>>, vector<1x4x8x8xf32>,
    %c0_22 = arith.constant 0 : index
    %c0_23 = arith.constant 0 : index
    %c0_24 = arith.constant 0 : index
    %c0_25 = arith.constant 0 : index
    %28 = vector.load %arg6[%c0_22, %c0_23, %c0_24, %c0_25] : memref<1x4x8x8xf32, #tpu.memory_space<vmem>>, vector<1x4x8x8xf32>
    %29 = vector.shape_cast %28 : vector<1x4x8x8xf32> to vector<4x8x8xf32>
    %30 = vector.shape_cast %23 : vector<4x8x8xf32> to vector<1x4x8x8xf32>
    tpu.vector_store %arg6[%c0_22, %c0_23, %c0_24, %c0_25], %30 {strides = array<i32>} : memref<1x4x8x8xf32, #tpu.memory_space<vmem>>, vector<1x4x8x8xf32>,
    return
  }
  func.func @transform_0(%arg0: i32) -> (i32, i32, i32, i32) {
    %c0_i32 = arith.constant 0 : i32
    %c0_i32_0 = arith.constant 0 : i32
    %c0_i32_1 = arith.constant 0 : i32
    %c0_i32_2 = arith.constant 0 : i32
    return %arg0, %c0_i32, %c0_i32_0, %c0_i32_1 : i32, i32, i32, i32
  }
  func.func @transform_1(%arg0: i32) -> (i32, i32, i32, i32) {
    %c0_i32 = arith.constant 0 : i32
    %c0_i32_0 = arith.constant 0 : i32
    %c0_i32_1 = arith.constant 0 : i32
    %c0_i32_2 = arith.constant 0 : i32
    return %arg0, %c0_i32, %c0_i32_0, %c0_i32_1 : i32, i32, i32, i32
  }
  func.func @transform_2(%arg0: i32) -> (i32, i32, i32, i32) {
    %c0_i32 = arith.constant 0 : i32
    %c0_i32_0 = arith.constant 0 : i32
    %c0_i32_1 = arith.constant 0 : i32
    %c0_i32_2 = arith.constant 0 : i32
    return %arg0, %c0_i32, %c0_i32_0, %c0_i32_1 : i32, i32, i32, i32
  }
  func.func @transform_3(%arg0: i32) -> (i32, i32, i32) {
    %c0_i32 = arith.constant 0 : i32
    %c0_i32_0 = arith.constant 0 : i32
    %c0_i32_1 = arith.constant 0 : i32
    return %arg0, %c0_i32, %c0_i32_0 : i32, i32, i32
  }
  func.func @transform_4(%arg0: i32) -> (i32, i32, i32, i32) {
    %c0_i32 = arith.constant 0 : i32
    %c0_i32_0 = arith.constant 0 : i32
    %c0_i32_1 = arith.constant 0 : i32
    %c0_i32_2 = arith.constant 0 : i32
    return %arg0, %c0_i32, %c0_i32_0, %c0_i32_1 : i32, i32, i32, i32
  }
  func.func @transform_5(%arg0: i32) -> (i32, i32, i32, i32) {
    %c0_i32 = arith.constant 0 : i32
    %c0_i32_0 = arith.constant 0 : i32
    %c0_i32_1 = arith.constant 0 : i32
    %c0_i32_2 = arith.constant 0 : i32
    return %arg0, %c0_i32, %c0_i32_0, %c0_i32_1 : i32, i32, i32, i32
  }
}

module attributes {stable_mosaic.version = 11 : i64} {
  func.func @_linear_kernel(%arg0: i32, %arg1: memref<16x32xf32, #tpu.memory_space<vmem>>, %arg2: memref<32x32xf32, #tpu.memory_space<vmem>>, %arg3: memref<1x32xf32, #tpu.memory_space<vmem>>, %arg4: memref<16x32xf32, #tpu.memory_space<vmem>>) attributes {dimension_semantics = [#tpu.dimension_semantics<parallel>], iteration_bounds = array<i64: 1>, scalar_prefetch = 0 : i64, scratch_operands = 0 : i64, tpu.core_type = #tpu.core_type<tc>, window_params = [{transform_indices = @transform_0, window_bounds = array<i64: 16, 32>}, {pipeline_mode = #tpu.pipeline_mode<synchronous>, transform_indices = @transform_1, window_bounds = array<i64: 32, 32>}, {pipeline_mode = #tpu.pipeline_mode<synchronous>, transform_indices = @transform_2, window_bounds = array<i64: 1, 32>}, {transform_indices = @transform_3, window_bounds = array<i64: 16, 32>}]} {
    %c0 = arith.constant 0 : index
    %c0_0 = arith.constant 0 : index
    %0 = vector.load %arg1[%c0, %c0_0] : memref<16x32xf32, #tpu.memory_space<vmem>>, vector<16x32xf32>
    %c0_1 = arith.constant 0 : index
    %c0_2 = arith.constant 0 : index
    %1 = vector.load %arg2[%c0_1, %c0_2] : memref<32x32xf32, #tpu.memory_space<vmem>>, vector<32x32xf32>
    %cst = arith.constant dense<0.000000e+00> : vector<16x32xf32>
    %2 = tpu.matmul %0, %1, %cst {dimension_numbers = #tpu.dot_dimension_numbers<[1], [0], [0], [1], [0, 0, 1, 1], [], []>} : vector<16x32xf32>, vector<32x32xf32>, vector<16x32xf32> -> vector<16x32xf32>
    %c0_3 = arith.constant 0 : index
    %c0_4 = arith.constant 0 : index
    %3 = vector.load %arg3[%c0_3, %c0_4] : memref<1x32xf32, #tpu.memory_space<vmem>>, vector<1x32xf32>
    %4 = vector.broadcast %3 : vector<1x32xf32> to vector<16x32xf32>
    %5 = arith.addf %2, %4 : vector<16x32xf32>
    %c0_5 = arith.constant 0 : index
    %c0_6 = arith.constant 0 : index
    %6 = vector.load %arg4[%c0_5, %c0_6] : memref<16x32xf32, #tpu.memory_space<vmem>>, vector<16x32xf32>
    tpu.vector_store %arg4[%c0_5, %c0_6], %5 {strides = array<i32>} : memref<16x32xf32, #tpu.memory_space<vmem>>, vector<16x32xf32>,
    return
  }
  func.func @transform_0(%arg0: i32) -> (i32, i32) {
    %c0_i32 = arith.constant 0 : i32
    %c0_i32_0 = arith.constant 0 : i32
    return %arg0, %c0_i32 : i32, i32
  }
  func.func @transform_1(%arg0: i32) -> (i32, i32) {
    %c0_i32 = arith.constant 0 : i32
    %c0_i32_0 = arith.constant 0 : i32
    %c0_i32_1 = arith.constant 0 : i32
    return %c0_i32, %c0_i32_0 : i32, i32
  }
  func.func @transform_2(%arg0: i32) -> (i32, i32) {
    %c0_i32 = arith.constant 0 : i32
    %c0_i32_0 = arith.constant 0 : i32
    %c0_i32_1 = arith.constant 0 : i32
    return %c0_i32, %c0_i32_0 : i32, i32
  }
  func.func @transform_3(%arg0: i32) -> (i32, i32) {
    %c0_i32 = arith.constant 0 : i32
    %c0_i32_0 = arith.constant 0 : i32
    return %arg0, %c0_i32 : i32, i32
  }
}

module attributes {stable_mosaic.version = 11 : i64} {
  func.func @_post_attn_ffn_kernel(%arg0: i32, %arg1: memref<16x32xf32, #tpu.memory_space<vmem>>, %arg2: memref<32x32xf32, #tpu.memory_space<vmem>>, %arg3: memref<1x32xf32, #tpu.memory_space<vmem>>, %arg4: memref<16x32xf32, #tpu.memory_space<vmem>>, %arg5: memref<1x32xf32, #tpu.memory_space<vmem>>, %arg6: memref<1x32xf32, #tpu.memory_space<vmem>>, %arg7: memref<32x64xf32, #tpu.memory_space<vmem>>, %arg8: memref<1x64xf32, #tpu.memory_space<vmem>>, %arg9: memref<64x32xf32, #tpu.memory_space<vmem>>, %arg10: memref<1x32xf32, #tpu.memory_space<vmem>>, %arg11: memref<1x32xf32, #tpu.memory_space<vmem>>, %arg12: memref<1x32xf32, #tpu.memory_space<vmem>>, %arg13: memref<16x32xf32, #tpu.memory_space<vmem>>) attributes {dimension_semantics = [#tpu.dimension_semantics<parallel>], iteration_bounds = array<i64: 1>, scalar_prefetch = 0 : i64, scratch_operands = 0 : i64, tpu.core_type = #tpu.core_type<tc>, window_params = [{transform_indices = @transform_0, window_bounds = array<i64: 16, 32>}, {pipeline_mode = #tpu.pipeline_mode<synchronous>, transform_indices = @transform_1, window_bounds = array<i64: 32, 32>}, {pipeline_mode = #tpu.pipeline_mode<synchronous>, transform_indices = @transform_2, window_bounds = array<i64: 1, 32>}, {transform_indices = @transform_3, window_bounds = array<i64: 16, 32>}, {pipeline_mode = #tpu.pipeline_mode<synchronous>, transform_indices = @transform_4, window_bounds = array<i64: 1, 32>}, {pipeline_mode = #tpu.pipeline_mode<synchronous>, transform_indices = @transform_5, window_bounds = array<i64: 1, 32>}, {pipeline_mode = #tpu.pipeline_mode<synchronous>, transform_indices = @transform_6, window_bounds = array<i64: 32, 64>}, {pipeline_mode = #tpu.pipeline_mode<synchronous>, transform_indices = @transform_7, window_bounds = array<i64: 1, 64>}, {pipeline_mode = #tpu.pipeline_mode<synchronous>, transform_indices = @transform_8, window_bounds = array<i64: 64, 32>}, {pipeline_mode = #tpu.pipeline_mode<synchronous>, transform_indices = @transform_9, window_bounds = array<i64: 1, 32>}, {pipeline_mode = #tpu.pipeline_mode<synchronous>, transform_indices = @transform_10, window_bounds = array<i64: 1, 32>}, {pipeline_mode = #tpu.pipeline_mode<synchronous>, transform_indices = @transform_11, window_bounds = array<i64: 1, 32>}, {transform_indices = @transform_12, window_bounds = array<i64: 16, 32>}]} {
    %c0 = arith.constant 0 : index
    %c0_0 = arith.constant 0 : index
    %0 = vector.load %arg1[%c0, %c0_0] : memref<16x32xf32, #tpu.memory_space<vmem>>, vector<16x32xf32>
    %c0_1 = arith.constant 0 : index
    %c0_2 = arith.constant 0 : index
    %1 = vector.load %arg2[%c0_1, %c0_2] : memref<32x32xf32, #tpu.memory_space<vmem>>, vector<32x32xf32>
    %cst = arith.constant dense<0.000000e+00> : vector<16x32xf32>
    %2 = tpu.matmul %0, %1, %cst {dimension_numbers = #tpu.dot_dimension_numbers<[1], [0], [0], [1], [0, 0, 1, 1], [], []>} : vector<16x32xf32>, vector<32x32xf32>, vector<16x32xf32> -> vector<16x32xf32>
    %c0_3 = arith.constant 0 : index
    %c0_4 = arith.constant 0 : index
    %3 = vector.load %arg3[%c0_3, %c0_4] : memref<1x32xf32, #tpu.memory_space<vmem>>, vector<1x32xf32>
    %4 = vector.broadcast %3 : vector<1x32xf32> to vector<16x32xf32>
    %5 = arith.addf %2, %4 : vector<16x32xf32>
    %c0_5 = arith.constant 0 : index
    %c0_6 = arith.constant 0 : index
    %6 = vector.load %arg4[%c0_5, %c0_6] : memref<16x32xf32, #tpu.memory_space<vmem>>, vector<16x32xf32>
    %7 = arith.addf %6, %5 : vector<16x32xf32>
    %c0_7 = arith.constant 0 : index
    %c0_8 = arith.constant 0 : index
    %8 = vector.load %arg5[%c0_7, %c0_8] : memref<1x32xf32, #tpu.memory_space<vmem>>, vector<1x32xf32>
    %c0_9 = arith.constant 0 : index
    %c0_10 = arith.constant 0 : index
    %9 = vector.load %arg6[%c0_9, %c0_10] : memref<1x32xf32, #tpu.memory_space<vmem>>, vector<1x32xf32>
    %cst_11 = arith.constant dense<0.000000e+00> : vector<16xf32>
    %10 = vector.multi_reduction <add>, %7, %cst_11 [1] : vector<16x32xf32> to vector<16xf32>
    %11 = vector.shape_cast %10 : vector<16xf32> to vector<16x1xf32>
    %cst_12 = arith.constant 3.200000e+01 : f32
    %12 = vector.broadcast %cst_12 : f32 to vector<16x1xf32>
    %13 = arith.divf %11, %12 : vector<16x1xf32>
    %14 = vector.broadcast %13 : vector<16x1xf32> to vector<16x32xf32>
    %15 = arith.subf %7, %14 : vector<16x32xf32>
    %16 = arith.mulf %15, %15 : vector<16x32xf32>
    %cst_13 = arith.constant dense<0.000000e+00> : vector<16xf32>
    %17 = vector.multi_reduction <add>, %16, %cst_13 [1] : vector<16x32xf32> to vector<16xf32>
    %18 = vector.shape_cast %17 : vector<16xf32> to vector<16x1xf32>
    %cst_14 = arith.constant 3.100000e+01 : f32
    %19 = vector.broadcast %cst_14 : f32 to vector<16x1xf32>
    %20 = arith.divf %18, %19 : vector<16x1xf32>
    %21 = math.sqrt %20 : vector<16x1xf32>
    %cst_15 = arith.constant 9.99999996E-13 : f32
    %22 = vector.broadcast %cst_15 : f32 to vector<16x1xf32>
    %23 = arith.addf %21, %22 : vector<16x1xf32>
    %24 = vector.broadcast %23 : vector<16x1xf32> to vector<16x32xf32>
    %25 = arith.divf %15, %24 : vector<16x32xf32>
    %26 = vector.broadcast %8 : vector<1x32xf32> to vector<16x32xf32>
    %27 = arith.mulf %26, %25 : vector<16x32xf32>
    %28 = vector.broadcast %9 : vector<1x32xf32> to vector<16x32xf32>
    %29 = arith.addf %27, %28 : vector<16x32xf32>
    %c0_16 = arith.constant 0 : index
    %c0_17 = arith.constant 0 : index
    %30 = vector.load %arg7[%c0_16, %c0_17] : memref<32x64xf32, #tpu.memory_space<vmem>>, vector<32x64xf32>
    %cst_18 = arith.constant dense<0.000000e+00> : vector<16x64xf32>
    %31 = tpu.matmul %29, %30, %cst_18 {dimension_numbers = #tpu.dot_dimension_numbers<[1], [0], [0], [1], [0, 0, 1, 1], [], []>} : vector<16x32xf32>, vector<32x64xf32>, vector<16x64xf32> -> vector<16x64xf32>
    %c0_19 = arith.constant 0 : index
    %c0_20 = arith.constant 0 : index
    %32 = vector.load %arg8[%c0_19, %c0_20] : memref<1x64xf32, #tpu.memory_space<vmem>>, vector<1x64xf32>
    %33 = vector.broadcast %32 : vector<1x64xf32> to vector<16x64xf32>
    %34 = arith.addf %31, %33 : vector<16x64xf32>
    %cst_21 = arith.constant 0.000000e+00 : f32
    %35 = vector.broadcast %cst_21 : f32 to vector<16x64xf32>
    %36 = arith.maximumf %34, %35 : vector<16x64xf32>
    %c0_22 = arith.constant 0 : index
    %c0_23 = arith.constant 0 : index
    %37 = vector.load %arg9[%c0_22, %c0_23] : memref<64x32xf32, #tpu.memory_space<vmem>>, vector<64x32xf32>
    %cst_24 = arith.constant dense<0.000000e+00> : vector<16x32xf32>
    %38 = tpu.matmul %36, %37, %cst_24 {dimension_numbers = #tpu.dot_dimension_numbers<[1], [0], [0], [1], [0, 0, 1, 1], [], []>} : vector<16x64xf32>, vector<64x32xf32>, vector<16x32xf32> -> vector<16x32xf32>
    %c0_25 = arith.constant 0 : index
    %c0_26 = arith.constant 0 : index
    %39 = vector.load %arg10[%c0_25, %c0_26] : memref<1x32xf32, #tpu.memory_space<vmem>>, vector<1x32xf32>
    %40 = vector.broadcast %39 : vector<1x32xf32> to vector<16x32xf32>
    %41 = arith.addf %38, %40 : vector<16x32xf32>
    %42 = arith.addf %29, %41 : vector<16x32xf32>
    %c0_27 = arith.constant 0 : index
    %c0_28 = arith.constant 0 : index
    %43 = vector.load %arg11[%c0_27, %c0_28] : memref<1x32xf32, #tpu.memory_space<vmem>>, vector<1x32xf32>
    %c0_29 = arith.constant 0 : index
    %c0_30 = arith.constant 0 : index
    %44 = vector.load %arg12[%c0_29, %c0_30] : memref<1x32xf32, #tpu.memory_space<vmem>>, vector<1x32xf32>
    %cst_31 = arith.constant dense<0.000000e+00> : vector<16xf32>
    %45 = vector.multi_reduction <add>, %42, %cst_31 [1] : vector<16x32xf32> to vector<16xf32>
    %46 = vector.shape_cast %45 : vector<16xf32> to vector<16x1xf32>
    %cst_32 = arith.constant 3.200000e+01 : f32
    %47 = vector.broadcast %cst_32 : f32 to vector<16x1xf32>
    %48 = arith.divf %46, %47 : vector<16x1xf32>
    %49 = vector.broadcast %48 : vector<16x1xf32> to vector<16x32xf32>
    %50 = arith.subf %42, %49 : vector<16x32xf32>
    %51 = arith.mulf %50, %50 : vector<16x32xf32>
    %cst_33 = arith.constant dense<0.000000e+00> : vector<16xf32>
    %52 = vector.multi_reduction <add>, %51, %cst_33 [1] : vector<16x32xf32> to vector<16xf32>
    %53 = vector.shape_cast %52 : vector<16xf32> to vector<16x1xf32>
    %cst_34 = arith.constant 3.100000e+01 : f32
    %54 = vector.broadcast %cst_34 : f32 to vector<16x1xf32>
    %55 = arith.divf %53, %54 : vector<16x1xf32>
    %56 = math.sqrt %55 : vector<16x1xf32>
    %cst_35 = arith.constant 9.99999996E-13 : f32
    %57 = vector.broadcast %cst_35 : f32 to vector<16x1xf32>
    %58 = arith.addf %56, %57 : vector<16x1xf32>
    %59 = vector.broadcast %58 : vector<16x1xf32> to vector<16x32xf32>
    %60 = arith.divf %50, %59 : vector<16x32xf32>
    %61 = vector.broadcast %43 : vector<1x32xf32> to vector<16x32xf32>
    %62 = arith.mulf %61, %60 : vector<16x32xf32>
    %63 = vector.broadcast %44 : vector<1x32xf32> to vector<16x32xf32>
    %64 = arith.addf %62, %63 : vector<16x32xf32>
    %c0_36 = arith.constant 0 : index
    %c0_37 = arith.constant 0 : index
    %65 = vector.load %arg13[%c0_36, %c0_37] : memref<16x32xf32, #tpu.memory_space<vmem>>, vector<16x32xf32>
    tpu.vector_store %arg13[%c0_36, %c0_37], %64 {strides = array<i32>} : memref<16x32xf32, #tpu.memory_space<vmem>>, vector<16x32xf32>,
    return
  }
  func.func @transform_0(%arg0: i32) -> (i32, i32) {
    %c0_i32 = arith.constant 0 : i32
    %c0_i32_0 = arith.constant 0 : i32
    return %arg0, %c0_i32 : i32, i32
  }
  func.func @transform_1(%arg0: i32) -> (i32, i32) {
    %c0_i32 = arith.constant 0 : i32
    %c0_i32_0 = arith.constant 0 : i32
    %c0_i32_1 = arith.constant 0 : i32
    return %c0_i32, %c0_i32_0 : i32, i32
  }
  func.func @transform_2(%arg0: i32) -> (i32, i32) {
    %c0_i32 = arith.constant 0 : i32
    %c0_i32_0 = arith.constant 0 : i32
    %c0_i32_1 = arith.constant 0 : i32
    return %c0_i32, %c0_i32_0 : i32, i32
  }
  func.func @transform_3(%arg0: i32) -> (i32, i32) {
    %c0_i32 = arith.constant 0 : i32
    %c0_i32_0 = arith.constant 0 : i32
    return %arg0, %c0_i32 : i32, i32
  }
  func.func @transform_4(%arg0: i32) -> (i32, i32) {
    %c0_i32 = arith.constant 0 : i32
    %c0_i32_0 = arith.constant 0 : i32
    %c0_i32_1 = arith.constant 0 : i32
    return %c0_i32, %c0_i32_0 : i32, i32
  }
  func.func @transform_5(%arg0: i32) -> (i32, i32) {
    %c0_i32 = arith.constant 0 : i32
    %c0_i32_0 = arith.constant 0 : i32
    %c0_i32_1 = arith.constant 0 : i32
    return %c0_i32, %c0_i32_0 : i32, i32
  }
  func.func @transform_6(%arg0: i32) -> (i32, i32) {
    %c0_i32 = arith.constant 0 : i32
    %c0_i32_0 = arith.constant 0 : i32
    %c0_i32_1 = arith.constant 0 : i32
    return %c0_i32, %c0_i32_0 : i32, i32
  }
  func.func @transform_7(%arg0: i32) -> (i32, i32) {
    %c0_i32 = arith.constant 0 : i32
    %c0_i32_0 = arith.constant 0 : i32
    %c0_i32_1 = arith.constant 0 : i32
    return %c0_i32, %c0_i32_0 : i32, i32
  }
  func.func @transform_8(%arg0: i32) -> (i32, i32) {
    %c0_i32 = arith.constant 0 : i32
    %c0_i32_0 = arith.constant 0 : i32
    %c0_i32_1 = arith.constant 0 : i32
    return %c0_i32, %c0_i32_0 : i32, i32
  }
  func.func @transform_9(%arg0: i32) -> (i32, i32) {
    %c0_i32 = arith.constant 0 : i32
    %c0_i32_0 = arith.constant 0 : i32
    %c0_i32_1 = arith.constant 0 : i32
    return %c0_i32, %c0_i32_0 : i32, i32
  }
  func.func @transform_10(%arg0: i32) -> (i32, i32) {
    %c0_i32 = arith.constant 0 : i32
    %c0_i32_0 = arith.constant 0 : i32
    %c0_i32_1 = arith.constant 0 : i32
    return %c0_i32, %c0_i32_0 : i32, i32
  }
  func.func @transform_11(%arg0: i32) -> (i32, i32) {
    %c0_i32 = arith.constant 0 : i32
    %c0_i32_0 = arith.constant 0 : i32
    %c0_i32_1 = arith.constant 0 : i32
    return %c0_i32, %c0_i32_0 : i32, i32
  }
  func.func @transform_12(%arg0: i32) -> (i32, i32) {
    %c0_i32 = arith.constant 0 : i32
    %c0_i32_0 = arith.constant 0 : i32
    return %arg0, %c0_i32 : i32, i32
  }
}

module attributes {stable_mosaic.version = 11 : i64} {
  func.func @_proj_add_ln_kernel(%arg0: i32, %arg1: memref<16x32xf32, #tpu.memory_space<vmem>>, %arg2: memref<32x32xf32, #tpu.memory_space<vmem>>, %arg3: memref<1x32xf32, #tpu.memory_space<vmem>>, %arg4: memref<16x32xf32, #tpu.memory_space<vmem>>, %arg5: memref<1x32xf32, #tpu.memory_space<vmem>>, %arg6: memref<1x32xf32, #tpu.memory_space<vmem>>, %arg7: memref<16x32xf32, #tpu.memory_space<vmem>>) attributes {dimension_semantics = [#tpu.dimension_semantics<parallel>], iteration_bounds = array<i64: 1>, scalar_prefetch = 0 : i64, scratch_operands = 0 : i64, tpu.core_type = #tpu.core_type<tc>, window_params = [{transform_indices = @transform_0, window_bounds = array<i64: 16, 32>}, {pipeline_mode = #tpu.pipeline_mode<synchronous>, transform_indices = @transform_1, window_bounds = array<i64: 32, 32>}, {pipeline_mode = #tpu.pipeline_mode<synchronous>, transform_indices = @transform_2, window_bounds = array<i64: 1, 32>}, {transform_indices = @transform_3, window_bounds = array<i64: 16, 32>}, {pipeline_mode = #tpu.pipeline_mode<synchronous>, transform_indices = @transform_4, window_bounds = array<i64: 1, 32>}, {pipeline_mode = #tpu.pipeline_mode<synchronous>, transform_indices = @transform_5, window_bounds = array<i64: 1, 32>}, {transform_indices = @transform_6, window_bounds = array<i64: 16, 32>}]} {
    %c0 = arith.constant 0 : index
    %c0_0 = arith.constant 0 : index
    %0 = vector.load %arg1[%c0, %c0_0] : memref<16x32xf32, #tpu.memory_space<vmem>>, vector<16x32xf32>
    %c0_1 = arith.constant 0 : index
    %c0_2 = arith.constant 0 : index
    %1 = vector.load %arg2[%c0_1, %c0_2] : memref<32x32xf32, #tpu.memory_space<vmem>>, vector<32x32xf32>
    %cst = arith.constant dense<0.000000e+00> : vector<16x32xf32>
    %2 = tpu.matmul %0, %1, %cst {dimension_numbers = #tpu.dot_dimension_numbers<[1], [0], [0], [1], [0, 0, 1, 1], [], []>} : vector<16x32xf32>, vector<32x32xf32>, vector<16x32xf32> -> vector<16x32xf32>
    %c0_3 = arith.constant 0 : index
    %c0_4 = arith.constant 0 : index
    %3 = vector.load %arg3[%c0_3, %c0_4] : memref<1x32xf32, #tpu.memory_space<vmem>>, vector<1x32xf32>
    %4 = vector.broadcast %3 : vector<1x32xf32> to vector<16x32xf32>
    %5 = arith.addf %2, %4 : vector<16x32xf32>
    %c0_5 = arith.constant 0 : index
    %c0_6 = arith.constant 0 : index
    %6 = vector.load %arg4[%c0_5, %c0_6] : memref<16x32xf32, #tpu.memory_space<vmem>>, vector<16x32xf32>
    %7 = arith.addf %6, %5 : vector<16x32xf32>
    %c0_7 = arith.constant 0 : index
    %c0_8 = arith.constant 0 : index
    %8 = vector.load %arg5[%c0_7, %c0_8] : memref<1x32xf32, #tpu.memory_space<vmem>>, vector<1x32xf32>
    %c0_9 = arith.constant 0 : index
    %c0_10 = arith.constant 0 : index
    %9 = vector.load %arg6[%c0_9, %c0_10] : memref<1x32xf32, #tpu.memory_space<vmem>>, vector<1x32xf32>
    %cst_11 = arith.constant dense<0.000000e+00> : vector<16xf32>
    %10 = vector.multi_reduction <add>, %7, %cst_11 [1] : vector<16x32xf32> to vector<16xf32>
    %11 = vector.shape_cast %10 : vector<16xf32> to vector<16x1xf32>
    %cst_12 = arith.constant 3.200000e+01 : f32
    %12 = vector.broadcast %cst_12 : f32 to vector<16x1xf32>
    %13 = arith.divf %11, %12 : vector<16x1xf32>
    %14 = vector.broadcast %13 : vector<16x1xf32> to vector<16x32xf32>
    %15 = arith.subf %7, %14 : vector<16x32xf32>
    %16 = arith.mulf %15, %15 : vector<16x32xf32>
    %cst_13 = arith.constant dense<0.000000e+00> : vector<16xf32>
    %17 = vector.multi_reduction <add>, %16, %cst_13 [1] : vector<16x32xf32> to vector<16xf32>
    %18 = vector.shape_cast %17 : vector<16xf32> to vector<16x1xf32>
    %cst_14 = arith.constant 3.100000e+01 : f32
    %19 = vector.broadcast %cst_14 : f32 to vector<16x1xf32>
    %20 = arith.divf %18, %19 : vector<16x1xf32>
    %21 = math.sqrt %20 : vector<16x1xf32>
    %cst_15 = arith.constant 9.99999996E-13 : f32
    %22 = vector.broadcast %cst_15 : f32 to vector<16x1xf32>
    %23 = arith.addf %21, %22 : vector<16x1xf32>
    %24 = vector.broadcast %23 : vector<16x1xf32> to vector<16x32xf32>
    %25 = arith.divf %15, %24 : vector<16x32xf32>
    %26 = vector.broadcast %8 : vector<1x32xf32> to vector<16x32xf32>
    %27 = arith.mulf %26, %25 : vector<16x32xf32>
    %28 = vector.broadcast %9 : vector<1x32xf32> to vector<16x32xf32>
    %29 = arith.addf %27, %28 : vector<16x32xf32>
    %c0_16 = arith.constant 0 : index
    %c0_17 = arith.constant 0 : index
    %30 = vector.load %arg7[%c0_16, %c0_17] : memref<16x32xf32, #tpu.memory_space<vmem>>, vector<16x32xf32>
    tpu.vector_store %arg7[%c0_16, %c0_17], %29 {strides = array<i32>} : memref<16x32xf32, #tpu.memory_space<vmem>>, vector<16x32xf32>,
    return
  }
  func.func @transform_0(%arg0: i32) -> (i32, i32) {
    %c0_i32 = arith.constant 0 : i32
    %c0_i32_0 = arith.constant 0 : i32
    return %arg0, %c0_i32 : i32, i32
  }
  func.func @transform_1(%arg0: i32) -> (i32, i32) {
    %c0_i32 = arith.constant 0 : i32
    %c0_i32_0 = arith.constant 0 : i32
    %c0_i32_1 = arith.constant 0 : i32
    return %c0_i32, %c0_i32_0 : i32, i32
  }
  func.func @transform_2(%arg0: i32) -> (i32, i32) {
    %c0_i32 = arith.constant 0 : i32
    %c0_i32_0 = arith.constant 0 : i32
    %c0_i32_1 = arith.constant 0 : i32
    return %c0_i32, %c0_i32_0 : i32, i32
  }
  func.func @transform_3(%arg0: i32) -> (i32, i32) {
    %c0_i32 = arith.constant 0 : i32
    %c0_i32_0 = arith.constant 0 : i32
    return %arg0, %c0_i32 : i32, i32
  }
  func.func @transform_4(%arg0: i32) -> (i32, i32) {
    %c0_i32 = arith.constant 0 : i32
    %c0_i32_0 = arith.constant 0 : i32
    %c0_i32_1 = arith.constant 0 : i32
    return %c0_i32, %c0_i32_0 : i32, i32
  }
  func.func @transform_5(%arg0: i32) -> (i32, i32) {
    %c0_i32 = arith.constant 0 : i32
    %c0_i32_0 = arith.constant 0 : i32
    %c0_i32_1 = arith.constant 0 : i32
    return %c0_i32, %c0_i32_0 : i32, i32
  }
  func.func @transform_6(%arg0: i32) -> (i32, i32) {
    %c0_i32 = arith.constant 0 : i32
    %c0_i32_0 = arith.constant 0 : i32
    return %arg0, %c0_i32 : i32, i32
  }
}

module attributes {stable_mosaic.version = 11 : i64} {
  func.func @_linear_kernel(%arg0: i32, %arg1: memref<20x32xf32, #tpu.memory_space<vmem>>, %arg2: memref<32x96xf32, #tpu.memory_space<vmem>>, %arg3: memref<1x96xf32, #tpu.memory_space<vmem>>, %arg4: memref<20x96xf32, #tpu.memory_space<vmem>>) attributes {dimension_semantics = [#tpu.dimension_semantics<parallel>], iteration_bounds = array<i64: 1>, scalar_prefetch = 0 : i64, scratch_operands = 0 : i64, tpu.core_type = #tpu.core_type<tc>, window_params = [{transform_indices = @transform_0, window_bounds = array<i64: 20, 32>}, {pipeline_mode = #tpu.pipeline_mode<synchronous>, transform_indices = @transform_1, window_bounds = array<i64: 32, 96>}, {pipeline_mode = #tpu.pipeline_mode<synchronous>, transform_indices = @transform_2, window_bounds = array<i64: 1, 96>}, {transform_indices = @transform_3, window_bounds = array<i64: 20, 96>}]} {
    %c0 = arith.constant 0 : index
    %c0_0 = arith.constant 0 : index
    %0 = vector.load %arg1[%c0, %c0_0] : memref<20x32xf32, #tpu.memory_space<vmem>>, vector<20x32xf32>
    %c0_1 = arith.constant 0 : index
    %c0_2 = arith.constant 0 : index
    %1 = vector.load %arg2[%c0_1, %c0_2] : memref<32x96xf32, #tpu.memory_space<vmem>>, vector<32x96xf32>
    %cst = arith.constant dense<0.000000e+00> : vector<20x96xf32>
    %2 = tpu.matmul %0, %1, %cst {dimension_numbers = #tpu.dot_dimension_numbers<[1], [0], [0], [1], [0, 0, 1, 1], [], []>} : vector<20x32xf32>, vector<32x96xf32>, vector<20x96xf32> -> vector<20x96xf32>
    %c0_3 = arith.constant 0 : index
    %c0_4 = arith.constant 0 : index
    %3 = vector.load %arg3[%c0_3, %c0_4] : memref<1x96xf32, #tpu.memory_space<vmem>>, vector<1x96xf32>
    %4 = vector.broadcast %3 : vector<1x96xf32> to vector<20x96xf32>
    %5 = arith.addf %2, %4 : vector<20x96xf32>
    %c0_5 = arith.constant 0 : index
    %c0_6 = arith.constant 0 : index
    %6 = vector.load %arg4[%c0_5, %c0_6] : memref<20x96xf32, #tpu.memory_space<vmem>>, vector<20x96xf32>
    tpu.vector_store %arg4[%c0_5, %c0_6], %5 {strides = array<i32>} : memref<20x96xf32, #tpu.memory_space<vmem>>, vector<20x96xf32>,
    return
  }
  func.func @transform_0(%arg0: i32) -> (i32, i32) {
    %c0_i32 = arith.constant 0 : i32
    %c0_i32_0 = arith.constant 0 : i32
    return %arg0, %c0_i32 : i32, i32
  }
  func.func @transform_1(%arg0: i32) -> (i32, i32) {
    %c0_i32 = arith.constant 0 : i32
    %c0_i32_0 = arith.constant 0 : i32
    %c0_i32_1 = arith.constant 0 : i32
    return %c0_i32, %c0_i32_0 : i32, i32
  }
  func.func @transform_2(%arg0: i32) -> (i32, i32) {
    %c0_i32 = arith.constant 0 : i32
    %c0_i32_0 = arith.constant 0 : i32
    %c0_i32_1 = arith.constant 0 : i32
    return %c0_i32, %c0_i32_0 : i32, i32
  }
  func.func @transform_3(%arg0: i32) -> (i32, i32) {
    %c0_i32 = arith.constant 0 : i32
    %c0_i32_0 = arith.constant 0 : i32
    return %arg0, %c0_i32 : i32, i32
  }
}

module attributes {stable_mosaic.version = 11 : i64} {
  func.func @_linear_kernel(%arg0: i32, %arg1: memref<20x12xf32, #tpu.memory_space<vmem>>, %arg2: memref<12x32xf32, #tpu.memory_space<vmem>>, %arg3: memref<1x32xf32, #tpu.memory_space<vmem>>, %arg4: memref<20x32xf32, #tpu.memory_space<vmem>>) attributes {dimension_semantics = [#tpu.dimension_semantics<parallel>], iteration_bounds = array<i64: 1>, scalar_prefetch = 0 : i64, scratch_operands = 0 : i64, tpu.core_type = #tpu.core_type<tc>, window_params = [{transform_indices = @transform_0, window_bounds = array<i64: 20, 12>}, {pipeline_mode = #tpu.pipeline_mode<synchronous>, transform_indices = @transform_1, window_bounds = array<i64: 12, 32>}, {pipeline_mode = #tpu.pipeline_mode<synchronous>, transform_indices = @transform_2, window_bounds = array<i64: 1, 32>}, {transform_indices = @transform_3, window_bounds = array<i64: 20, 32>}]} {
    %c0 = arith.constant 0 : index
    %c0_0 = arith.constant 0 : index
    %0 = vector.load %arg1[%c0, %c0_0] : memref<20x12xf32, #tpu.memory_space<vmem>>, vector<20x12xf32>
    %c0_1 = arith.constant 0 : index
    %c0_2 = arith.constant 0 : index
    %1 = vector.load %arg2[%c0_1, %c0_2] : memref<12x32xf32, #tpu.memory_space<vmem>>, vector<12x32xf32>
    %cst = arith.constant dense<0.000000e+00> : vector<20x32xf32>
    %2 = tpu.matmul %0, %1, %cst {dimension_numbers = #tpu.dot_dimension_numbers<[1], [0], [0], [1], [0, 0, 1, 1], [], []>} : vector<20x12xf32>, vector<12x32xf32>, vector<20x32xf32> -> vector<20x32xf32>
    %c0_3 = arith.constant 0 : index
    %c0_4 = arith.constant 0 : index
    %3 = vector.load %arg3[%c0_3, %c0_4] : memref<1x32xf32, #tpu.memory_space<vmem>>, vector<1x32xf32>
    %4 = vector.broadcast %3 : vector<1x32xf32> to vector<20x32xf32>
    %5 = arith.addf %2, %4 : vector<20x32xf32>
    %c0_5 = arith.constant 0 : index
    %c0_6 = arith.constant 0 : index
    %6 = vector.load %arg4[%c0_5, %c0_6] : memref<20x32xf32, #tpu.memory_space<vmem>>, vector<20x32xf32>
    tpu.vector_store %arg4[%c0_5, %c0_6], %5 {strides = array<i32>} : memref<20x32xf32, #tpu.memory_space<vmem>>, vector<20x32xf32>,
    return
  }
  func.func @transform_0(%arg0: i32) -> (i32, i32) {
    %c0_i32 = arith.constant 0 : i32
    %c0_i32_0 = arith.constant 0 : i32
    return %arg0, %c0_i32 : i32, i32
  }
  func.func @transform_1(%arg0: i32) -> (i32, i32) {
    %c0_i32 = arith.constant 0 : i32
    %c0_i32_0 = arith.constant 0 : i32
    %c0_i32_1 = arith.constant 0 : i32
    return %c0_i32, %c0_i32_0 : i32, i32
  }
  func.func @transform_2(%arg0: i32) -> (i32, i32) {
    %c0_i32 = arith.constant 0 : i32
    %c0_i32_0 = arith.constant 0 : i32
    %c0_i32_1 = arith.constant 0 : i32
    return %c0_i32, %c0_i32_0 : i32, i32
  }
  func.func @transform_3(%arg0: i32) -> (i32, i32) {
    %c0_i32 = arith.constant 0 : i32
    %c0_i32_0 = arith.constant 0 : i32
    return %arg0, %c0_i32 : i32, i32
  }
}

module attributes {stable_mosaic.version = 11 : i64} {
  func.func @_attn_kernel_ctx(%arg0: i32, %arg1: memref<1x4x10x8xf32, #tpu.memory_space<vmem>>, %arg2: memref<1x4x10x8xf32, #tpu.memory_space<vmem>>, %arg3: memref<1x4x10x8xf32, #tpu.memory_space<vmem>>, %arg4: memref<1x1x10xf32, #tpu.memory_space<vmem>>, %arg5: memref<1x4x10x8xf32, #tpu.memory_space<vmem>>) attributes {dimension_semantics = [#tpu.dimension_semantics<parallel>], iteration_bounds = array<i64: 2>, scalar_prefetch = 0 : i64, scratch_operands = 0 : i64, tpu.core_type = #tpu.core_type<tc>, window_params = [{transform_indices = @transform_0, window_bounds = array<i64: 1, 4, 10, 8>}, {transform_indices = @transform_1, window_bounds = array<i64: 1, 4, 10, 8>}, {transform_indices = @transform_2, window_bounds = array<i64: 1, 4, 10, 8>}, {transform_indices = @transform_3, window_bounds = array<i64: 1, 1, 10>}, {transform_indices = @transform_4, window_bounds = array<i64: 1, 4, 10, 8>}]} {
    %c0 = arith.constant 0 : index
    %c0_0 = arith.constant 0 : index
    %c0_1 = arith.constant 0 : index
    %c0_2 = arith.constant 0 : index
    %0 = vector.load %arg1[%c0, %c0_0, %c0_1, %c0_2] : memref<1x4x10x8xf32, #tpu.memory_space<vmem>>, vector<1x4x10x8xf32>
    %1 = vector.shape_cast %0 : vector<1x4x10x8xf32> to vector<4x10x8xf32>
    %c0_3 = arith.constant 0 : index
    %c0_4 = arith.constant 0 : index
    %c0_5 = arith.constant 0 : index
    %c0_6 = arith.constant 0 : index
    %2 = vector.load %arg2[%c0_3, %c0_4, %c0_5, %c0_6] : memref<1x4x10x8xf32, #tpu.memory_space<vmem>>, vector<1x4x10x8xf32>
    %3 = vector.shape_cast %2 : vector<1x4x10x8xf32> to vector<4x10x8xf32>
    %c0_7 = arith.constant 0 : index
    %c0_8 = arith.constant 0 : index
    %c0_9 = arith.constant 0 : index
    %c0_10 = arith.constant 0 : index
    %4 = vector.load %arg3[%c0_7, %c0_8, %c0_9, %c0_10] : memref<1x4x10x8xf32, #tpu.memory_space<vmem>>, vector<1x4x10x8xf32>
    %5 = vector.shape_cast %4 : vector<1x4x10x8xf32> to vector<4x10x8xf32>
    %c0_11 = arith.constant 0 : index
    %c0_12 = arith.constant 0 : index
    %c0_13 = arith.constant 0 : index
    %6 = vector.load %arg4[%c0_11, %c0_12, %c0_13] : memref<1x1x10xf32, #tpu.memory_space<vmem>>, vector<1x1x10xf32>
    %7 = vector.shape_cast %6 : vector<1x1x10xf32> to vector<1x10xf32>
    "tpu.trace_start"() <{level = 10 : i32, message = "hqd,hkd->hqk"}> : () -> ()
    %cst = arith.constant dense<0.000000e+00> : vector<4x10x10xf32>
    %8 = tpu.matmul %1, %3, %cst {dimension_numbers = #tpu.dot_dimension_numbers<[2], [2], [1], [1], [0, 0, 0, 1, 1, 1], [0], [0]>} : vector<4x10x8xf32>, vector<4x10x8xf32>, vector<4x10x10xf32> -> vector<4x10x10xf32>
    "tpu.trace_stop"() : () -> ()
    %cst_14 = arith.constant 0.353553385 : f32
    %9 = vector.broadcast %cst_14 : f32 to vector<4x10x10xf32>
    %10 = arith.mulf %8, %9 : vector<4x10x10xf32>
    %11 = vector.shape_cast %7 : vector<1x10xf32> to vector<1x1x10xf32>
    %12 = vector.broadcast %11 : vector<1x1x10xf32> to vector<4x10x10xf32>
    %13 = arith.addf %10, %12 : vector<4x10x10xf32>
    %cst_15 = arith.constant dense<0xFF800000> : vector<4x10xf32>
    %14 = vector.multi_reduction <maximumf>, %13, %cst_15 [2] : vector<4x10x10xf32> to vector<4x10xf32>
    %15 = vector.shape_cast %14 : vector<4x10xf32> to vector<4x10x1xf32>
    %16 = vector.broadcast %15 : vector<4x10x1xf32> to vector<4x10x10xf32>
    %17 = arith.subf %13, %16 : vector<4x10x10xf32>
    %18 = math.exp %17 : vector<4x10x10xf32>
    %cst_16 = arith.constant dense<0.000000e+00> : vector<4x10xf32>
    %19 = vector.multi_reduction <add>, %18, %cst_16 [2] : vector<4x10x10xf32> to vector<4x10xf32>
    %20 = vector.shape_cast %19 : vector<4x10xf32> to vector<4x10x1xf32>
    %21 = tpu.reciprocal %20 {approx = true} : vector<4x10x1xf32> -> vector<4x10x1xf32>
    %22 = vector.broadcast %21 : vector<4x10x1xf32> to vector<4x10x10xf32>
    %23 = arith.mulf %18, %22 : vector<4x10x10xf32>
    "tpu.trace_start"() <{level = 10 : i32, message = "hqk,hkd->hqd"}> : () -> ()
    %cst_17 = arith.constant dense<0.000000e+00> : vector<4x10x8xf32>
    %24 = tpu.matmul %23, %5, %cst_17 {dimension_numbers = #tpu.dot_dimension_numbers<[2], [1], [1], [2], [0, 0, 0, 1, 1, 2], [0], [0]>} : vector<4x10x10xf32>, vector<4x10x8xf32>, vector<4x10x8xf32> -> vector<4x10x8xf32>
    "tpu.trace_stop"() : () -> ()
    %c0_18 = arith.constant 0 : index
    %c0_19 = arith.constant 0 : index
    %c0_20 = arith.constant 0 : index
    %c0_21 = arith.constant 0 : index
    %25 = vector.load %arg5[%c0_18, %c0_19, %c0_20, %c0_21] : memref<1x4x10x8xf32, #tpu.memory_space<vmem>>, vector<1x4x10x8xf32>
    %26 = vector.shape_cast %25 : vector<1x4x10x8xf32> to vector<4x10x8xf32>
    %27 = vector.shape_cast %24 : vector<4x10x8xf32> to vector<1x4x10x8xf32>
    tpu.vector_store %arg5[%c0_18, %c0_19, %c0_20, %c0_21], %27 {strides = array<i32>} : memref<1x4x10x8xf32, #tpu.memory_space<vmem>>, vector<1x4x10x8xf32>,
    return
  }
  func.func @transform_0(%arg0: i32) -> (i32, i32, i32, i32) {
    %c0_i32 = arith.constant 0 : i32
    %c0_i32_0 = arith.constant 0 : i32
    %c0_i32_1 = arith.constant 0 : i32
    %c0_i32_2 = arith.constant 0 : i32
    return %arg0, %c0_i32, %c0_i32_0, %c0_i32_1 : i32, i32, i32, i32
  }
  func.func @transform_1(%arg0: i32) -> (i32, i32, i32, i32) {
    %c0_i32 = arith.constant 0 : i32
    %c0_i32_0 = arith.constant 0 : i32
    %c0_i32_1 = arith.constant 0 : i32
    %c0_i32_2 = arith.constant 0 : i32
    return %arg0, %c0_i32, %c0_i32_0, %c0_i32_1 : i32, i32, i32, i32
  }
  func.func @transform_2(%arg0: i32) -> (i32, i32, i32, i32) {
    %c0_i32 = arith.constant 0 : i32
    %c0_i32_0 = arith.constant 0 : i32
    %c0_i32_1 = arith.constant 0 : i32
    %c0_i32_2 = arith.constant 0 : i32
    return %arg0, %c0_i32, %c0_i32_0, %c0_i32_1 : i32, i32, i32, i32
  }
  func.func @transform_3(%arg0: i32) -> (i32, i32, i32) {
    %c0_i32 = arith.constant 0 : i32
    %c0_i32_0 = arith.constant 0 : i32
    %c0_i32_1 = arith.constant 0 : i32
    return %arg0, %c0_i32, %c0_i32_0 : i32, i32, i32
  }
  func.func @transform_4(%arg0: i32) -> (i32, i32, i32, i32) {
    %c0_i32 = arith.constant 0 : i32
    %c0_i32_0 = arith.constant 0 : i32
    %c0_i32_1 = arith.constant 0 : i32
    %c0_i32_2 = arith.constant 0 : i32
    return %arg0, %c0_i32, %c0_i32_0, %c0_i32_1 : i32, i32, i32, i32
  }
}

module attributes {stable_mosaic.version = 11 : i64} {
  func.func @_attn_kernel_ctx_probs(%arg0: i32, %arg1: memref<1x4x10x8xf32, #tpu.memory_space<vmem>>, %arg2: memref<1x4x10x8xf32, #tpu.memory_space<vmem>>, %arg3: memref<1x4x10x8xf32, #tpu.memory_space<vmem>>, %arg4: memref<1x1x10xf32, #tpu.memory_space<vmem>>, %arg5: memref<1x4x10x8xf32, #tpu.memory_space<vmem>>, %arg6: memref<1x4x10x10xf32, #tpu.memory_space<vmem>>) attributes {dimension_semantics = [#tpu.dimension_semantics<parallel>], iteration_bounds = array<i64: 2>, scalar_prefetch = 0 : i64, scratch_operands = 0 : i64, tpu.core_type = #tpu.core_type<tc>, window_params = [{transform_indices = @transform_0, window_bounds = array<i64: 1, 4, 10, 8>}, {transform_indices = @transform_1, window_bounds = array<i64: 1, 4, 10, 8>}, {transform_indices = @transform_2, window_bounds = array<i64: 1, 4, 10, 8>}, {transform_indices = @transform_3, window_bounds = array<i64: 1, 1, 10>}, {transform_indices = @transform_4, window_bounds = array<i64: 1, 4, 10, 8>}, {transform_indices = @transform_5, window_bounds = array<i64: 1, 4, 10, 10>}]} {
    %c0 = arith.constant 0 : index
    %c0_0 = arith.constant 0 : index
    %c0_1 = arith.constant 0 : index
    %c0_2 = arith.constant 0 : index
    %0 = vector.load %arg1[%c0, %c0_0, %c0_1, %c0_2] : memref<1x4x10x8xf32, #tpu.memory_space<vmem>>, vector<1x4x10x8xf32>
    %1 = vector.shape_cast %0 : vector<1x4x10x8xf32> to vector<4x10x8xf32>
    %c0_3 = arith.constant 0 : index
    %c0_4 = arith.constant 0 : index
    %c0_5 = arith.constant 0 : index
    %c0_6 = arith.constant 0 : index
    %2 = vector.load %arg2[%c0_3, %c0_4, %c0_5, %c0_6] : memref<1x4x10x8xf32, #tpu.memory_space<vmem>>, vector<1x4x10x8xf32>
    %3 = vector.shape_cast %2 : vector<1x4x10x8xf32> to vector<4x10x8xf32>
    %c0_7 = arith.constant 0 : index
    %c0_8 = arith.constant 0 : index
    %c0_9 = arith.constant 0 : index
    %c0_10 = arith.constant 0 : index
    %4 = vector.load %arg3[%c0_7, %c0_8, %c0_9, %c0_10] : memref<1x4x10x8xf32, #tpu.memory_space<vmem>>, vector<1x4x10x8xf32>
    %5 = vector.shape_cast %4 : vector<1x4x10x8xf32> to vector<4x10x8xf32>
    %c0_11 = arith.constant 0 : index
    %c0_12 = arith.constant 0 : index
    %c0_13 = arith.constant 0 : index
    %6 = vector.load %arg4[%c0_11, %c0_12, %c0_13] : memref<1x1x10xf32, #tpu.memory_space<vmem>>, vector<1x1x10xf32>
    %7 = vector.shape_cast %6 : vector<1x1x10xf32> to vector<1x10xf32>
    "tpu.trace_start"() <{level = 10 : i32, message = "hqd,hkd->hqk"}> : () -> ()
    %cst = arith.constant dense<0.000000e+00> : vector<4x10x10xf32>
    %8 = tpu.matmul %1, %3, %cst {dimension_numbers = #tpu.dot_dimension_numbers<[2], [2], [1], [1], [0, 0, 0, 1, 1, 1], [0], [0]>} : vector<4x10x8xf32>, vector<4x10x8xf32>, vector<4x10x10xf32> -> vector<4x10x10xf32>
    "tpu.trace_stop"() : () -> ()
    %cst_14 = arith.constant 0.353553385 : f32
    %9 = vector.broadcast %cst_14 : f32 to vector<4x10x10xf32>
    %10 = arith.mulf %8, %9 : vector<4x10x10xf32>
    %11 = vector.shape_cast %7 : vector<1x10xf32> to vector<1x1x10xf32>
    %12 = vector.broadcast %11 : vector<1x1x10xf32> to vector<4x10x10xf32>
    %13 = arith.addf %10, %12 : vector<4x10x10xf32>
    %cst_15 = arith.constant dense<0xFF800000> : vector<4x10xf32>
    %14 = vector.multi_reduction <maximumf>, %13, %cst_15 [2] : vector<4x10x10xf32> to vector<4x10xf32>
    %15 = vector.shape_cast %14 : vector<4x10xf32> to vector<4x10x1xf32>
    %16 = vector.broadcast %15 : vector<4x10x1xf32> to vector<4x10x10xf32>
    %17 = arith.subf %13, %16 : vector<4x10x10xf32>
    %18 = math.exp %17 : vector<4x10x10xf32>
    %cst_16 = arith.constant dense<0.000000e+00> : vector<4x10xf32>
    %19 = vector.multi_reduction <add>, %18, %cst_16 [2] : vector<4x10x10xf32> to vector<4x10xf32>
    %20 = vector.shape_cast %19 : vector<4x10xf32> to vector<4x10x1xf32>
    %21 = tpu.reciprocal %20 {approx = true} : vector<4x10x1xf32> -> vector<4x10x1xf32>
    %22 = vector.broadcast %21 : vector<4x10x1xf32> to vector<4x10x10xf32>
    %23 = arith.mulf %18, %22 : vector<4x10x10xf32>
    "tpu.trace_start"() <{level = 10 : i32, message = "hqk,hkd->hqd"}> : () -> ()
    %cst_17 = arith.constant dense<0.000000e+00> : vector<4x10x8xf32>
    %24 = tpu.matmul %23, %5, %cst_17 {dimension_numbers = #tpu.dot_dimension_numbers<[2], [1], [1], [2], [0, 0, 0, 1, 1, 2], [0], [0]>} : vector<4x10x10xf32>, vector<4x10x8xf32>, vector<4x10x8xf32> -> vector<4x10x8xf32>
    "tpu.trace_stop"() : () -> ()
    %c0_18 = arith.constant 0 : index
    %c0_19 = arith.constant 0 : index
    %c0_20 = arith.constant 0 : index
    %c0_21 = arith.constant 0 : index
    %25 = vector.load %arg5[%c0_18, %c0_19, %c0_20, %c0_21] : memref<1x4x10x8xf32, #tpu.memory_space<vmem>>, vector<1x4x10x8xf32>
    %26 = vector.shape_cast %25 : vector<1x4x10x8xf32> to vector<4x10x8xf32>
    %27 = vector.shape_cast %24 : vector<4x10x8xf32> to vector<1x4x10x8xf32>
    tpu.vector_store %arg5[%c0_18, %c0_19, %c0_20, %c0_21], %27 {strides = array<i32>} : memref<1x4x10x8xf32, #tpu.memory_space<vmem>>, vector<1x4x10x8xf32>,
    %c0_22 = arith.constant 0 : index
    %c0_23 = arith.constant 0 : index
    %c0_24 = arith.constant 0 : index
    %c0_25 = arith.constant 0 : index
    %28 = vector.load %arg6[%c0_22, %c0_23, %c0_24, %c0_25] : memref<1x4x10x10xf32, #tpu.memory_space<vmem>>, vector<1x4x10x10xf32>
    %29 = vector.shape_cast %28 : vector<1x4x10x10xf32> to vector<4x10x10xf32>
    %30 = vector.shape_cast %23 : vector<4x10x10xf32> to vector<1x4x10x10xf32>
    tpu.vector_store %arg6[%c0_22, %c0_23, %c0_24, %c0_25], %30 {strides = array<i32>} : memref<1x4x10x10xf32, #tpu.memory_space<vmem>>, vector<1x4x10x10xf32>,
    return
  }
  func.func @transform_0(%arg0: i32) -> (i32, i32, i32, i32) {
    %c0_i32 = arith.constant 0 : i32
    %c0_i32_0 = arith.constant 0 : i32
    %c0_i32_1 = arith.constant 0 : i32
    %c0_i32_2 = arith.constant 0 : i32
    return %arg0, %c0_i32, %c0_i32_0, %c0_i32_1 : i32, i32, i32, i32
  }
  func.func @transform_1(%arg0: i32) -> (i32, i32, i32, i32) {
    %c0_i32 = arith.constant 0 : i32
    %c0_i32_0 = arith.constant 0 : i32
    %c0_i32_1 = arith.constant 0 : i32
    %c0_i32_2 = arith.constant 0 : i32
    return %arg0, %c0_i32, %c0_i32_0, %c0_i32_1 : i32, i32, i32, i32
  }
  func.func @transform_2(%arg0: i32) -> (i32, i32, i32, i32) {
    %c0_i32 = arith.constant 0 : i32
    %c0_i32_0 = arith.constant 0 : i32
    %c0_i32_1 = arith.constant 0 : i32
    %c0_i32_2 = arith.constant 0 : i32
    return %arg0, %c0_i32, %c0_i32_0, %c0_i32_1 : i32, i32, i32, i32
  }
  func.func @transform_3(%arg0: i32) -> (i32, i32, i32) {
    %c0_i32 = arith.constant 0 : i32
    %c0_i32_0 = arith.constant 0 : i32
    %c0_i32_1 = arith.constant 0 : i32
    return %arg0, %c0_i32, %c0_i32_0 : i32, i32, i32
  }
  func.func @transform_4(%arg0: i32) -> (i32, i32, i32, i32) {
    %c0_i32 = arith.constant 0 : i32
    %c0_i32_0 = arith.constant 0 : i32
    %c0_i32_1 = arith.constant 0 : i32
    %c0_i32_2 = arith.constant 0 : i32
    return %arg0, %c0_i32, %c0_i32_0, %c0_i32_1 : i32, i32, i32, i32
  }
  func.func @transform_5(%arg0: i32) -> (i32, i32, i32, i32) {
    %c0_i32 = arith.constant 0 : i32
    %c0_i32_0 = arith.constant 0 : i32
    %c0_i32_1 = arith.constant 0 : i32
    %c0_i32_2 = arith.constant 0 : i32
    return %arg0, %c0_i32, %c0_i32_0, %c0_i32_1 : i32, i32, i32, i32
  }
}

module attributes {stable_mosaic.version = 11 : i64} {
  func.func @_post_attn_ffn_kernel(%arg0: i32, %arg1: memref<20x32xf32, #tpu.memory_space<vmem>>, %arg2: memref<32x32xf32, #tpu.memory_space<vmem>>, %arg3: memref<1x32xf32, #tpu.memory_space<vmem>>, %arg4: memref<20x32xf32, #tpu.memory_space<vmem>>, %arg5: memref<1x32xf32, #tpu.memory_space<vmem>>, %arg6: memref<1x32xf32, #tpu.memory_space<vmem>>, %arg7: memref<32x64xf32, #tpu.memory_space<vmem>>, %arg8: memref<1x64xf32, #tpu.memory_space<vmem>>, %arg9: memref<64x32xf32, #tpu.memory_space<vmem>>, %arg10: memref<1x32xf32, #tpu.memory_space<vmem>>, %arg11: memref<1x32xf32, #tpu.memory_space<vmem>>, %arg12: memref<1x32xf32, #tpu.memory_space<vmem>>, %arg13: memref<20x32xf32, #tpu.memory_space<vmem>>) attributes {dimension_semantics = [#tpu.dimension_semantics<parallel>], iteration_bounds = array<i64: 1>, scalar_prefetch = 0 : i64, scratch_operands = 0 : i64, tpu.core_type = #tpu.core_type<tc>, window_params = [{transform_indices = @transform_0, window_bounds = array<i64: 20, 32>}, {pipeline_mode = #tpu.pipeline_mode<synchronous>, transform_indices = @transform_1, window_bounds = array<i64: 32, 32>}, {pipeline_mode = #tpu.pipeline_mode<synchronous>, transform_indices = @transform_2, window_bounds = array<i64: 1, 32>}, {transform_indices = @transform_3, window_bounds = array<i64: 20, 32>}, {pipeline_mode = #tpu.pipeline_mode<synchronous>, transform_indices = @transform_4, window_bounds = array<i64: 1, 32>}, {pipeline_mode = #tpu.pipeline_mode<synchronous>, transform_indices = @transform_5, window_bounds = array<i64: 1, 32>}, {pipeline_mode = #tpu.pipeline_mode<synchronous>, transform_indices = @transform_6, window_bounds = array<i64: 32, 64>}, {pipeline_mode = #tpu.pipeline_mode<synchronous>, transform_indices = @transform_7, window_bounds = array<i64: 1, 64>}, {pipeline_mode = #tpu.pipeline_mode<synchronous>, transform_indices = @transform_8, window_bounds = array<i64: 64, 32>}, {pipeline_mode = #tpu.pipeline_mode<synchronous>, transform_indices = @transform_9, window_bounds = array<i64: 1, 32>}, {pipeline_mode = #tpu.pipeline_mode<synchronous>, transform_indices = @transform_10, window_bounds = array<i64: 1, 32>}, {pipeline_mode = #tpu.pipeline_mode<synchronous>, transform_indices = @transform_11, window_bounds = array<i64: 1, 32>}, {transform_indices = @transform_12, window_bounds = array<i64: 20, 32>}]} {
    %c0 = arith.constant 0 : index
    %c0_0 = arith.constant 0 : index
    %0 = vector.load %arg1[%c0, %c0_0] : memref<20x32xf32, #tpu.memory_space<vmem>>, vector<20x32xf32>
    %c0_1 = arith.constant 0 : index
    %c0_2 = arith.constant 0 : index
    %1 = vector.load %arg2[%c0_1, %c0_2] : memref<32x32xf32, #tpu.memory_space<vmem>>, vector<32x32xf32>
    %cst = arith.constant dense<0.000000e+00> : vector<20x32xf32>
    %2 = tpu.matmul %0, %1, %cst {dimension_numbers = #tpu.dot_dimension_numbers<[1], [0], [0], [1], [0, 0, 1, 1], [], []>} : vector<20x32xf32>, vector<32x32xf32>, vector<20x32xf32> -> vector<20x32xf32>
    %c0_3 = arith.constant 0 : index
    %c0_4 = arith.constant 0 : index
    %3 = vector.load %arg3[%c0_3, %c0_4] : memref<1x32xf32, #tpu.memory_space<vmem>>, vector<1x32xf32>
    %4 = vector.broadcast %3 : vector<1x32xf32> to vector<20x32xf32>
    %5 = arith.addf %2, %4 : vector<20x32xf32>
    %c0_5 = arith.constant 0 : index
    %c0_6 = arith.constant 0 : index
    %6 = vector.load %arg4[%c0_5, %c0_6] : memref<20x32xf32, #tpu.memory_space<vmem>>, vector<20x32xf32>
    %7 = arith.addf %6, %5 : vector<20x32xf32>
    %c0_7 = arith.constant 0 : index
    %c0_8 = arith.constant 0 : index
    %8 = vector.load %arg5[%c0_7, %c0_8] : memref<1x32xf32, #tpu.memory_space<vmem>>, vector<1x32xf32>
    %c0_9 = arith.constant 0 : index
    %c0_10 = arith.constant 0 : index
    %9 = vector.load %arg6[%c0_9, %c0_10] : memref<1x32xf32, #tpu.memory_space<vmem>>, vector<1x32xf32>
    %cst_11 = arith.constant dense<0.000000e+00> : vector<20xf32>
    %10 = vector.multi_reduction <add>, %7, %cst_11 [1] : vector<20x32xf32> to vector<20xf32>
    %11 = vector.shape_cast %10 : vector<20xf32> to vector<20x1xf32>
    %cst_12 = arith.constant 3.200000e+01 : f32
    %12 = vector.broadcast %cst_12 : f32 to vector<20x1xf32>
    %13 = arith.divf %11, %12 : vector<20x1xf32>
    %14 = vector.broadcast %13 : vector<20x1xf32> to vector<20x32xf32>
    %15 = arith.subf %7, %14 : vector<20x32xf32>
    %16 = arith.mulf %15, %15 : vector<20x32xf32>
    %cst_13 = arith.constant dense<0.000000e+00> : vector<20xf32>
    %17 = vector.multi_reduction <add>, %16, %cst_13 [1] : vector<20x32xf32> to vector<20xf32>
    %18 = vector.shape_cast %17 : vector<20xf32> to vector<20x1xf32>
    %cst_14 = arith.constant 3.100000e+01 : f32
    %19 = vector.broadcast %cst_14 : f32 to vector<20x1xf32>
    %20 = arith.divf %18, %19 : vector<20x1xf32>
    %21 = math.sqrt %20 : vector<20x1xf32>
    %cst_15 = arith.constant 9.99999996E-13 : f32
    %22 = vector.broadcast %cst_15 : f32 to vector<20x1xf32>
    %23 = arith.addf %21, %22 : vector<20x1xf32>
    %24 = vector.broadcast %23 : vector<20x1xf32> to vector<20x32xf32>
    %25 = arith.divf %15, %24 : vector<20x32xf32>
    %26 = vector.broadcast %8 : vector<1x32xf32> to vector<20x32xf32>
    %27 = arith.mulf %26, %25 : vector<20x32xf32>
    %28 = vector.broadcast %9 : vector<1x32xf32> to vector<20x32xf32>
    %29 = arith.addf %27, %28 : vector<20x32xf32>
    %c0_16 = arith.constant 0 : index
    %c0_17 = arith.constant 0 : index
    %30 = vector.load %arg7[%c0_16, %c0_17] : memref<32x64xf32, #tpu.memory_space<vmem>>, vector<32x64xf32>
    %cst_18 = arith.constant dense<0.000000e+00> : vector<20x64xf32>
    %31 = tpu.matmul %29, %30, %cst_18 {dimension_numbers = #tpu.dot_dimension_numbers<[1], [0], [0], [1], [0, 0, 1, 1], [], []>} : vector<20x32xf32>, vector<32x64xf32>, vector<20x64xf32> -> vector<20x64xf32>
    %c0_19 = arith.constant 0 : index
    %c0_20 = arith.constant 0 : index
    %32 = vector.load %arg8[%c0_19, %c0_20] : memref<1x64xf32, #tpu.memory_space<vmem>>, vector<1x64xf32>
    %33 = vector.broadcast %32 : vector<1x64xf32> to vector<20x64xf32>
    %34 = arith.addf %31, %33 : vector<20x64xf32>
    %cst_21 = arith.constant 0.000000e+00 : f32
    %35 = vector.broadcast %cst_21 : f32 to vector<20x64xf32>
    %36 = arith.maximumf %34, %35 : vector<20x64xf32>
    %c0_22 = arith.constant 0 : index
    %c0_23 = arith.constant 0 : index
    %37 = vector.load %arg9[%c0_22, %c0_23] : memref<64x32xf32, #tpu.memory_space<vmem>>, vector<64x32xf32>
    %cst_24 = arith.constant dense<0.000000e+00> : vector<20x32xf32>
    %38 = tpu.matmul %36, %37, %cst_24 {dimension_numbers = #tpu.dot_dimension_numbers<[1], [0], [0], [1], [0, 0, 1, 1], [], []>} : vector<20x64xf32>, vector<64x32xf32>, vector<20x32xf32> -> vector<20x32xf32>
    %c0_25 = arith.constant 0 : index
    %c0_26 = arith.constant 0 : index
    %39 = vector.load %arg10[%c0_25, %c0_26] : memref<1x32xf32, #tpu.memory_space<vmem>>, vector<1x32xf32>
    %40 = vector.broadcast %39 : vector<1x32xf32> to vector<20x32xf32>
    %41 = arith.addf %38, %40 : vector<20x32xf32>
    %42 = arith.addf %29, %41 : vector<20x32xf32>
    %c0_27 = arith.constant 0 : index
    %c0_28 = arith.constant 0 : index
    %43 = vector.load %arg11[%c0_27, %c0_28] : memref<1x32xf32, #tpu.memory_space<vmem>>, vector<1x32xf32>
    %c0_29 = arith.constant 0 : index
    %c0_30 = arith.constant 0 : index
    %44 = vector.load %arg12[%c0_29, %c0_30] : memref<1x32xf32, #tpu.memory_space<vmem>>, vector<1x32xf32>
    %cst_31 = arith.constant dense<0.000000e+00> : vector<20xf32>
    %45 = vector.multi_reduction <add>, %42, %cst_31 [1] : vector<20x32xf32> to vector<20xf32>
    %46 = vector.shape_cast %45 : vector<20xf32> to vector<20x1xf32>
    %cst_32 = arith.constant 3.200000e+01 : f32
    %47 = vector.broadcast %cst_32 : f32 to vector<20x1xf32>
    %48 = arith.divf %46, %47 : vector<20x1xf32>
    %49 = vector.broadcast %48 : vector<20x1xf32> to vector<20x32xf32>
    %50 = arith.subf %42, %49 : vector<20x32xf32>
    %51 = arith.mulf %50, %50 : vector<20x32xf32>
    %cst_33 = arith.constant dense<0.000000e+00> : vector<20xf32>
    %52 = vector.multi_reduction <add>, %51, %cst_33 [1] : vector<20x32xf32> to vector<20xf32>
    %53 = vector.shape_cast %52 : vector<20xf32> to vector<20x1xf32>
    %cst_34 = arith.constant 3.100000e+01 : f32
    %54 = vector.broadcast %cst_34 : f32 to vector<20x1xf32>
    %55 = arith.divf %53, %54 : vector<20x1xf32>
    %56 = math.sqrt %55 : vector<20x1xf32>
    %cst_35 = arith.constant 9.99999996E-13 : f32
    %57 = vector.broadcast %cst_35 : f32 to vector<20x1xf32>
    %58 = arith.addf %56, %57 : vector<20x1xf32>
    %59 = vector.broadcast %58 : vector<20x1xf32> to vector<20x32xf32>
    %60 = arith.divf %50, %59 : vector<20x32xf32>
    %61 = vector.broadcast %43 : vector<1x32xf32> to vector<20x32xf32>
    %62 = arith.mulf %61, %60 : vector<20x32xf32>
    %63 = vector.broadcast %44 : vector<1x32xf32> to vector<20x32xf32>
    %64 = arith.addf %62, %63 : vector<20x32xf32>
    %c0_36 = arith.constant 0 : index
    %c0_37 = arith.constant 0 : index
    %65 = vector.load %arg13[%c0_36, %c0_37] : memref<20x32xf32, #tpu.memory_space<vmem>>, vector<20x32xf32>
    tpu.vector_store %arg13[%c0_36, %c0_37], %64 {strides = array<i32>} : memref<20x32xf32, #tpu.memory_space<vmem>>, vector<20x32xf32>,
    return
  }
  func.func @transform_0(%arg0: i32) -> (i32, i32) {
    %c0_i32 = arith.constant 0 : i32
    %c0_i32_0 = arith.constant 0 : i32
    return %arg0, %c0_i32 : i32, i32
  }
  func.func @transform_1(%arg0: i32) -> (i32, i32) {
    %c0_i32 = arith.constant 0 : i32
    %c0_i32_0 = arith.constant 0 : i32
    %c0_i32_1 = arith.constant 0 : i32
    return %c0_i32, %c0_i32_0 : i32, i32
  }
  func.func @transform_2(%arg0: i32) -> (i32, i32) {
    %c0_i32 = arith.constant 0 : i32
    %c0_i32_0 = arith.constant 0 : i32
    %c0_i32_1 = arith.constant 0 : i32
    return %c0_i32, %c0_i32_0 : i32, i32
  }
  func.func @transform_3(%arg0: i32) -> (i32, i32) {
    %c0_i32 = arith.constant 0 : i32
    %c0_i32_0 = arith.constant 0 : i32
    return %arg0, %c0_i32 : i32, i32
  }
  func.func @transform_4(%arg0: i32) -> (i32, i32) {
    %c0_i32 = arith.constant 0 : i32
    %c0_i32_0 = arith.constant 0 : i32
    %c0_i32_1 = arith.constant 0 : i32
    return %c0_i32, %c0_i32_0 : i32, i32
  }
  func.func @transform_5(%arg0: i32) -> (i32, i32) {
    %c0_i32 = arith.constant 0 : i32
    %c0_i32_0 = arith.constant 0 : i32
    %c0_i32_1 = arith.constant 0 : i32
    return %c0_i32, %c0_i32_0 : i32, i32
  }
  func.func @transform_6(%arg0: i32) -> (i32, i32) {
    %c0_i32 = arith.constant 0 : i32
    %c0_i32_0 = arith.constant 0 : i32
    %c0_i32_1 = arith.constant 0 : i32
    return %c0_i32, %c0_i32_0 : i32, i32
  }
  func.func @transform_7(%arg0: i32) -> (i32, i32) {
    %c0_i32 = arith.constant 0 : i32
    %c0_i32_0 = arith.constant 0 : i32
    %c0_i32_1 = arith.constant 0 : i32
    return %c0_i32, %c0_i32_0 : i32, i32
  }
  func.func @transform_8(%arg0: i32) -> (i32, i32) {
    %c0_i32 = arith.constant 0 : i32
    %c0_i32_0 = arith.constant 0 : i32
    %c0_i32_1 = arith.constant 0 : i32
    return %c0_i32, %c0_i32_0 : i32, i32
  }
  func.func @transform_9(%arg0: i32) -> (i32, i32) {
    %c0_i32 = arith.constant 0 : i32
    %c0_i32_0 = arith.constant 0 : i32
    %c0_i32_1 = arith.constant 0 : i32
    return %c0_i32, %c0_i32_0 : i32, i32
  }
  func.func @transform_10(%arg0: i32) -> (i32, i32) {
    %c0_i32 = arith.constant 0 : i32
    %c0_i32_0 = arith.constant 0 : i32
    %c0_i32_1 = arith.constant 0 : i32
    return %c0_i32, %c0_i32_0 : i32, i32
  }
  func.func @transform_11(%arg0: i32) -> (i32, i32) {
    %c0_i32 = arith.constant 0 : i32
    %c0_i32_0 = arith.constant 0 : i32
    %c0_i32_1 = arith.constant 0 : i32
    return %c0_i32, %c0_i32_0 : i32, i32
  }
  func.func @transform_12(%arg0: i32) -> (i32, i32) {
    %c0_i32 = arith.constant 0 : i32
    %c0_i32_0 = arith.constant 0 : i32
    return %arg0, %c0_i32 : i32, i32
  }
}

module attributes {stable_mosaic.version = 11 : i64} {
  func.func @_linear_kernel(%arg0: i32, %arg1: memref<20x32xf32, #tpu.memory_space<vmem>>, %arg2: memref<32x64xf32, #tpu.memory_space<vmem>>, %arg3: memref<1x64xf32, #tpu.memory_space<vmem>>, %arg4: memref<20x64xf32, #tpu.memory_space<vmem>>) attributes {dimension_semantics = [#tpu.dimension_semantics<parallel>], iteration_bounds = array<i64: 1>, scalar_prefetch = 0 : i64, scratch_operands = 0 : i64, tpu.core_type = #tpu.core_type<tc>, window_params = [{transform_indices = @transform_0, window_bounds = array<i64: 20, 32>}, {pipeline_mode = #tpu.pipeline_mode<synchronous>, transform_indices = @transform_1, window_bounds = array<i64: 32, 64>}, {pipeline_mode = #tpu.pipeline_mode<synchronous>, transform_indices = @transform_2, window_bounds = array<i64: 1, 64>}, {transform_indices = @transform_3, window_bounds = array<i64: 20, 64>}]} {
    %c0 = arith.constant 0 : index
    %c0_0 = arith.constant 0 : index
    %0 = vector.load %arg1[%c0, %c0_0] : memref<20x32xf32, #tpu.memory_space<vmem>>, vector<20x32xf32>
    %c0_1 = arith.constant 0 : index
    %c0_2 = arith.constant 0 : index
    %1 = vector.load %arg2[%c0_1, %c0_2] : memref<32x64xf32, #tpu.memory_space<vmem>>, vector<32x64xf32>
    %cst = arith.constant dense<0.000000e+00> : vector<20x64xf32>
    %2 = tpu.matmul %0, %1, %cst {dimension_numbers = #tpu.dot_dimension_numbers<[1], [0], [0], [1], [0, 0, 1, 1], [], []>} : vector<20x32xf32>, vector<32x64xf32>, vector<20x64xf32> -> vector<20x64xf32>
    %c0_3 = arith.constant 0 : index
    %c0_4 = arith.constant 0 : index
    %3 = vector.load %arg3[%c0_3, %c0_4] : memref<1x64xf32, #tpu.memory_space<vmem>>, vector<1x64xf32>
    %4 = vector.broadcast %3 : vector<1x64xf32> to vector<20x64xf32>
    %5 = arith.addf %2, %4 : vector<20x64xf32>
    %c0_5 = arith.constant 0 : index
    %c0_6 = arith.constant 0 : index
    %6 = vector.load %arg4[%c0_5, %c0_6] : memref<20x64xf32, #tpu.memory_space<vmem>>, vector<20x64xf32>
    tpu.vector_store %arg4[%c0_5, %c0_6], %5 {strides = array<i32>} : memref<20x64xf32, #tpu.memory_space<vmem>>, vector<20x64xf32>,
    return
  }
  func.func @transform_0(%arg0: i32) -> (i32, i32) {
    %c0_i32 = arith.constant 0 : i32
    %c0_i32_0 = arith.constant 0 : i32
    return %arg0, %c0_i32 : i32, i32
  }
  func.func @transform_1(%arg0: i32) -> (i32, i32) {
    %c0_i32 = arith.constant 0 : i32
    %c0_i32_0 = arith.constant 0 : i32
    %c0_i32_1 = arith.constant 0 : i32
    return %c0_i32, %c0_i32_0 : i32, i32
  }
  func.func @transform_2(%arg0: i32) -> (i32, i32) {
    %c0_i32 = arith.constant 0 : i32
    %c0_i32_0 = arith.constant 0 : i32
    %c0_i32_1 = arith.constant 0 : i32
    return %c0_i32, %c0_i32_0 : i32, i32
  }
  func.func @transform_3(%arg0: i32) -> (i32, i32) {
    %c0_i32 = arith.constant 0 : i32
    %c0_i32_0 = arith.constant 0 : i32
    return %arg0, %c0_i32 : i32, i32
  }
}

module attributes {stable_mosaic.version = 11 : i64} {
  func.func @_attn_kernel_ctx(%arg0: i32, %arg1: memref<1x4x8x8xf32, #tpu.memory_space<vmem>>, %arg2: memref<1x4x10x8xf32, #tpu.memory_space<vmem>>, %arg3: memref<1x4x10x8xf32, #tpu.memory_space<vmem>>, %arg4: memref<1x1x10xf32, #tpu.memory_space<vmem>>, %arg5: memref<1x4x8x8xf32, #tpu.memory_space<vmem>>) attributes {dimension_semantics = [#tpu.dimension_semantics<parallel>], iteration_bounds = array<i64: 2>, scalar_prefetch = 0 : i64, scratch_operands = 0 : i64, tpu.core_type = #tpu.core_type<tc>, window_params = [{transform_indices = @transform_0, window_bounds = array<i64: 1, 4, 8, 8>}, {transform_indices = @transform_1, window_bounds = array<i64: 1, 4, 10, 8>}, {transform_indices = @transform_2, window_bounds = array<i64: 1, 4, 10, 8>}, {transform_indices = @transform_3, window_bounds = array<i64: 1, 1, 10>}, {transform_indices = @transform_4, window_bounds = array<i64: 1, 4, 8, 8>}]} {
    %c0 = arith.constant 0 : index
    %c0_0 = arith.constant 0 : index
    %c0_1 = arith.constant 0 : index
    %c0_2 = arith.constant 0 : index
    %0 = vector.load %arg1[%c0, %c0_0, %c0_1, %c0_2] : memref<1x4x8x8xf32, #tpu.memory_space<vmem>>, vector<1x4x8x8xf32>
    %1 = vector.shape_cast %0 : vector<1x4x8x8xf32> to vector<4x8x8xf32>
    %c0_3 = arith.constant 0 : index
    %c0_4 = arith.constant 0 : index
    %c0_5 = arith.constant 0 : index
    %c0_6 = arith.constant 0 : index
    %2 = vector.load %arg2[%c0_3, %c0_4, %c0_5, %c0_6] : memref<1x4x10x8xf32, #tpu.memory_space<vmem>>, vector<1x4x10x8xf32>
    %3 = vector.shape_cast %2 : vector<1x4x10x8xf32> to vector<4x10x8xf32>
    %c0_7 = arith.constant 0 : index
    %c0_8 = arith.constant 0 : index
    %c0_9 = arith.constant 0 : index
    %c0_10 = arith.constant 0 : index
    %4 = vector.load %arg3[%c0_7, %c0_8, %c0_9, %c0_10] : memref<1x4x10x8xf32, #tpu.memory_space<vmem>>, vector<1x4x10x8xf32>
    %5 = vector.shape_cast %4 : vector<1x4x10x8xf32> to vector<4x10x8xf32>
    %c0_11 = arith.constant 0 : index
    %c0_12 = arith.constant 0 : index
    %c0_13 = arith.constant 0 : index
    %6 = vector.load %arg4[%c0_11, %c0_12, %c0_13] : memref<1x1x10xf32, #tpu.memory_space<vmem>>, vector<1x1x10xf32>
    %7 = vector.shape_cast %6 : vector<1x1x10xf32> to vector<1x10xf32>
    "tpu.trace_start"() <{level = 10 : i32, message = "hqd,hkd->hqk"}> : () -> ()
    %cst = arith.constant dense<0.000000e+00> : vector<4x8x10xf32>
    %8 = tpu.matmul %1, %3, %cst {dimension_numbers = #tpu.dot_dimension_numbers<[2], [2], [1], [1], [0, 0, 0, 1, 1, 1], [0], [0]>} : vector<4x8x8xf32>, vector<4x10x8xf32>, vector<4x8x10xf32> -> vector<4x8x10xf32>
    "tpu.trace_stop"() : () -> ()
    %cst_14 = arith.constant 0.353553385 : f32
    %9 = vector.broadcast %cst_14 : f32 to vector<4x8x10xf32>
    %10 = arith.mulf %8, %9 : vector<4x8x10xf32>
    %11 = vector.shape_cast %7 : vector<1x10xf32> to vector<1x1x10xf32>
    %12 = vector.broadcast %11 : vector<1x1x10xf32> to vector<4x8x10xf32>
    %13 = arith.addf %10, %12 : vector<4x8x10xf32>
    %cst_15 = arith.constant dense<0xFF800000> : vector<4x8xf32>
    %14 = vector.multi_reduction <maximumf>, %13, %cst_15 [2] : vector<4x8x10xf32> to vector<4x8xf32>
    %15 = vector.shape_cast %14 : vector<4x8xf32> to vector<4x8x1xf32>
    %16 = vector.broadcast %15 : vector<4x8x1xf32> to vector<4x8x10xf32>
    %17 = arith.subf %13, %16 : vector<4x8x10xf32>
    %18 = math.exp %17 : vector<4x8x10xf32>
    %cst_16 = arith.constant dense<0.000000e+00> : vector<4x8xf32>
    %19 = vector.multi_reduction <add>, %18, %cst_16 [2] : vector<4x8x10xf32> to vector<4x8xf32>
    %20 = vector.shape_cast %19 : vector<4x8xf32> to vector<4x8x1xf32>
    %21 = tpu.reciprocal %20 {approx = true} : vector<4x8x1xf32> -> vector<4x8x1xf32>
    %22 = vector.broadcast %21 : vector<4x8x1xf32> to vector<4x8x10xf32>
    %23 = arith.mulf %18, %22 : vector<4x8x10xf32>
    "tpu.trace_start"() <{level = 10 : i32, message = "hqk,hkd->hqd"}> : () -> ()
    %cst_17 = arith.constant dense<0.000000e+00> : vector<4x8x8xf32>
    %24 = tpu.matmul %23, %5, %cst_17 {dimension_numbers = #tpu.dot_dimension_numbers<[2], [1], [1], [2], [0, 0, 0, 1, 1, 2], [0], [0]>} : vector<4x8x10xf32>, vector<4x10x8xf32>, vector<4x8x8xf32> -> vector<4x8x8xf32>
    "tpu.trace_stop"() : () -> ()
    %c0_18 = arith.constant 0 : index
    %c0_19 = arith.constant 0 : index
    %c0_20 = arith.constant 0 : index
    %c0_21 = arith.constant 0 : index
    %25 = vector.load %arg5[%c0_18, %c0_19, %c0_20, %c0_21] : memref<1x4x8x8xf32, #tpu.memory_space<vmem>>, vector<1x4x8x8xf32>
    %26 = vector.shape_cast %25 : vector<1x4x8x8xf32> to vector<4x8x8xf32>
    %27 = vector.shape_cast %24 : vector<4x8x8xf32> to vector<1x4x8x8xf32>
    tpu.vector_store %arg5[%c0_18, %c0_19, %c0_20, %c0_21], %27 {strides = array<i32>} : memref<1x4x8x8xf32, #tpu.memory_space<vmem>>, vector<1x4x8x8xf32>,
    return
  }
  func.func @transform_0(%arg0: i32) -> (i32, i32, i32, i32) {
    %c0_i32 = arith.constant 0 : i32
    %c0_i32_0 = arith.constant 0 : i32
    %c0_i32_1 = arith.constant 0 : i32
    %c0_i32_2 = arith.constant 0 : i32
    return %arg0, %c0_i32, %c0_i32_0, %c0_i32_1 : i32, i32, i32, i32
  }
  func.func @transform_1(%arg0: i32) -> (i32, i32, i32, i32) {
    %c0_i32 = arith.constant 0 : i32
    %c0_i32_0 = arith.constant 0 : i32
    %c0_i32_1 = arith.constant 0 : i32
    %c0_i32_2 = arith.constant 0 : i32
    return %arg0, %c0_i32, %c0_i32_0, %c0_i32_1 : i32, i32, i32, i32
  }
  func.func @transform_2(%arg0: i32) -> (i32, i32, i32, i32) {
    %c0_i32 = arith.constant 0 : i32
    %c0_i32_0 = arith.constant 0 : i32
    %c0_i32_1 = arith.constant 0 : i32
    %c0_i32_2 = arith.constant 0 : i32
    return %arg0, %c0_i32, %c0_i32_0, %c0_i32_1 : i32, i32, i32, i32
  }
  func.func @transform_3(%arg0: i32) -> (i32, i32, i32) {
    %c0_i32 = arith.constant 0 : i32
    %c0_i32_0 = arith.constant 0 : i32
    %c0_i32_1 = arith.constant 0 : i32
    return %arg0, %c0_i32, %c0_i32_0 : i32, i32, i32
  }
  func.func @transform_4(%arg0: i32) -> (i32, i32, i32, i32) {
    %c0_i32 = arith.constant 0 : i32
    %c0_i32_0 = arith.constant 0 : i32
    %c0_i32_1 = arith.constant 0 : i32
    %c0_i32_2 = arith.constant 0 : i32
    return %arg0, %c0_i32, %c0_i32_0, %c0_i32_1 : i32, i32, i32, i32
  }
}

module attributes {stable_mosaic.version = 11 : i64} {
  func.func @_attn_kernel_ctx_meanprobs(%arg0: i32, %arg1: memref<1x4x8x8xf32, #tpu.memory_space<vmem>>, %arg2: memref<1x4x10x8xf32, #tpu.memory_space<vmem>>, %arg3: memref<1x4x10x8xf32, #tpu.memory_space<vmem>>, %arg4: memref<1x1x10xf32, #tpu.memory_space<vmem>>, %arg5: memref<1x4x8x8xf32, #tpu.memory_space<vmem>>, %arg6: memref<1x1x8x10xf32, #tpu.memory_space<vmem>>) attributes {dimension_semantics = [#tpu.dimension_semantics<parallel>], iteration_bounds = array<i64: 2>, scalar_prefetch = 0 : i64, scratch_operands = 0 : i64, tpu.core_type = #tpu.core_type<tc>, window_params = [{transform_indices = @transform_0, window_bounds = array<i64: 1, 4, 8, 8>}, {transform_indices = @transform_1, window_bounds = array<i64: 1, 4, 10, 8>}, {transform_indices = @transform_2, window_bounds = array<i64: 1, 4, 10, 8>}, {transform_indices = @transform_3, window_bounds = array<i64: 1, 1, 10>}, {transform_indices = @transform_4, window_bounds = array<i64: 1, 4, 8, 8>}, {transform_indices = @transform_5, window_bounds = array<i64: 1, 1, 8, 10>}]} {
    %c0 = arith.constant 0 : index
    %c0_0 = arith.constant 0 : index
    %c0_1 = arith.constant 0 : index
    %c0_2 = arith.constant 0 : index
    %0 = vector.load %arg1[%c0, %c0_0, %c0_1, %c0_2] : memref<1x4x8x8xf32, #tpu.memory_space<vmem>>, vector<1x4x8x8xf32>
    %1 = vector.shape_cast %0 : vector<1x4x8x8xf32> to vector<4x8x8xf32>
    %c0_3 = arith.constant 0 : index
    %c0_4 = arith.constant 0 : index
    %c0_5 = arith.constant 0 : index
    %c0_6 = arith.constant 0 : index
    %2 = vector.load %arg2[%c0_3, %c0_4, %c0_5, %c0_6] : memref<1x4x10x8xf32, #tpu.memory_space<vmem>>, vector<1x4x10x8xf32>
    %3 = vector.shape_cast %2 : vector<1x4x10x8xf32> to vector<4x10x8xf32>
    %c0_7 = arith.constant 0 : index
    %c0_8 = arith.constant 0 : index
    %c0_9 = arith.constant 0 : index
    %c0_10 = arith.constant 0 : index
    %4 = vector.load %arg3[%c0_7, %c0_8, %c0_9, %c0_10] : memref<1x4x10x8xf32, #tpu.memory_space<vmem>>, vector<1x4x10x8xf32>
    %5 = vector.shape_cast %4 : vector<1x4x10x8xf32> to vector<4x10x8xf32>
    %c0_11 = arith.constant 0 : index
    %c0_12 = arith.constant 0 : index
    %c0_13 = arith.constant 0 : index
    %6 = vector.load %arg4[%c0_11, %c0_12, %c0_13] : memref<1x1x10xf32, #tpu.memory_space<vmem>>, vector<1x1x10xf32>
    %7 = vector.shape_cast %6 : vector<1x1x10xf32> to vector<1x10xf32>
    "tpu.trace_start"() <{level = 10 : i32, message = "hqd,hkd->hqk"}> : () -> ()
    %cst = arith.constant dense<0.000000e+00> : vector<4x8x10xf32>
    %8 = tpu.matmul %1, %3, %cst {dimension_numbers = #tpu.dot_dimension_numbers<[2], [2], [1], [1], [0, 0, 0, 1, 1, 1], [0], [0]>} : vector<4x8x8xf32>, vector<4x10x8xf32>, vector<4x8x10xf32> -> vector<4x8x10xf32>
    "tpu.trace_stop"() : () -> ()
    %cst_14 = arith.constant 0.353553385 : f32
    %9 = vector.broadcast %cst_14 : f32 to vector<4x8x10xf32>
    %10 = arith.mulf %8, %9 : vector<4x8x10xf32>
    %11 = vector.shape_cast %7 : vector<1x10xf32> to vector<1x1x10xf32>
    %12 = vector.broadcast %11 : vector<1x1x10xf32> to vector<4x8x10xf32>
    %13 = arith.addf %10, %12 : vector<4x8x10xf32>
    %cst_15 = arith.constant dense<0xFF800000> : vector<4x8xf32>
    %14 = vector.multi_reduction <maximumf>, %13, %cst_15 [2] : vector<4x8x10xf32> to vector<4x8xf32>
    %15 = vector.shape_cast %14 : vector<4x8xf32> to vector<4x8x1xf32>
    %16 = vector.broadcast %15 : vector<4x8x1xf32> to vector<4x8x10xf32>
    %17 = arith.subf %13, %16 : vector<4x8x10xf32>
    %18 = math.exp %17 : vector<4x8x10xf32>
    %cst_16 = arith.constant dense<0.000000e+00> : vector<4x8xf32>
    %19 = vector.multi_reduction <add>, %18, %cst_16 [2] : vector<4x8x10xf32> to vector<4x8xf32>
    %20 = vector.shape_cast %19 : vector<4x8xf32> to vector<4x8x1xf32>
    %21 = tpu.reciprocal %20 {approx = true} : vector<4x8x1xf32> -> vector<4x8x1xf32>
    %22 = vector.broadcast %21 : vector<4x8x1xf32> to vector<4x8x10xf32>
    %23 = arith.mulf %18, %22 : vector<4x8x10xf32>
    "tpu.trace_start"() <{level = 10 : i32, message = "hqk,hkd->hqd"}> : () -> ()
    %cst_17 = arith.constant dense<0.000000e+00> : vector<4x8x8xf32>
    %24 = tpu.matmul %23, %5, %cst_17 {dimension_numbers = #tpu.dot_dimension_numbers<[2], [1], [1], [2], [0, 0, 0, 1, 1, 2], [0], [0]>} : vector<4x8x10xf32>, vector<4x10x8xf32>, vector<4x8x8xf32> -> vector<4x8x8xf32>
    "tpu.trace_stop"() : () -> ()
    %c0_18 = arith.constant 0 : index
    %c0_19 = arith.constant 0 : index
    %c0_20 = arith.constant 0 : index
    %c0_21 = arith.constant 0 : index
    %25 = vector.load %arg5[%c0_18, %c0_19, %c0_20, %c0_21] : memref<1x4x8x8xf32, #tpu.memory_space<vmem>>, vector<1x4x8x8xf32>
    %26 = vector.shape_cast %25 : vector<1x4x8x8xf32> to vector<4x8x8xf32>
    %27 = vector.shape_cast %24 : vector<4x8x8xf32> to vector<1x4x8x8xf32>
    tpu.vector_store %arg5[%c0_18, %c0_19, %c0_20, %c0_21], %27 {strides = array<i32>} : memref<1x4x8x8xf32, #tpu.memory_space<vmem>>, vector<1x4x8x8xf32>,
    %cst_22 = arith.constant dense<0.000000e+00> : vector<8x10xf32>
    %28 = vector.multi_reduction <add>, %23, %cst_22 [0] : vector<4x8x10xf32> to vector<8x10xf32>
    %29 = vector.shape_cast %28 : vector<8x10xf32> to vector<1x8x10xf32>
    %cst_23 = arith.constant 4.000000e+00 : f32
    %30 = vector.broadcast %cst_23 : f32 to vector<1x8x10xf32>
    %31 = arith.divf %29, %30 : vector<1x8x10xf32>
    %c0_24 = arith.constant 0 : index
    %c0_25 = arith.constant 0 : index
    %c0_26 = arith.constant 0 : index
    %c0_27 = arith.constant 0 : index
    %32 = vector.load %arg6[%c0_24, %c0_25, %c0_26, %c0_27] : memref<1x1x8x10xf32, #tpu.memory_space<vmem>>, vector<1x1x8x10xf32>
    %33 = vector.shape_cast %32 : vector<1x1x8x10xf32> to vector<1x8x10xf32>
    %34 = vector.shape_cast %31 : vector<1x8x10xf32> to vector<1x1x8x10xf32>
    tpu.vector_store %arg6[%c0_24, %c0_25, %c0_26, %c0_27], %34 {strides = array<i32>} : memref<1x1x8x10xf32, #tpu.memory_space<vmem>>, vector<1x1x8x10xf32>,
    return
  }
  func.func @transform_0(%arg0: i32) -> (i32, i32, i32, i32) {
    %c0_i32 = arith.constant 0 : i32
    %c0_i32_0 = arith.constant 0 : i32
    %c0_i32_1 = arith.constant 0 : i32
    %c0_i32_2 = arith.constant 0 : i32
    return %arg0, %c0_i32, %c0_i32_0, %c0_i32_1 : i32, i32, i32, i32
  }
  func.func @transform_1(%arg0: i32) -> (i32, i32, i32, i32) {
    %c0_i32 = arith.constant 0 : i32
    %c0_i32_0 = arith.constant 0 : i32
    %c0_i32_1 = arith.constant 0 : i32
    %c0_i32_2 = arith.constant 0 : i32
    return %arg0, %c0_i32, %c0_i32_0, %c0_i32_1 : i32, i32, i32, i32
  }
  func.func @transform_2(%arg0: i32) -> (i32, i32, i32, i32) {
    %c0_i32 = arith.constant 0 : i32
    %c0_i32_0 = arith.constant 0 : i32
    %c0_i32_1 = arith.constant 0 : i32
    %c0_i32_2 = arith.constant 0 : i32
    return %arg0, %c0_i32, %c0_i32_0, %c0_i32_1 : i32, i32, i32, i32
  }
  func.func @transform_3(%arg0: i32) -> (i32, i32, i32) {
    %c0_i32 = arith.constant 0 : i32
    %c0_i32_0 = arith.constant 0 : i32
    %c0_i32_1 = arith.constant 0 : i32
    return %arg0, %c0_i32, %c0_i32_0 : i32, i32, i32
  }
  func.func @transform_4(%arg0: i32) -> (i32, i32, i32, i32) {
    %c0_i32 = arith.constant 0 : i32
    %c0_i32_0 = arith.constant 0 : i32
    %c0_i32_1 = arith.constant 0 : i32
    %c0_i32_2 = arith.constant 0 : i32
    return %arg0, %c0_i32, %c0_i32_0, %c0_i32_1 : i32, i32, i32, i32
  }
  func.func @transform_5(%arg0: i32) -> (i32, i32, i32, i32) {
    %c0_i32 = arith.constant 0 : i32
    %c0_i32_0 = arith.constant 0 : i32
    %c0_i32_1 = arith.constant 0 : i32
    %c0_i32_2 = arith.constant 0 : i32
    return %arg0, %c0_i32, %c0_i32_0, %c0_i32_1 : i32, i32, i32, i32
  }
}

module attributes {stable_mosaic.version = 11 : i64} {
  func.func @_head_mlp_kernel(%arg0: i32, %arg1: memref<2x18xf32, #tpu.memory_space<vmem>>, %arg2: memref<18x256xf32, #tpu.memory_space<vmem>>, %arg3: memref<1x256xf32, #tpu.memory_space<vmem>>, %arg4: memref<256x64xf32, #tpu.memory_space<vmem>>, %arg5: memref<1x64xf32, #tpu.memory_space<vmem>>, %arg6: memref<64x32xf32, #tpu.memory_space<vmem>>, %arg7: memref<1x32xf32, #tpu.memory_space<vmem>>, %arg8: memref<32x1xf32, #tpu.memory_space<vmem>>, %arg9: memref<1x1xf32, #tpu.memory_space<vmem>>, %arg10: memref<2x1xf32, #tpu.memory_space<vmem>>) attributes {dimension_semantics = [#tpu.dimension_semantics<arbitrary>], iteration_bounds = array<i64: 1>, scalar_prefetch = 0 : i64, scratch_operands = 0 : i64, tpu.core_type = #tpu.core_type<tc>, window_params = [{pipeline_mode = #tpu.pipeline_mode<synchronous>, transform_indices = @transform_0, window_bounds = array<i64: 2, 18>}, {pipeline_mode = #tpu.pipeline_mode<synchronous>, transform_indices = @transform_1, window_bounds = array<i64: 18, 256>}, {pipeline_mode = #tpu.pipeline_mode<synchronous>, transform_indices = @transform_2, window_bounds = array<i64: 1, 256>}, {pipeline_mode = #tpu.pipeline_mode<synchronous>, transform_indices = @transform_3, window_bounds = array<i64: 256, 64>}, {pipeline_mode = #tpu.pipeline_mode<synchronous>, transform_indices = @transform_4, window_bounds = array<i64: 1, 64>}, {pipeline_mode = #tpu.pipeline_mode<synchronous>, transform_indices = @transform_5, window_bounds = array<i64: 64, 32>}, {pipeline_mode = #tpu.pipeline_mode<synchronous>, transform_indices = @transform_6, window_bounds = array<i64: 1, 32>}, {pipeline_mode = #tpu.pipeline_mode<synchronous>, transform_indices = @transform_7, window_bounds = array<i64: 32, 1>}, {pipeline_mode = #tpu.pipeline_mode<synchronous>, transform_indices = @transform_8, window_bounds = array<i64: 1, 1>}, {pipeline_mode = #tpu.pipeline_mode<synchronous>, transform_indices = @transform_9, window_bounds = array<i64: 2, 1>}]} {
    %c0 = arith.constant 0 : index
    %c0_0 = arith.constant 0 : index
    %0 = vector.load %arg1[%c0, %c0_0] : memref<2x18xf32, #tpu.memory_space<vmem>>, vector<2x18xf32>
    %c0_1 = arith.constant 0 : index
    %c0_2 = arith.constant 0 : index
    %1 = vector.load %arg2[%c0_1, %c0_2] : memref<18x256xf32, #tpu.memory_space<vmem>>, vector<18x256xf32>
    %cst = arith.constant dense<0.000000e+00> : vector<2x256xf32>
    %2 = tpu.matmul %0, %1, %cst {dimension_numbers = #tpu.dot_dimension_numbers<[1], [0], [0], [1], [0, 0, 1, 1], [], []>} : vector<2x18xf32>, vector<18x256xf32>, vector<2x256xf32> -> vector<2x256xf32>
    %c0_3 = arith.constant 0 : index
    %c0_4 = arith.constant 0 : index
    %3 = vector.load %arg3[%c0_3, %c0_4] : memref<1x256xf32, #tpu.memory_space<vmem>>, vector<1x256xf32>
    %4 = vector.broadcast %3 : vector<1x256xf32> to vector<2x256xf32>
    %5 = arith.addf %2, %4 : vector<2x256xf32>
    %cst_5 = arith.constant 0.000000e+00 : f32
    %6 = vector.broadcast %cst_5 : f32 to vector<2x256xf32>
    %7 = arith.maximumf %5, %6 : vector<2x256xf32>
    %c0_6 = arith.constant 0 : index
    %c0_7 = arith.constant 0 : index
    %8 = vector.load %arg4[%c0_6, %c0_7] : memref<256x64xf32, #tpu.memory_space<vmem>>, vector<256x64xf32>
    %cst_8 = arith.constant dense<0.000000e+00> : vector<2x64xf32>
    %9 = tpu.matmul %7, %8, %cst_8 {dimension_numbers = #tpu.dot_dimension_numbers<[1], [0], [0], [1], [0, 0, 1, 1], [], []>} : vector<2x256xf32>, vector<256x64xf32>, vector<2x64xf32> -> vector<2x64xf32>
    %c0_9 = arith.constant 0 : index
    %c0_10 = arith.constant 0 : index
    %10 = vector.load %arg5[%c0_9, %c0_10] : memref<1x64xf32, #tpu.memory_space<vmem>>, vector<1x64xf32>
    %11 = vector.broadcast %10 : vector<1x64xf32> to vector<2x64xf32>
    %12 = arith.addf %9, %11 : vector<2x64xf32>
    %cst_11 = arith.constant 0.000000e+00 : f32
    %13 = vector.broadcast %cst_11 : f32 to vector<2x64xf32>
    %14 = arith.maximumf %12, %13 : vector<2x64xf32>
    %c0_12 = arith.constant 0 : index
    %c0_13 = arith.constant 0 : index
    %15 = vector.load %arg6[%c0_12, %c0_13] : memref<64x32xf32, #tpu.memory_space<vmem>>, vector<64x32xf32>
    %cst_14 = arith.constant dense<0.000000e+00> : vector<2x32xf32>
    %16 = tpu.matmul %14, %15, %cst_14 {dimension_numbers = #tpu.dot_dimension_numbers<[1], [0], [0], [1], [0, 0, 1, 1], [], []>} : vector<2x64xf32>, vector<64x32xf32>, vector<2x32xf32> -> vector<2x32xf32>
    %c0_15 = arith.constant 0 : index
    %c0_16 = arith.constant 0 : index
    %17 = vector.load %arg7[%c0_15, %c0_16] : memref<1x32xf32, #tpu.memory_space<vmem>>, vector<1x32xf32>
    %18 = vector.broadcast %17 : vector<1x32xf32> to vector<2x32xf32>
    %19 = arith.addf %16, %18 : vector<2x32xf32>
    %cst_17 = arith.constant 0.000000e+00 : f32
    %20 = vector.broadcast %cst_17 : f32 to vector<2x32xf32>
    %21 = arith.maximumf %19, %20 : vector<2x32xf32>
    %c0_18 = arith.constant 0 : index
    %c0_19 = arith.constant 0 : index
    %22 = vector.load %arg8[%c0_18, %c0_19] : memref<32x1xf32, #tpu.memory_space<vmem>>, vector<32x1xf32>
    %cst_20 = arith.constant dense<0.000000e+00> : vector<2x1xf32>
    %23 = tpu.matmul %21, %22, %cst_20 {dimension_numbers = #tpu.dot_dimension_numbers<[1], [0], [0], [1], [0, 0, 1, 1], [], []>} : vector<2x32xf32>, vector<32x1xf32>, vector<2x1xf32> -> vector<2x1xf32>
    %c0_21 = arith.constant 0 : index
    %c0_22 = arith.constant 0 : index
    %24 = vector.load %arg9[%c0_21, %c0_22] : memref<1x1xf32, #tpu.memory_space<vmem>>, vector<1x1xf32>
    %25 = vector.broadcast %24 : vector<1x1xf32> to vector<2x1xf32>
    %26 = arith.addf %23, %25 : vector<2x1xf32>
    %c0_23 = arith.constant 0 : index
    %c0_24 = arith.constant 0 : index
    %27 = vector.load %arg10[%c0_23, %c0_24] : memref<2x1xf32, #tpu.memory_space<vmem>>, vector<2x1xf32>
    tpu.vector_store %arg10[%c0_23, %c0_24], %26 {strides = array<i32>} : memref<2x1xf32, #tpu.memory_space<vmem>>, vector<2x1xf32>,
    return
  }
  func.func @transform_0(%arg0: i32) -> (i32, i32) {
    %c0_i32 = arith.constant 0 : i32
    %c0_i32_0 = arith.constant 0 : i32
    %c0_i32_1 = arith.constant 0 : i32
    return %c0_i32, %c0_i32_0 : i32, i32
  }
  func.func @transform_1(%arg0: i32) -> (i32, i32) {
    %c0_i32 = arith.constant 0 : i32
    %c0_i32_0 = arith.constant 0 : i32
    %c0_i32_1 = arith.constant 0 : i32
    return %c0_i32, %c0_i32_0 : i32, i32
  }
  func.func @transform_2(%arg0: i32) -> (i32, i32) {
    %c0_i32 = arith.constant 0 : i32
    %c0_i32_0 = arith.constant 0 : i32
    %c0_i32_1 = arith.constant 0 : i32
    return %c0_i32, %c0_i32_0 : i32, i32
  }
  func.func @transform_3(%arg0: i32) -> (i32, i32) {
    %c0_i32 = arith.constant 0 : i32
    %c0_i32_0 = arith.constant 0 : i32
    %c0_i32_1 = arith.constant 0 : i32
    return %c0_i32, %c0_i32_0 : i32, i32
  }
  func.func @transform_4(%arg0: i32) -> (i32, i32) {
    %c0_i32 = arith.constant 0 : i32
    %c0_i32_0 = arith.constant 0 : i32
    %c0_i32_1 = arith.constant 0 : i32
    return %c0_i32, %c0_i32_0 : i32, i32
  }
  func.func @transform_5(%arg0: i32) -> (i32, i32) {
    %c0_i32 = arith.constant 0 : i32
    %c0_i32_0 = arith.constant 0 : i32
    %c0_i32_1 = arith.constant 0 : i32
    return %c0_i32, %c0_i32_0 : i32, i32
  }
  func.func @transform_6(%arg0: i32) -> (i32, i32) {
    %c0_i32 = arith.constant 0 : i32
    %c0_i32_0 = arith.constant 0 : i32
    %c0_i32_1 = arith.constant 0 : i32
    return %c0_i32, %c0_i32_0 : i32, i32
  }
  func.func @transform_7(%arg0: i32) -> (i32, i32) {
    %c0_i32 = arith.constant 0 : i32
    %c0_i32_0 = arith.constant 0 : i32
    %c0_i32_1 = arith.constant 0 : i32
    return %c0_i32, %c0_i32_0 : i32, i32
  }
  func.func @transform_8(%arg0: i32) -> (i32, i32) {
    %c0_i32 = arith.constant 0 : i32
    %c0_i32_0 = arith.constant 0 : i32
    %c0_i32_1 = arith.constant 0 : i32
    return %c0_i32, %c0_i32_0 : i32, i32
  }
  func.func @transform_9(%arg0: i32) -> (i32, i32) {
    %c0_i32 = arith.constant 0 : i32
    %c0_i32_0 = arith.constant 0 : i32
    %c0_i32_1 = arith.constant 0 : i32
    return %c0_i32, %c0_i32_0 : i32, i32
  }
}

</mosaic_0001>

<bundles_post_ra>
// kernel: predictor_forward.37
= control target key start
LH: loop header
LB: loop body
LE: loop exit
PB: predicated region body
PF: predicated region fallthrough
CT: control target
= control target key end

     0   :  { %vm27_vm0 = vcmask 261120   ;;  %vm109_vm1 = vcmask 785408   ;;  %s191_s1 = inlined_call_operand.vmem [shape: f32[32,96], index: 1, kind: input, shape index: {}]   ;;  %s192_s0 = inlined_call_operand.vmem [shape: f32[16,32], index: 0, kind: input, shape index: {}]   ;;  %s193_s2 = inlined_call_operand.vmem [shape: f32[1,96], index: 2, kind: input, shape index: {}]   ;;  %s194_s3 = inlined_call_operand.vmem [shape: f32[16,96], index: 3, kind: output, shape index: {}]  }
   0x1   :  { %v16_v0 = vld [vmem:[%s191_s1] sm:$0xff]  ;;  %v17_v1 = vld [vmem:[%s191_s1 + $0x8] sm:$0xff]  ;;  %v18_v2 = vld [vmem:[%s191_s1 + $0x10] sm:$0xff] }
   0x2   :  { %v136_v3 = vpack.c.bf16 %v17_v1, %v16_v0  ;;  %v19_v4 = vld [vmem:[%s191_s1 + $0x18] sm:$0xff]  ;;  %v14_v5 = vld [vmem:[%s192_s0] sm:$0xff]  ;;  %v15_v7 = vld [vmem:[%s192_s0 + $0x8] sm:$0xff] }
   0x3   :  { %v140_v6 = vpack.c.bf16 %v19_v4, %v18_v2  ;;  %133 = vmatprep.mubr.msk.f32.mxu0 %vm27_vm0, %v14_v5  ;;  %v116_v8 = vld [vmem:[%s193_s2] ss:$0 sm:$0xff] }
   0x4   :  { %137 = vmatprep.subr.bf16.mxu0 %v136_v3 }
   0x5   :  { %139 = vmatpush3.bf16.msra.mxu0 %v136_v3 }
   0x6   :  { %141 = vmatprep.subr.bf16.mxu0 %v140_v6 }
   0x9   :  { %143 = vmatpush3.bf16.msra.mxu0 %v140_v6 }
   0xc   :  { %134 = vmatmul.mubr.msk.f32.vlgmr.msra.gmra.mrb[0].mxu0 %vm27_vm0, %v15_v7 }
  0xdf   :  { %v135_v9 = vpop.f32.mrb[0].mxu0 }
  0xe0   :  { %v106_v10 = vadd.f32 %v135_v9, %v116_v8  ;;  %v100_v11 = vpop.f32.mrb[1].mxu0 }
  0xe1   :  { %v101_v12 = vadd.f32 %v116_v8, %v100_v11 }
  0xe2   :  { %111 = vst.msk [vmem:[%s194_s3 + $0x8] sm:$0xff] %vm109_vm1, %v106_v10 }
  0xe3   :  { %110 = vst.msk [vmem:[%s194_s3] sm:$0xff] %vm109_vm1, %v101_v12 }

// kernel: predictor_forward.36
= control target key start
LH: loop header
LB: loop body
LE: loop exit
PB: predicated region body
PF: predicated region fallthrough
CT: control target
= control target key end

     0   :  { %vm31_vm0 = vcmask 1045504   ;;  %vm24_vm1 = vcmask 48128   ;;  %vm110_vm2 = vcmask 261120   ;;  %s167_s1 = inlined_call_operand.vmem [shape: f32[6,32], index: 1, kind: input, shape index: {}]   ;;  %s168_s0 = inlined_call_operand.vmem [shape: f32[16,6], index: 0, kind: input, shape index: {}]   ;;  %s169_s2 = inlined_call_operand.vmem [shape: f32[1,32], index: 2, kind: input, shape index: {}]   ;;  %s170_s3 = inlined_call_operand.vmem [shape: f32[16,32], index: 3, kind: output, shape index: {}]  }
   0x1   :  { %v16_v0 = vld [vmem:[%s167_s1] sm:$0x3f]  ;;  %v15_v2 = vld [vmem:[%s168_s0 + $0x8] sm:$0xff] }
   0x2   :  { %v14_v1 = vld [vmem:[%s168_s0] sm:$0xff]  ;;  %124 = vmatprep.subr.msk.mxu0 %vm31_vm0, %v16_v0 }
   0x3   :  { %126 = vmatprep.mubr.msk.f32.mxu0 %vm24_vm1, %v14_v1  ;;  %125 = vmatpush3.msk.msra.mxu0 %vm31_vm0, %v16_v0  ;;  %v117_v3 = vld [vmem:[%s169_s2] ss:$0 sm:$0xff] }
   0x4   :  { %127 = vmatmul.mubr.msk.f32.vlgmr.msra.gmra.mrb[0].mxu0 %vm24_vm1, %v15_v2 }
  0xd7   :  { %v128_v4 = vpop.f32.mrb[0].mxu0 }
  0xd8   :  { %v107_v5 = vadd.f32 %v128_v4, %v117_v3  ;;  %v101_v6 = vpop.f32.mrb[1].mxu0 }
  0xd9   :  { %v102_v7 = vadd.f32 %v117_v3, %v101_v6 }
  0xda   :  { %112 = vst.msk [vmem:[%s170_s3 + $0x8] sm:$0xff] %vm110_vm2, %v107_v5 }
  0xdb   :  { %111 = vst.msk [vmem:[%s170_s3] sm:$0xff] %vm110_vm2, %v102_v7 }

// kernel: predictor_forward.43
= control target key start
LH: loop header
LB: loop body
LE: loop exit
PB: predicated region body
PF: predicated region fallthrough
CT: control target
= control target key end

     0   :  { %vm27_vm0 = vcmask 261120   ;;  %s194_s1 = inlined_call_operand.vmem [shape: f32[32,32], index: 1, kind: input, shape index: {}]   ;;  %s195_s0 = inlined_call_operand.vmem [shape: f32[16,32], index: 0, kind: input, shape index: {}]   ;;  %s196_s2 = inlined_call_operand.vmem [shape: f32[1,32], index: 2, kind: input, shape index: {}]   ;;  %s197_s3 = inlined_call_operand.vmem [shape: f32[16,32], index: 3, kind: output, shape index: {}]  }
   0x1   :  { %v16_v0 = vld [vmem:[%s194_s1] sm:$0xff]  ;;  %v17_v1 = vld [vmem:[%s194_s1 + $0x8] sm:$0xff]  ;;  %v18_v2 = vld [vmem:[%s194_s1 + $0x10] sm:$0xff] }
   0x2   :  { %v135_v3 = vpack.c.bf16 %v17_v1, %v16_v0  ;;  %v19_v4 = vld [vmem:[%s194_s1 + $0x18] sm:$0xff]  ;;  %v14_v5 = vld [vmem:[%s195_s0] sm:$0xff]  ;;  %v15_v7 = vld [vmem:[%s195_s0 + $0x8] sm:$0xff] }
   0x3   :  { %v139_v6 = vpack.c.bf16 %v19_v4, %v18_v2  ;;  %132 = vmatprep.mubr.msk.f32.mxu0 %vm27_vm0, %v14_v5  ;;  %v115_v8 = vld [vmem:[%s196_s2] ss:$0 sm:$0xff] }
   0x4   :  { %136 = vmatprep.subr.bf16.mxu0 %v135_v3 }
   0x5   :  { %138 = vmatpush3.bf16.msra.mxu0 %v135_v3 }
   0x6   :  { %140 = vmatprep.subr.bf16.mxu0 %v139_v6 }
   0x9   :  { %142 = vmatpush3.bf16.msra.mxu0 %v139_v6 }
   0xc   :  { %133 = vmatmul.mubr.msk.f32.vlgmr.msra.gmra.mrb[0].mxu0 %vm27_vm0, %v15_v7 }
  0xdf   :  { %v134_v9 = vpop.f32.mrb[0].mxu0 }
  0xe0   :  { %v106_v10 = vadd.f32 %v134_v9, %v115_v8  ;;  %v100_v11 = vpop.f32.mrb[1].mxu0 }
  0xe1   :  { %v101_v12 = vadd.f32 %v115_v8, %v100_v11 }
  0xe2   :  { %110 = vst.msk [vmem:[%s197_s3 + $0x8] sm:$0xff] %vm27_vm0, %v106_v10 }
  0xe3   :  { %109 = vst.msk [vmem:[%s197_s3] sm:$0xff] %vm27_vm0, %v101_v12 }

// kernel: predictor_forward.38
= control target key start
LH: loop header
LB: loop body
LE: loop exit
PB: predicated region body
PF: predicated region fallthrough
CT: control target
= control target key end

     0   :  { %s1161_s15 = smov 0   ;;  %s1245_s0 = inlined_call_operand.vmem [shape: f32[2,4,8,8], index: 0, kind: input, shape index: {}]   ;;  %s1246_s1 = inlined_call_operand.vmem [shape: f32[2,4,8,8], index: 1, kind: input, shape index: {}]   ;;  %s1247_s2 = inlined_call_operand.vmem [shape: f32[2,4,8,8], index: 2, kind: input, shape index: {}]   ;;  %s1248_s3 = inlined_call_operand.vmem [shape: f32[2,1,8], index: 3, kind: input, shape index: {}]   ;;  %s1249_s4 = inlined_call_operand.vmem [shape: f32[2,4,8,8], index: 4, kind: output, shape index: {}]  }
   0x1 LB: > { %s1012_s16 = sadd.s32 4294967295, %s1132_s15   ;;  %p1016_p0 = scmp.ge.s32.totalorder %s1132_s15, 1  ;;  %s1132_s15 = sphi %s1161_s15, %s14_s15  }
   0x2   : > { %p190_p1 = scmp.lt.s32.totalorder %s1132_s15, 3 }
   0x4   : > { %p191_p2 = pnand %p1016_p0, %p190_p1 }
   0x5   : > { %p229_p3 = scmp.lt.s32.totalorder (!%p191_p2), %s1012_s16, 1  ;;  %v1134_v0 = vmov (!%p191_p2), 0.0   ;;  %vm1135_vm0 = vmmov (!%p191_p2), 0   ;;  %vm265_vm1 = vcmask (!%p191_p2), 64512  }
   0x6   : > { %194 = sbr.rel (%p191_p2) target bundleno = 771 (0x303), region = 36  ;;  %1060 = vmatprep.subr.mxu0 (!%p191_p2), %v1134_v0  ;;  %1062 = vmatprep.mubr.msk.f32.mxu0 (!%p191_p2), %vm1135_vm0, %v1134_v0 }
   0x7   : > { %1065 = vmatprep.subr.mxu1 (!%p191_p2), %v1134_v0  ;;  %1067 = vmatprep.mubr.msk.f32.mxu1 (!%p191_p2), %vm1135_vm0, %v1134_v0 }
   0xd   : > { %s1251_s16 = smov (!%p229_p3, %s1012_s16), 1 }
   0xe   : > { %s1178_s17 = sshll.u32 %s1251_s16, 5  ;;  %s246_s26 = scalar_lea.vmem %s1248_s3, %s1251_s16 }
   0xf   : > { %s238_s20 = scalar_lea.vmem %s1246_s1, %s1178_s17  ;;  %s233_s23 = scalar_lea.vmem %s1245_s0, %s1178_s17  ;;  %v1033_v11 = vld [vmem:[%s246_s26] ss:$0 sm:$0xff] }
  0x10   : > { %v256_v1 = vld [vmem:[%s238_s20] sm:$0xff]  ;;  %v257_v2 = vld [vmem:[%s238_s20 + $0x8] sm:$0xff]  ;;  %v258_v5 = vld [vmem:[%s238_s20 + $0x10] sm:$0xff]  ;;  %s243_s29 = scalar_lea.vmem %s1247_s2, %s1178_s17  ;;  %s251_s6 = scalar_lea.vmem %s1249_s4, %s1178_s17 }
  0x11   : > { %1061 = vmatpush3.xpose.msk.msra.mxu0 %vm265_vm1, %v256_v1  ;;  %v252_v3 = vld [vmem:[%s233_s23] sm:$0xff]  ;;  %1066 = vmatpush3.xpose.msk.msra.mxu1 %vm265_vm1, %v257_v2  ;;  %v253_v4 = vld [vmem:[%s233_s23 + $0x8] sm:$0xff]  ;;  %v259_v6 = vld [vmem:[%s238_s20 + $0x18] sm:$0xff] }
  0x12   : > { %1070 = vmatprep.subr.mxu0 %v1134_v0  ;;  %1075 = vmatprep.subr.mxu1 %v1134_v0  ;;  %v254_v7 = vld [vmem:[%s233_s23 + $0x10] sm:$0xff]  ;;  %v255_v8 = vld [vmem:[%s233_s23 + $0x18] sm:$0xff]  ;;  %v260_v50 = vld [vmem:[%s243_s29] sm:$0xff] }
  0x13   : > { %v261_v51 = vld [vmem:[%s243_s29 + $0x8] sm:$0xff]  ;;  %v262_v58 = vld [vmem:[%s243_s29 + $0x10] sm:$0xff]  ;;  %v263_v62 = vld [vmem:[%s243_s29 + $0x18] sm:$0xff] }
  0x14   : > { %1063 = vmatmul.mubr.msk.f32.vlgmr.msra.gmra.mrb[0].mxu0 %vm265_vm1, %v252_v3  ;;  %1068 = vmatmul.mubr.msk.f32.vlgmr.msra.gmra.mrb[0].mxu1 %vm265_vm1, %v253_v4 }
  0x15   : > { %1071 = vmatpush3.xpose.msk.msra.mxu0 %vm265_vm1, %v258_v5  ;;  %1072 = vmatprep.mubr.msk.f32.mxu0 %vm1135_vm0, %v1134_v0 }
  0x16   : > { %1076 = vmatpush3.xpose.msk.msra.mxu1 %vm265_vm1, %v259_v6  ;;  %1077 = vmatprep.mubr.msk.f32.mxu1 %vm1135_vm0, %v1134_v0 }
  0x17   : > { %1080 = vmatprep.subr.mxu0 %v1134_v0  ;;  %1085 = vmatprep.subr.mxu1 %v1134_v0 }
  0x18   : > { %1073 = vmatmul.mubr.msk.f32.vlgmr.msra.gmra.mrb[2].mxu0 %vm265_vm1, %v254_v7 }
  0x19   : > { %1078 = vmatmul.mubr.msk.f32.vlgmr.msra.gmra.mrb[2].mxu1 %vm265_vm1, %v255_v8  ;;  %1082 = vmatprep.mubr.msk.f32.mxu0 %vm1135_vm0, %v1134_v0 }
  0x1a   : > { %1087 = vmatprep.mubr.msk.f32.mxu1 %vm1135_vm0, %v1134_v0  ;;  %1081 = vmatpush3.msra.mxu0 %v260_v50 }
  0x1b   : > { %1090 = vmatprep.subr.mxu0 %v1134_v0  ;;  %1086 = vmatpush3.msra.mxu1 %v261_v51 }
  0x1c   : > { %1095 = vmatprep.subr.mxu1 %v1134_v0 }
  0xe7   : > { %v338_v9 = vpop.f32.mrb[0].mxu0  ;;  %v414_v10 = vpop.f32.mrb[0].mxu1 }
  0xe8   : > { %v570_v12 = vmul.f32 0.35355338, %v338_v9  ;;  %v1064_v13 = vpop.f32.mrb[1].mxu0  ;;  %v571_v14 = vmul.f32 0.35355338, %v414_v10  ;;  %v1069_v15 = vpop.f32.mrb[1].mxu1 }
  0xea   : > { %v580_v16 = vadd.f32 %v1033_v11, %v570_v12  ;;  %v581_v17 = vadd.f32 %v1033_v11, %v571_v14 }
  0xeb   : > { %v490_v18 = vpop.f32.mrb[2].mxu0 }
  0xec   : > { %v572_v19 = vmul.f32 0.35355338, %v490_v18  ;;  %v1074_v20 = vpop.f32.mrb[3].mxu0  ;;  %v584_v21 = vsel %vm265_vm1, %v580_v16, -inf  ;;  %v566_v22 = vpop.f32.mrb[2].mxu1  ;;  %v587_v25 = vsel %vm265_vm1, %v581_v17, -inf }
  0xed   : > { %585 = vmax.xlane.f32.xlu0 %v584_v21  ;;  %v573_v23 = vmul.f32 0.35355338, %v566_v22  ;;  %v1079_v24 = vpop.f32.mrb[3].mxu1 }
  0xee   : > { %v582_v26 = vadd.f32 %v1033_v11, %v572_v19 }
  0xef   : > { %v583_v27 = vadd.f32 %v1033_v11, %v573_v23 }
  0xf0   : > { %v590_v28 = vsel %vm265_vm1, %v582_v26, -inf }
  0xf1   : > { %588 = vmax.xlane.f32.xlu0 %v587_v25  ;;  %591 = vmax.xlane.f32.xlu1 %v590_v28  ;;  %v593_v29 = vsel %vm265_vm1, %v583_v27, -inf }
  0xf5   : > { %594 = vmax.xlane.f32.xlu1 %v593_v29 }
 0x17a   : > { %v586_v30 = vpop.xlane.xlu0 %585 }
 0x17b   : > { %v596_v31 = vsub.f32 %v580_v16, %v586_v30 }
 0x17d   : > { %v600_v32 = vmul.f32 1.442695, %v596_v31 }
 0x17e   : > { %v589_v33 = vpop.xlane.xlu0 %588  ;;  %v592_v34 = vpop.xlane.xlu1 %591 }
 0x17f   : > { %1110 = vpow2.f32 %v600_v32  ;;  %v597_v35 = vsub.f32 %v581_v17, %v589_v33  ;;  %v598_v36 = vsub.f32 %v582_v26, %v592_v34 }
 0x181   : > { %v602_v37 = vmul.f32 1.442695, %v597_v35  ;;  %v604_v38 = vmul.f32 1.442695, %v598_v36 }
 0x182   : > { %v595_v39 = vpop.xlane.xlu1 %594 }
 0x183   : > { %1112 = vpow2.f32 %v602_v37  ;;  %v599_v40 = vsub.f32 %v583_v27, %v595_v39 }
 0x184   : > { %1114 = vpow2.f32 %v604_v38 }
 0x185   : > { %v606_v41 = vmul.f32 1.442695, %v599_v40 }
 0x187   : > { %1116 = vpow2.f32 %v606_v41 }
 0x189   : > { %v1111_v42 = vpop.eup %1110 }
 0x18a   : > { %v608_v43 = vsel %vm265_vm1, %v1111_v42, 0.0 }
 0x18b   : > { %609 = vadd.xlane.f32.xlu0 %v608_v43 }
 0x18d   : > { %v1113_v44 = vpop.eup %1112 }
 0x18e   : > { %v1115_v45 = vpop.eup %1114  ;;  %v611_v46 = vsel %vm265_vm1, %v1113_v44, 0.0 }
 0x18f   : > { %612 = vadd.xlane.f32.xlu1 %v611_v46  ;;  %v614_v47 = vsel %vm265_vm1, %v1115_v45, 0.0 }
 0x190   : > { %615 = vadd.xlane.f32.xlu0 %v614_v47 }
 0x191   : > { %v1117_v48 = vpop.eup %1116 }
 0x192   : > { %v617_v49 = vsel %vm265_vm1, %v1117_v48, 0.0 }
 0x193   : > { %618 = vadd.xlane.f32.xlu1 %v617_v49 }
 0x218   : > { %v610_v52 = vpop.xlane.xlu0 %609 }
 0x219   : > { %1118 = vrcp.f32 %v610_v52 }
 0x21c   : > { %v613_v53 = vpop.xlane.xlu1 %612 }
 0x21d   : > { %v616_v54 = vpop.xlane.xlu0 %615  ;;  %1120 = vrcp.f32 %v613_v53 }
 0x21e   : > { %1122 = vrcp.f32 %v616_v54 }
 0x220   : > { %v619_v55 = vpop.xlane.xlu1 %618 }
 0x221   : > { %1124 = vrcp.f32 %v619_v55 }
 0x223   : > { %v1119_v56 = vpop.eup %1118 }
 0x224   : > { %v624_v57 = vmul.f32 %v1119_v56, %v1111_v42 }
 0x226   : > { %1083 = vmatmul.mubr.msk.f32.vlgmr.msra.gmra.mrb[4].mxu0 %vm265_vm1, %v624_v57 }
 0x227   : > { %v1121_v59 = vpop.eup %1120  ;;  %1091 = vmatpush3.msra.mxu0 %v262_v58  ;;  %1092 = vmatprep.mubr.msk.f32.mxu0 %vm1135_vm0, %v1134_v0 }
 0x228   : > { %v1123_v60 = vpop.eup %1122  ;;  %v625_v61 = vmul.f32 %v1121_v59, %v1113_v44 }
 0x229   : > { %v626_v63 = vmul.f32 %v1123_v60, %v1115_v45 }
 0x22a   : > { %1088 = vmatmul.mubr.msk.f32.vlgmr.msra.gmra.mrb[4].mxu1 %vm265_vm1, %v625_v61 }
 0x22b   : > { %v1125_v1 = vpop.eup %1124  ;;  %1093 = vmatmul.mubr.msk.f32.vlgmr.msra.gmra.mrb[6].mxu0 %vm265_vm1, %v626_v63  ;;  %1096 = vmatpush3.msra.mxu1 %v263_v62 }
 0x22c   : > { %v627_v2 = vmul.f32 %v1125_v1, %v1117_v48  ;;  %1097 = vmatprep.mubr.msk.f32.mxu1 %vm1135_vm0, %v1134_v0 }
 0x22e   : > { %1098 = vmatmul.mubr.msk.f32.vlgmr.msra.gmra.mrb[6].mxu1 %vm265_vm1, %v627_v2 }
 0x2f9   : > { %v697_v3 = vpop.f32.mrb[4].mxu0 }
 0x2fa   : > { %920 = vst.msk [vmem:[%s251_s6] sm:$0xff] %vm265_vm1, %v697_v3  ;;  %v1084_v4 = vpop.f32.mrb[5].mxu0 }
 0x2fd   : > { %v770_v5 = vpop.f32.mrb[4].mxu1 }
 0x2fe   : > { %921 = vst.msk [vmem:[%s251_s6 + $0x8] sm:$0xff] %vm265_vm1, %v770_v5  ;;  %v843_v6 = vpop.f32.mrb[6].mxu0  ;;  %v1089_v7 = vpop.f32.mrb[5].mxu1 }
 0x2ff   : > { %922 = vst.msk [vmem:[%s251_s6 + $0x10] sm:$0xff] %vm265_vm1, %v843_v6  ;;  %v1094_v8 = vpop.f32.mrb[7].mxu0 }
 0x301   : > { %v916_v9 = vpop.f32.mrb[6].mxu1 }
 0x302   : > { %923 = vst.msk [vmem:[%s251_s6 + $0x18] sm:$0xff] %vm265_vm1, %v916_v9  ;;  %v1099_v0 = vpop.f32.mrb[7].mxu1 }
 0x303 PF: > { %s14_s15 = sadd.s32 1, %s1132_s15  }
 0x304   : > { %p11_p4 = scmp.ge.s32.totalorder %s14_s15, 4  }
 0x306   :  { %13 = sbr.rel (!%p11_p4) target bundleno = 1 (0x1), region = 75 }

// kernel: predictor_forward.41
= control target key start
LH: loop header
LB: loop body
LE: loop exit
PB: predicated region body
PF: predicated region fallthrough
CT: control target
= control target key end

     0   :  { %11 = vsyncpa [#allocation3], 0  ;;  %s1539_s0 = inlined_call_operand.vmem [shape: f32[2,4,8,8], index: 0, kind: input, shape index: {}]   ;;  %s1540_s1 = inlined_call_operand.vmem [shape: f32[2,4,8,8], index: 1, kind: input, shape index: {}]   ;;  %s1541_s2 = inlined_call_operand.vmem [shape: f32[2,4,8,8], index: 2, kind: input, shape index: {}]   ;;  %s1542_s3 = inlined_call_operand.vmem [shape: f32[2,1,8], index: 3, kind: input, shape index: {}]   ;;  %s1543_s4 = inlined_call_operand.vmem [shape: f32[2,4,8,8], index: 4, kind: output, shape index: {0}]   ;;  %s1544_s5 = inlined_call_operand.hbm [shape: f32[2,4,8,8], index: 5, kind: output, shape index: {1}]  }
   0x1   :  { %13 = vsyncpa [#allocation3 + $0x1], 0  ;;  %s1358_s18 = smov 0   ;;  %s1360_s19 = smov 0  }
   0x2   :  { %s1362_s20 = smov 0   ;;  %s1364_s21 = smov 0  }
   0x3 LB: > { %s1379_s22 = sadd.s32 4294967295, %s1321_s21   ;;  %s1108_s23 = sadd.s32 4294967294, %s1321_s21   ;;  %s1321_s21 = sphi %s1364_s21, %s1550_s21   ;;  %s1317_s20 = sphi %s1362_s20, %s1549_s20   ;;  %s1313_s19 = sphi %s1360_s19, %s1548_s19   ;;  %s1309_s18 = sphi %s1358_s18, %s1547_s18  }
   0x4   : > { %s1383_s24 = sadd.s32 1, %s1321_s21   ;;  %s156_s25 = sadd.s32 1, %s1317_s20 }
   0x5   : > { %s153_s26 = ssub.s32 %s1321_s21, %s1383_s24  ;;  %p166_p0 = scmp.ne.s32.totalorder %s1317_s20, %s1313_s19 }
   0x6   : > { %p154_p1 = scmp.eq.s32.totalorder %s153_s26, 0  ;;  %p167_p2 = scmp.eq.s32.totalorder %s1379_s22, 1 }
   0x7   : > { %p172_p3 = scmp.ne.s32.totalorder %s1313_s19, %s1309_s18  ;;  %p173_p4 = scmp.eq.s32.totalorder %s1108_s23, 1 }
   0x8   : > { %s1394_s27 = scalar_select %p154_p1, %s1317_s20, %s156_s25  }
   0x9   : > { %p1396_p5 = por %p167_p2, %p166_p0  ;;  %p1400_p6 = por %p173_p4, %p172_p3 }
   0xa   : > { %p1111_p7 = scmp.ge.s32.totalorder %s1321_s21, 1  ;;  %p221_p8 = scmp.lt.s32.totalorder %s1321_s21, 3 }
   0xc   : > { %p222_p9 = pnand %p1111_p7, %p221_p8 }
   0xd   : > { %p267_p10 = scmp.lt.s32.totalorder (!%p222_p9), %s1379_s22, 1  ;;  %v1323_v0 = vmov (!%p222_p9), 0.0   ;;  %vm1324_vm0 = vmmov (!%p222_p9), 0   ;;  %vm303_vm1 = vcmask (!%p222_p9), 64512   ;;  %s264_s25 = sand.u32 (!%p222_p9), 1, %s1313_s19  }
   0xe   : > { %225 = sbr.rel (%p222_p9) target bundleno = 780 (0x30c), region = 36  ;;  %1160 = vmatprep.subr.mxu0 (!%p222_p9), %v1323_v0  ;;  %1162 = vmatprep.mubr.msk.f32.mxu0 (!%p222_p9), %vm1324_vm0, %v1323_v0  ;;  %s1112_s26 = sshll.u32 (!%p222_p9), %s264_s25, 5 }
   0xf   : > { %1165 = vmatprep.subr.mxu1 (!%p222_p9), %v1323_v0  ;;  %1167 = vmatprep.mubr.msk.f32.mxu1 (!%p222_p9), %vm1324_vm0, %v1323_v0  ;;  %s1143_s7 = sshll.u32 (!%p222_p9), %s1379_s22, 9 }
  0x10   : > { %s1484_s11 = scalar_lea.hbm (!%p222_p9), %s1544_s5, %s1143_s7 }
  0x15   : > { %s1411_s30 = scalar_select %p267_p10, %s1379_s22, 1 }
  0x16   : > { %s1325_s22 = smov [#allocation2]  }
  0x17   : > { %s1417_s6 = sshll.u32 %s1411_s30, 5  ;;  %s284_s15 = scalar_lea.vmem %s1542_s3, %s1411_s30 }
  0x18   : > { %s276_s9 = scalar_lea.vmem %s1540_s1, %s1417_s6  ;;  %s271_s12 = scalar_lea.vmem %s1539_s0, %s1417_s6  ;;  %v1129_v11 = vld [vmem:[%s284_s15] ss:$0 sm:$0xff] }
  0x19   : > { %v294_v1 = vld [vmem:[%s276_s9] sm:$0xff]  ;;  %v295_v2 = vld [vmem:[%s276_s9 + $0x8] sm:$0xff]  ;;  %v296_v5 = vld [vmem:[%s276_s9 + $0x10] sm:$0xff]  ;;  %s281_s23 = scalar_lea.vmem %s1541_s2, %s1417_s6  ;;  %s266_s30 = scalar_lea.vmem [#allocation2], %s1112_s26 }
  0x1a   : > { %1161 = vmatpush3.xpose.msk.msra.mxu0 %vm303_vm1, %v294_v1  ;;  %v290_v3 = vld [vmem:[%s271_s12] sm:$0xff]  ;;  %1166 = vmatpush3.xpose.msk.msra.mxu1 %vm303_vm1, %v295_v2  ;;  %v291_v4 = vld [vmem:[%s271_s12 + $0x8] sm:$0xff]  ;;  %v297_v6 = vld [vmem:[%s276_s9 + $0x18] sm:$0xff]  ;;  %s988_s8 = sshll.u32 %s266_s30, 4  ;;  %s1263_s14 = sshll.u32 %s1325_s22, 4  ;;  %s1486_s8 = int_to_ptr.vmem [resolvable:$true] %s988_s8  ;;  %s1264_s14 = int_to_ptr.vmem [resolvable:$false] %s1263_s14 }
  0x1b   : > { %1170 = vmatprep.subr.mxu0 %v1323_v0  ;;  %1175 = vmatprep.subr.mxu1 %v1323_v0  ;;  %v292_v7 = vld [vmem:[%s271_s12 + $0x10] sm:$0xff]  ;;  %v293_v8 = vld [vmem:[%s271_s12 + $0x18] sm:$0xff]  ;;  %v298_v50 = vld [vmem:[%s281_s23] sm:$0xff]  ;;  %s1490_s12 = scalar_lea.sflag [#allocation3], %s264_s25  ;;  %s1259_s13 = scalar_lea.vmem %s1486_s8, 512 }
  0x1c   : > { %v299_v51 = vld [vmem:[%s281_s23 + $0x8] sm:$0xff]  ;;  %v300_v58 = vld [vmem:[%s281_s23 + $0x10] sm:$0xff]  ;;  %v301_v62 = vld [vmem:[%s281_s23 + $0x18] sm:$0xff]  ;;  %p1260_p11 = scmp.ne.s32.totalorder %s1486_s8, %s1259_s13  ;;  %s1265_s15 = scalar_lea.vmem %s1264_s14, 1024 }
  0x1d   : > { %1163 = vmatmul.mubr.msk.f32.vlgmr.msra.gmra.mrb[0].mxu0 %vm303_vm1, %v290_v3  ;;  %1168 = vmatmul.mubr.msk.f32.vlgmr.msra.gmra.mrb[0].mxu1 %vm303_vm1, %v291_v4  ;;  %p1266_p0 = scmp.lt.s32.totalorder %s1486_s8, %s1264_s14  ;;  %p1267_p1 = scmp.lt.s32.totalorder %s1265_s15, %s1259_s13 }
  0x1e   : > { %1171 = vmatpush3.xpose.msk.msra.mxu0 %vm303_vm1, %v296_v5  ;;  %1172 = vmatprep.mubr.msk.f32.mxu0 %vm1324_vm0, %v1323_v0  ;;  %p1261_p12 = pnand %p1260_p11, %p1396_p5 }
  0x1f   : > { %1176 = vmatpush3.xpose.msk.msra.mxu1 %vm303_vm1, %v297_v6  ;;  %1177 = vmatprep.mubr.msk.f32.mxu1 %vm1324_vm0, %v1323_v0  ;;  %p1268_p2 = por %p1267_p1, %p1266_p0 }
  0x20   : > { %1180 = vmatprep.subr.mxu0 %v1323_v0  ;;  %1185 = vmatprep.subr.mxu1 %v1323_v0  ;;  %p1262_p13 = pneg %p1261_p12 }
  0x21   : > { %1173 = vmatmul.mubr.msk.f32.vlgmr.msra.gmra.mrb[2].mxu0 %vm303_vm1, %v292_v7 }
  0x22   : > { %1178 = vmatmul.mubr.msk.f32.vlgmr.msra.gmra.mrb[2].mxu1 %vm303_vm1, %v293_v8  ;;  %1182 = vmatprep.mubr.msk.f32.mxu0 %vm1324_vm0, %v1323_v0  ;;  %p1269_p3 = pnand %p1268_p2, %p1262_p13 }
  0x23   : > { %1187 = vmatprep.mubr.msk.f32.mxu1 %vm1324_vm0, %v1323_v0  ;;  %1181 = vmatpush3.msra.mxu0 %v298_v50 }
  0x24   : > { %1190 = vmatprep.subr.mxu0 %v1323_v0  ;;  %1186 = vmatpush3.msra.mxu1 %v299_v51 }
  0x25   : > { %1195 = vmatprep.subr.mxu1 %v1323_v0 }
  0xf0   : > { %v376_v9 = vpop.f32.mrb[0].mxu0  ;;  %v452_v10 = vpop.f32.mrb[0].mxu1 }
  0xf1   : > { %v608_v12 = vmul.f32 0.35355338, %v376_v9  ;;  %v1164_v13 = vpop.f32.mrb[1].mxu0  ;;  %v609_v14 = vmul.f32 0.35355338, %v452_v10  ;;  %v1169_v15 = vpop.f32.mrb[1].mxu1 }
  0xf3   : > { %v618_v16 = vadd.f32 %v1129_v11, %v608_v12  ;;  %v619_v17 = vadd.f32 %v1129_v11, %v609_v14 }
  0xf4   : > { %v528_v18 = vpop.f32.mrb[2].mxu0 }
  0xf5   : > { %v610_v19 = vmul.f32 0.35355338, %v528_v18  ;;  %v1174_v20 = vpop.f32.mrb[3].mxu0  ;;  %v622_v21 = vsel %vm303_vm1, %v618_v16, -inf  ;;  %v604_v22 = vpop.f32.mrb[2].mxu1  ;;  %v625_v25 = vsel %vm303_vm1, %v619_v17, -inf }
  0xf6   : > { %623 = vmax.xlane.f32.xlu0 %v622_v21  ;;  %v611_v23 = vmul.f32 0.35355338, %v604_v22  ;;  %v1179_v24 = vpop.f32.mrb[3].mxu1 }
  0xf7   : > { %v620_v26 = vadd.f32 %v1129_v11, %v610_v19 }
  0xf8   : > { %v621_v27 = vadd.f32 %v1129_v11, %v611_v23 }
  0xf9   : > { %v628_v28 = vsel %vm303_vm1, %v620_v26, -inf }
  0xfa   : > { %626 = vmax.xlane.f32.xlu0 %v625_v25  ;;  %629 = vmax.xlane.f32.xlu1 %v628_v28  ;;  %v631_v29 = vsel %vm303_vm1, %v621_v27, -inf }
  0xfe   : > { %632 = vmax.xlane.f32.xlu1 %v631_v29 }
 0x183   : > { %v624_v30 = vpop.xlane.xlu0 %623 }
 0x184   : > { %v634_v31 = vsub.f32 %v618_v16, %v624_v30 }
 0x186   : > { %v638_v32 = vmul.f32 1.442695, %v634_v31 }
 0x187   : > { %v627_v33 = vpop.xlane.xlu0 %626  ;;  %v630_v34 = vpop.xlane.xlu1 %629 }
 0x188   : > { %1243 = vpow2.f32 %v638_v32  ;;  %v635_v35 = vsub.f32 %v619_v17, %v627_v33  ;;  %v636_v36 = vsub.f32 %v620_v26, %v630_v34 }
 0x18a   : > { %v640_v37 = vmul.f32 1.442695, %v635_v35  ;;  %v642_v38 = vmul.f32 1.442695, %v636_v36 }
 0x18b   : > { %v633_v39 = vpop.xlane.xlu1 %632 }
 0x18c   : > { %1245 = vpow2.f32 %v640_v37  ;;  %v637_v40 = vsub.f32 %v621_v27, %v633_v39 }
 0x18d   : > { %1247 = vpow2.f32 %v642_v38 }
 0x18e   : > { %v644_v41 = vmul.f32 1.442695, %v637_v40 }
 0x190   : > { %1249 = vpow2.f32 %v644_v41 }
 0x192   : > { %v1244_v42 = vpop.eup %1243 }
 0x193   : > { %v646_v43 = vsel %vm303_vm1, %v1244_v42, 0.0 }
 0x194   : > { %647 = vadd.xlane.f32.xlu0 %v646_v43 }
 0x196   : > { %v1246_v44 = vpop.eup %1245 }
 0x197   : > { %v1248_v45 = vpop.eup %1247  ;;  %v649_v46 = vsel %vm303_vm1, %v1246_v44, 0.0 }
 0x198   : > { %650 = vadd.xlane.f32.xlu1 %v649_v46  ;;  %v652_v47 = vsel %vm303_vm1, %v1248_v45, 0.0 }
 0x199   : > { %653 = vadd.xlane.f32.xlu0 %v652_v47 }
 0x19a   : > { %v1250_v48 = vpop.eup %1249 }
 0x19b   : > { %v655_v49 = vsel %vm303_vm1, %v1250_v48, 0.0 }
 0x19c   : > { %656 = vadd.xlane.f32.xlu1 %v655_v49 }
 0x221   : > { %v648_v52 = vpop.xlane.xlu0 %647 }
 0x222   : > { %1251 = vrcp.f32 %v648_v52 }
 0x225   : > { %v651_v53 = vpop.xlane.xlu1 %650 }
 0x226   : > { %v654_v54 = vpop.xlane.xlu0 %653  ;;  %1253 = vrcp.f32 %v651_v53 }
 0x227   : > { %1255 = vrcp.f32 %v654_v54 }
 0x229   : > { %v657_v55 = vpop.xlane.xlu1 %656 }
 0x22a   : > { %1257 = vrcp.f32 %v657_v55 }
 0x22c   : > { %v1252_v56 = vpop.eup %1251 }
 0x22d   : > { %v662_v57 = vmul.f32 %v1252_v56, %v1244_v42 }
 0x22f   : > { %962 = vst.msk [vmem:[%s266_s30] sm:$0xff] %vm303_vm1, %v662_v57  ;;  %1183 = vmatmul.mubr.msk.f32.vlgmr.msra.gmra.mrb[4].mxu0 %vm303_vm1, %v662_v57 }
 0x230   : > { %v1254_v59 = vpop.eup %1253  ;;  %1191 = vmatpush3.msra.mxu0 %v300_v58  ;;  %1192 = vmatprep.mubr.msk.f32.mxu0 %vm1324_vm0, %v1323_v0 }
 0x231   : > { %v1256_v60 = vpop.eup %1255  ;;  %v663_v61 = vmul.f32 %v1254_v59, %v1246_v44 }
 0x232   : > { %v664_v63 = vmul.f32 %v1256_v60, %v1248_v45 }
 0x233   : > { %963 = vst.msk [vmem:[%s266_s30 + $0x8] sm:$0xff] %vm303_vm1, %v663_v61  ;;  %1188 = vmatmul.mubr.msk.f32.vlgmr.msra.gmra.mrb[4].mxu1 %vm303_vm1, %v663_v61 }
 0x234   : > { %v1258_v1 = vpop.eup %1257  ;;  %964 = vst.msk [vmem:[%s266_s30 + $0x10] sm:$0xff] %vm303_vm1, %v664_v63  ;;  %1193 = vmatmul.mubr.msk.f32.vlgmr.msra.gmra.mrb[6].mxu0 %vm303_vm1, %v664_v63  ;;  %1196 = vmatpush3.msra.mxu1 %v301_v62 }
 0x235   : > { %v665_v2 = vmul.f32 %v1258_v1, %v1250_v48  ;;  %1197 = vmatprep.mubr.msk.f32.mxu1 %vm1324_vm0, %v1323_v0 }
 0x237   : > { %965 = vst.msk [vmem:[%s266_s30 + $0x18] sm:$0xff] %vm303_vm1, %v665_v2  ;;  %1198 = vmatmul.mubr.msk.f32.vlgmr.msra.gmra.mrb[6].mxu1 %vm303_vm1, %v665_v2 }
 0x238   : > { %1272 = shalt.err (!%p1269_p3)
}
 0x239   : > { %s1273_s16 = scalar_lea.hbm %s1484_s11, 512  ;;  %s1277_s25 = scalar_lea.hbm %s1544_s5, 1024 }
 0x23a   : > { %p1274_p4 = scmp.ne.s32.totalorder %s1484_s11, %s1273_s16  ;;  %p1278_p9 = scmp.lt.u32.totalorder %s1484_s11, %s1544_s5 }
 0x23b   : > { %p1279_p10 = scmp.lt.u32.totalorder %s1277_s25, %s1273_s16  ;;  %p1281_p12 = scmp.lt.u32.totalorder %s1273_s16, %s1484_s11 }
 0x23c   : > { %p1275_p7 = pnand %p1274_p4, %p1396_p5 }
 0x23d   : > { %p1280_p11 = por %p1279_p10, %p1278_p9 }
 0x23e   : > { %p1276_p8 = pneg %p1275_p7 }
 0x23f   : > { %p1282_p13 = por %p1281_p12, %p1280_p11 }
 0x241   : > { %p1283_p0 = pnand %p1282_p13, %p1276_p8 }
 0x243   : > { %1286 = shalt.err (!%p1283_p0)
}
 0x244   : > { %s1326_s7 = smov 128   ;;  %s1327_s9 = smov 8  }
 0x245   : > { %1200 = dma.vmem_to_hbm [thread:$0]  (%p1396_p5), %s1486_s8, 512, %s1484_s11, %s1490_s12, %s1326_s7, %s1326_s7, %s1327_s9  }
 0x246   : > { %s289_s22 = scalar_lea.vmem %s1543_s4, %s1417_s6 }
 0x302   : > { %v735_v0 = vpop.f32.mrb[4].mxu0 }
 0x303   : > { %958 = vst.msk [vmem:[%s289_s22] sm:$0xff] %vm303_vm1, %v735_v0  ;;  %v1184_v3 = vpop.f32.mrb[5].mxu0 }
 0x306   : > { %v808_v4 = vpop.f32.mrb[4].mxu1 }
 0x307   : > { %959 = vst.msk [vmem:[%s289_s22 + $0x8] sm:$0xff] %vm303_vm1, %v808_v4  ;;  %v881_v5 = vpop.f32.mrb[6].mxu0  ;;  %v1189_v6 = vpop.f32.mrb[5].mxu1 }
 0x308   : > { %960 = vst.msk [vmem:[%s289_s22 + $0x10] sm:$0xff] %vm303_vm1, %v881_v5  ;;  %v1194_v7 = vpop.f32.mrb[7].mxu0 }
 0x30a   : > { %v954_v8 = vpop.f32.mrb[6].mxu1 }
 0x30b   : > { %961 = vst.msk [vmem:[%s289_s22 + $0x18] sm:$0xff] %vm303_vm1, %v954_v8  ;;  %v1199_v9 = vpop.f32.mrb[7].mxu1 }
 0x30c PF: > { %p1206_p5 = scmp.ge.s32.totalorder %s1321_s21, 2  ;;  %s1011_s28 = sand.u32 1, %s1309_s18  }
 0x30d   : > { %s1012_s6 = scalar_lea.sflag [#allocation3], %s1011_s28 }
 0x30e   : > { %p1203_p1 = pnand %p1206_p5, %p1400_p6 }
 0x310   : > { %1304 = dma.done.wait (!%p1203_p1), %s1012_s6, 512  }
 0x311   : > { %1306 = vsyncadd (!%p1203_p1), %s1012_s6, 4294966784  ;;  %p16_p2 = scmp.ge.s32.totalorder %s1383_s24, 4   ;;  %s1547_s18 = smov %s1313_s19 }
 0x312   : > { %s1548_s19 = smov %s1317_s20  ;;  %s1549_s20 = smov %s1394_s27 }
 0x313   : > { %s1550_s21 = smov %s1383_s24  ;;  %18 = sbr.rel (!%p16_p2) target bundleno = 3 (0x3), region = 92 }
 0x31a   :  { %1017 = vsyncpa [#allocation3], 1 }
 0x31b   :  { %1019 = vsyncpa [#allocation3 + $0x1], 1 }

// kernel: predictor_forward.46
= control target key start
LH: loop header
LB: loop body
LE: loop exit
PB: predicated region body
PF: predicated region fallthrough
CT: control target
= control target key end

     0   :  { %vm36_vm0 = vcmask 261120   ;;  %s308_s1 = inlined_call_operand.vmem [shape: f32[32,32], index: 1, kind: input, shape index: {}]   ;;  %s309_s0 = inlined_call_operand.vmem [shape: f32[16,32], index: 0, kind: input, shape index: {}]   ;;  %s310_s2 = inlined_call_operand.vmem [shape: f32[1,32], index: 2, kind: input, shape index: {}]   ;;  %s311_s3 = inlined_call_operand.vmem [shape: f32[16,32], index: 3, kind: input, shape index: {}]   ;;  %s312_s4 = inlined_call_operand.vmem [shape: f32[1,32], index: 4, kind: input, shape index: {}]   ;;  %s313_s5 = inlined_call_operand.vmem [shape: f32[1,32], index: 5, kind: input, shape index: {}]   ;;  %s314_s6 = inlined_call_operand.vmem [shape: f32[16,32], index: 6, kind: output, shape index: {}]  }
   0x1   :  { %v25_v0 = vld [vmem:[%s308_s1] sm:$0xff]  ;;  %v26_v1 = vld [vmem:[%s308_s1 + $0x8] sm:$0xff]  ;;  %v27_v2 = vld [vmem:[%s308_s1 + $0x10] sm:$0xff] }
   0x2   :  { %v210_v3 = vpack.c.bf16 %v26_v1, %v25_v0  ;;  %v28_v4 = vld [vmem:[%s308_s1 + $0x18] sm:$0xff]  ;;  %v23_v5 = vld [vmem:[%s309_s0] sm:$0xff]  ;;  %v24_v7 = vld [vmem:[%s309_s0 + $0x8] sm:$0xff] }
   0x3   :  { %v214_v6 = vpack.c.bf16 %v28_v4, %v27_v2  ;;  %207 = vmatprep.mubr.msk.f32.mxu0 %vm36_vm0, %v23_v5  ;;  %v188_v8 = vld [vmem:[%s310_s2] ss:$0 sm:$0xff]  ;;  %v119_v14 = vld [vmem:[%s311_s3 + $0x8] sm:$0xff] }
   0x4   :  { %211 = vmatprep.subr.bf16.mxu0 %v210_v3  ;;  %v118_v11 = vld [vmem:[%s311_s3] sm:$0xff] }
   0x5   :  { %213 = vmatpush3.bf16.msra.mxu0 %v210_v3  ;;  %v191_v46 = vld [vmem:[%s312_s4] ss:$0 sm:$0xff] }
   0x6   :  { %215 = vmatprep.subr.bf16.mxu0 %v214_v6  ;;  %v192_v48 = vld [vmem:[%s313_s5] ss:$0 sm:$0xff] }
   0x9   :  { %217 = vmatpush3.bf16.msra.mxu0 %v214_v6 }
   0xc   :  { %208 = vmatmul.mubr.msk.f32.vlgmr.msra.gmra.mrb[0].mxu0 %vm36_vm0, %v24_v7 }
  0xdf   :  { %v209_v9 = vpop.f32.mrb[0].mxu0 }
  0xe0   :  { %v109_v10 = vpop.f32.mrb[1].mxu0  ;;  %v115_v12 = vadd.f32 %v209_v9, %v188_v8 }
  0xe1   :  { %v110_v13 = vadd.f32 %v188_v8, %v109_v10 }
  0xe2   :  { %v121_v17 = vadd.f32 %v119_v14, %v115_v12 }
  0xe3   :  { %v120_v15 = vadd.f32 %v118_v11, %v110_v13 }
  0xe4   :  { %v127_v18 = vsel %vm36_vm0, %v121_v17, 0.0 }
  0xe5   :  { %v124_v16 = vsel %vm36_vm0, %v120_v15, 0.0 }
  0xe6   :  { %125 = vadd.xlane.f32.xlu0 %v124_v16 }
  0xea   :  { %128 = vadd.xlane.f32.xlu0 %v127_v18 }
 0x173   :  { %v126_v19 = vpop.xlane.xlu0 %125 }
 0x174   :  { %v131_v20 = vmul.f32 0.03125, %v126_v19 }
 0x176   :  { %v133_v21 = vsub.f32 %v120_v15, %v131_v20 }
 0x177   :  { %v129_v22 = vpop.xlane.xlu0 %128 }
 0x178   :  { %v132_v23 = vmul.f32 0.03125, %v129_v22  ;;  %v135_v24 = vmul.f32 %v133_v21, %v133_v21 }
 0x17a   :  { %v134_v25 = vsub.f32 %v121_v17, %v132_v23  ;;  %v137_v26 = vsel %vm36_vm0, %v135_v24, 0.0 }
 0x17b   :  { %138 = vadd.xlane.f32.xlu1 %v137_v26 }
 0x17c   :  { %v136_v27 = vmul.f32 %v134_v25, %v134_v25 }
 0x17e   :  { %v140_v28 = vsel %vm36_vm0, %v136_v27, 0.0 }
 0x17f   :  { %141 = vadd.xlane.f32.xlu1 %v140_v28 }
 0x208   :  { %v139_v29 = vpop.xlane.xlu1 %138 }
 0x209   :  { %v144_v30 = vmul.f32 0.032258064, %v139_v29 }
 0x20b   :  { %218 = vrsqrt.f32 %v144_v30  ;;  %vm148_vm1 = vcmp.eq.f32.partialorder %v144_v30, inf  ;;  %v151_v35 = vand.u32 2147483648, %v144_v30  ;;  %vm150_vm2 = vcmp.eq.f32.partialorder %v144_v30, 0.0 }
 0x20c   :  { %v142_v31 = vpop.xlane.xlu1 %141 }
 0x20d   :  { %v145_v32 = vmul.f32 0.032258064, %v142_v31 }
 0x20f   :  { %220 = vrsqrt.f32 %v145_v32  ;;  %vm155_vm3 = vcmp.eq.f32.partialorder %v145_v32, inf  ;;  %v158_v41 = vand.u32 2147483648, %v145_v32  ;;  %vm157_vm4 = vcmp.eq.f32.partialorder %v145_v32, 0.0 }
 0x215   :  { %v219_v33 = vpop.eup %218 }
 0x216   :  { %v147_v34 = vmul.f32 %v219_v33, %v144_v30 }
 0x218   :  { %v149_v36 = vsel %vm148_vm1, %v144_v30, %v147_v34 }
 0x219   :  { %v221_v37 = vpop.eup %220  ;;  %v152_v38 = vsel %vm150_vm2, %v151_v35, %v149_v36 }
 0x21a   :  { %v160_v39 = vadd.f32 1e-12, %v152_v38  ;;  %v154_v40 = vmul.f32 %v221_v37, %v145_v32 }
 0x21c   :  { %222 = vrcp.f32 %v160_v39  ;;  %v156_v42 = vsel %vm155_vm3, %v145_v32, %v154_v40 }
 0x21d   :  { %v159_v43 = vsel %vm157_vm4, %v158_v41, %v156_v42 }
 0x21e   :  { %v161_v44 = vadd.f32 1e-12, %v159_v43 }
 0x220   :  { %224 = vrcp.f32 %v161_v44 }
 0x226   :  { %v223_v45 = vpop.eup %222 }
 0x227   :  { %v163_v47 = vmul.f32 %v223_v45, %v133_v21 }
 0x229   :  { %v172_v49 = vmul.f32 %v191_v46, %v163_v47 }
 0x22a   :  { %v225_v50 = vpop.eup %224 }
 0x22b   :  { %v180_v51 = vadd.f32 %v192_v48, %v172_v49  ;;  %v165_v52 = vmul.f32 %v225_v50, %v134_v25 }
 0x22d   :  { %182 = vst.msk [vmem:[%s314_s6] sm:$0xff] %vm36_vm0, %v180_v51  ;;  %v173_v53 = vmul.f32 %v191_v46, %v165_v52 }
 0x22f   :  { %v181_v54 = vadd.f32 %v192_v48, %v173_v53 }
 0x231   :  { %183 = vst.msk [vmem:[%s314_s6 + $0x8] sm:$0xff] %vm36_vm0, %v181_v54 }

// kernel: predictor_forward.39
= control target key start
LH: loop header
LB: loop body
LE: loop exit
PB: predicated region body
PF: predicated region fallthrough
CT: control target
= control target key end

     0   :  { %vm54_vm0 = vcmask 261120   ;;  %vm309_vm5 = vcmask 523264   ;;  %s757_s1 = inlined_call_operand.vmem [shape: f32[32,32], index: 1, kind: input, shape index: {}]   ;;  %s758_s0 = inlined_call_operand.vmem [shape: f32[16,32], index: 0, kind: input, shape index: {}]   ;;  %s759_s2 = inlined_call_operand.vmem [shape: f32[1,32], index: 2, kind: input, shape index: {}]   ;;  %s760_s3 = inlined_call_operand.vmem [shape: f32[16,32], index: 3, kind: input, shape index: {}]   ;;  %s761_s6 = inlined_call_operand.vmem [shape: f32[32,64], index: 6, kind: input, shape index: {}]   ;;  %s762_s8 = inlined_call_operand.vmem [shape: f32[64,32], index: 8, kind: input, shape index: {}]   ;;  %s763_s4 = inlined_call_operand.vmem [shape: f32[1,32], index: 4, kind: input, shape index: {}]   ;;  %s764_s5 = inlined_call_operand.vmem [shape: f32[1,32], index: 5, kind: input, shape index: {}]   ;;  %s765_s7 = inlined_call_operand.vmem [shape: f32[1,64], index: 7, kind: input, shape index: {}]   ;;  %s766_s9 = inlined_call_operand.vmem [shape: f32[1,32], index: 9, kind: input, shape index: {}]   ;;  %s767_s10 = inlined_call_operand.vmem [shape: f32[1,32], index: 10, kind: input, shape index: {}]   ;;  %s768_s11 = inlined_call_operand.vmem [shape: f32[1,32], index: 11, kind: input, shape index: {}]   ;;  %s769_s12 = inlined_call_operand.vmem [shape: f32[16,32], index: 12, kind: output, shape index: {}]  }
   0x1   :  { %v43_v0 = vld [vmem:[%s757_s1] sm:$0xff]  ;;  %v44_v1 = vld [vmem:[%s757_s1 + $0x8] sm:$0xff]  ;;  %v45_v2 = vld [vmem:[%s757_s1 + $0x10] sm:$0xff] }
   0x2   :  { %v533_v3 = vpack.c.bf16 %v44_v1, %v43_v0  ;;  %v46_v4 = vld [vmem:[%s757_s1 + $0x18] sm:$0xff]  ;;  %v41_v5 = vld [vmem:[%s758_s0] sm:$0xff]  ;;  %v42_v7 = vld [vmem:[%s758_s0 + $0x8] sm:$0xff] }
   0x3   :  { %v537_v6 = vpack.c.bf16 %v46_v4, %v45_v2  ;;  %500 = vmatprep.mubr.msk.f32.mxu1 %vm54_vm0, %v41_v5  ;;  %v457_v8 = vld [vmem:[%s759_s2] ss:$0 sm:$0xff]  ;;  %v137_v14 = vld [vmem:[%s760_s3 + $0x8] sm:$0xff]  ;;  %v202_v31 = vld [vmem:[%s761_s6 + $0x10] sm:$0xff] }
   0x4   :  { %534 = vmatprep.subr.bf16.mxu1 %v533_v3  ;;  %v136_v11 = vld [vmem:[%s760_s3] sm:$0xff]  ;;  %v201_v30 = vld [vmem:[%s761_s6 + $0x8] sm:$0xff]  ;;  %v203_v33 = vld [vmem:[%s761_s6 + $0x18] sm:$0xff] }
   0x5   :  { %536 = vmatpush3.bf16.msra.mxu1 %v533_v3  ;;  %v200_v29 = vld [vmem:[%s761_s6] sm:$0xff]  ;;  %v545_v34 = vpack.c.bf16 %v203_v33, %v202_v31  ;;  %v295_v36 = vld [vmem:[%s762_s8 + $0x8] sm:$0xff]  ;;  %v296_v37 = vld [vmem:[%s762_s8 + $0x10] sm:$0xff] }
   0x6   :  { %538 = vmatprep.subr.bf16.mxu1 %v537_v6  ;;  %v541_v32 = vpack.c.bf16 %v201_v30, %v200_v29  ;;  %v294_v35 = vld [vmem:[%s762_s8] sm:$0xff]  ;;  %v297_v39 = vld [vmem:[%s762_s8 + $0x18] sm:$0xff]  ;;  %v299_v42 = vld [vmem:[%s762_s8 + $0x28] sm:$0xff] }
   0x7   :  { %v549_v38 = vpack.c.bf16 %v295_v36, %v294_v35  ;;  %v553_v40 = vpack.c.bf16 %v297_v39, %v296_v37  ;;  %v298_v41 = vld [vmem:[%s762_s8 + $0x20] sm:$0xff] }
   0x8   :  { %v557_v43 = vpack.c.bf16 %v299_v42, %v298_v41  ;;  %v460_v61 = vld [vmem:[%s763_s4] ss:$0 sm:$0xff] }
   0x9   :  { %540 = vmatpush3.bf16.msra.mxu1 %v537_v6  ;;  %550 = vmatprep.subr.bf16.mxu0 %v549_v38  ;;  %v461_v63 = vld [vmem:[%s764_s5] ss:$0 sm:$0xff]  ;;  %v300_v6 = vld [vmem:[%s762_s8 + $0x30] sm:$0xff] }
   0xa   :  { %542 = vmatprep.subr.bf16.mxu1 %v541_v32  ;;  %552 = vmatpush3.bf16.msra.mxu0 %v549_v38 }
   0xb   :  { %554 = vmatprep.subr.bf16.mxu0 %v553_v40 }
   0xc   :  { %501 = vmatmul.mubr.msk.f32.vlgmr.msra.gmra.mrb[0].mxu1 %vm54_vm0, %v42_v7  ;;  %v301_v7 = vld [vmem:[%s762_s8 + $0x38] sm:$0xff] }
   0xd   :  { %544 = vmatpush3.bf16.msra.mxu1 %v541_v32 }
   0xe   :  { %546 = vmatprep.subr.bf16.mxu1 %v545_v34  ;;  %556 = vmatpush3.bf16.msra.mxu0 %v553_v40 }
   0xf   :  { %558 = vmatprep.subr.bf16.mxu0 %v557_v43 }
  0x11   :  { %548 = vmatpush3.bf16.msra.mxu1 %v545_v34 }
  0x12   :  { %560 = vmatpush3.bf16.msra.mxu0 %v557_v43 }
  0xdf   :  { %v502_v9 = vpop.f32.mrb[0].mxu1 }
  0xe0   :  { %v127_v10 = vpop.f32.mrb[1].mxu1  ;;  %v133_v12 = vadd.f32 %v502_v9, %v457_v8  ;;  %v462_v9 = vld [vmem:[%s765_s7] ss:$0 sm:$0xff] }
  0xe1   :  { %v128_v13 = vadd.f32 %v457_v8, %v127_v10  ;;  %v561_v8 = vpack.c.bf16 %v301_v7, %v300_v6 }
  0xe2   :  { %v139_v17 = vadd.f32 %v137_v14, %v133_v12 }
  0xe3   :  { %v138_v15 = vadd.f32 %v136_v11, %v128_v13  ;;  %562 = vmatprep.subr.bf16.mxu0 %v561_v8 }
  0xe4   :  { %v145_v18 = vsel %vm54_vm0, %v139_v17, 0.0  ;;  %564 = vmatpush3.bf16.msra.mxu0 %v561_v8 }
  0xe5   :  { %v142_v16 = vsel %vm54_vm0, %v138_v15, 0.0 }
  0xe6   :  { %143 = vadd.xlane.f32.xlu0 %v142_v16  ;;  %v465_v16 = vld [vmem:[%s766_s9] ss:$0 sm:$0xff] }
  0xea   :  { %146 = vadd.xlane.f32.xlu0 %v145_v18 }
 0x173   :  { %v144_v19 = vpop.xlane.xlu0 %143 }
 0x174   :  { %v149_v20 = vmul.f32 0.03125, %v144_v19 }
 0x176   :  { %v677_v21 = vsub.f32 %v138_v15, %v149_v20 }
 0x177   :  { %v147_v22 = vpop.xlane.xlu0 %146 }
 0x178   :  { %v150_v23 = vmul.f32 0.03125, %v147_v22  ;;  %v153_v24 = vmul.f32 %v677_v21, %v677_v21 }
 0x17a   :  { %v681_v25 = vsub.f32 %v139_v17, %v150_v23  ;;  %v155_v26 = vsel %vm54_vm0, %v153_v24, 0.0 }
 0x17b   :  { %156 = vadd.xlane.f32.xlu1 %v155_v26 }
 0x17c   :  { %v154_v27 = vmul.f32 %v681_v25, %v681_v25 }
 0x17e   :  { %v158_v28 = vsel %vm54_vm0, %v154_v27, 0.0 }
 0x17f   :  { %159 = vadd.xlane.f32.xlu1 %v158_v28 }
 0x208   :  { %v157_v44 = vpop.xlane.xlu1 %156 }
 0x209   :  { %v162_v45 = vmul.f32 0.032258064, %v157_v44 }
 0x20b   :  { %565 = vrsqrt.f32 %v162_v45  ;;  %vm166_vm1 = vcmp.eq.f32.partialorder %v162_v45, inf  ;;  %v169_v50 = vand.u32 2147483648, %v162_v45  ;;  %vm168_vm2 = vcmp.eq.f32.partialorder %v162_v45, 0.0 }
 0x20c   :  { %v160_v46 = vpop.xlane.xlu1 %159 }
 0x20d   :  { %v163_v47 = vmul.f32 0.032258064, %v160_v46 }
 0x20f   :  { %567 = vrsqrt.f32 %v163_v47  ;;  %vm173_vm3 = vcmp.eq.f32.partialorder %v163_v47, inf  ;;  %v176_v56 = vand.u32 2147483648, %v163_v47  ;;  %vm175_vm4 = vcmp.eq.f32.partialorder %v163_v47, 0.0 }
 0x215   :  { %v566_v48 = vpop.eup %565 }
 0x216   :  { %v165_v49 = vmul.f32 %v566_v48, %v162_v45 }
 0x218   :  { %v167_v51 = vsel %vm166_vm1, %v162_v45, %v165_v49 }
 0x219   :  { %v568_v52 = vpop.eup %567  ;;  %v170_v53 = vsel %vm168_vm2, %v169_v50, %v167_v51 }
 0x21a   :  { %v178_v54 = vadd.f32 1e-12, %v170_v53  ;;  %v172_v55 = vmul.f32 %v568_v52, %v163_v47  ;;  %v468_v52 = vld [vmem:[%s767_s10] ss:$0 sm:$0xff] }
 0x21c   :  { %569 = vrcp.f32 %v178_v54  ;;  %v174_v57 = vsel %vm173_vm3, %v163_v47, %v172_v55  ;;  %v469_v55 = vld [vmem:[%s768_s11] ss:$0 sm:$0xff] }
 0x21d   :  { %v177_v58 = vsel %vm175_vm4, %v176_v56, %v174_v57 }
 0x21e   :  { %v179_v59 = vadd.f32 1e-12, %v177_v58 }
 0x220   :  { %571 = vrcp.f32 %v179_v59 }
 0x226   :  { %v570_v60 = vpop.eup %569 }
 0x227   :  { %v181_v62 = vmul.f32 %v570_v60, %v677_v21 }
 0x229   :  { %v190_v0 = vmul.f32 %v460_v61, %v181_v62 }
 0x22a   :  { %v572_v1 = vpop.eup %571 }
 0x22b   :  { %v183_v2 = vmul.f32 %v572_v1, %v681_v25  ;;  %v198_v3 = vadd.f32 %v461_v63, %v190_v0 }
 0x22d   :  { %v191_v4 = vmul.f32 %v460_v61, %v183_v2  ;;  %511 = vmatprep.mubr.msk.f32.mxu1 %vm54_vm0, %v198_v3 }
 0x22f   :  { %v199_v5 = vadd.f32 %v461_v63, %v191_v4 }
 0x231   :  { %512 = vmatmul.mubr.msk.f32.vlgmr.msra.gmra.mrb[2].mxu1 %vm54_vm0, %v199_v5 }
 0x304   :  { %v513_v10 = vpop.f32.mrb[2].mxu1 }
 0x305   :  { %v289_v11 = vadd.f32 %v513_v10, %v462_v9  ;;  %v283_v12 = vpop.f32.mrb[3].mxu1 }
 0x306   :  { %v284_v13 = vadd.f32 %v462_v9, %v283_v12 }
 0x307   :  { %v293_v15 = vmax.f32 %v289_v11, 0.0 }
 0x308   :  { %v292_v14 = vmax.f32 %v284_v13, 0.0 }
 0x30a   :  { %530 = vmatprep.mubr.msk.f32.mxu0 %vm309_vm5, %v292_v14 }
 0x30b   :  { %531 = vmatmul.mubr.msk.f32.vlgmr.msra.gmra.mrb[0].mxu0 %vm309_vm5, %v293_v15 }
 0x3de   :  { %v532_v17 = vpop.f32.mrb[0].mxu0 }
 0x3df   :  { %v388_v18 = vadd.f32 %v532_v17, %v465_v16  ;;  %v382_v19 = vpop.f32.mrb[1].mxu0 }
 0x3e0   :  { %v383_v20 = vadd.f32 %v465_v16, %v382_v19 }
 0x3e1   :  { %v392_v21 = vadd.f32 %v388_v18, %v199_v5 }
 0x3e2   :  { %v391_v22 = vadd.f32 %v383_v20, %v198_v3 }
 0x3e3   :  { %v398_v23 = vsel %vm54_vm0, %v392_v21, 0.0 }
 0x3e4   :  { %399 = vadd.xlane.f32.xlu1 %v398_v23  ;;  %v395_v24 = vsel %vm54_vm0, %v391_v22, 0.0 }
 0x3e5   :  { %396 = vadd.xlane.f32.xlu0 %v395_v24 }
 0x471   :  { %v400_v25 = vpop.xlane.xlu1 %399 }
 0x472   :  { %v402_v26 = vmul.f32 0.03125, %v400_v25  ;;  %v397_v27 = vpop.xlane.xlu0 %396 }
 0x473   :  { %v401_v28 = vmul.f32 0.03125, %v397_v27 }
 0x474   :  { %v404_v29 = vsub.f32 %v392_v21, %v402_v26 }
 0x475   :  { %v403_v30 = vsub.f32 %v391_v22, %v401_v28 }
 0x476   :  { %v406_v31 = vmul.f32 %v404_v29, %v404_v29 }
 0x477   :  { %v405_v32 = vmul.f32 %v403_v30, %v403_v30 }
 0x478   :  { %v410_v33 = vsel %vm54_vm0, %v406_v31, 0.0 }
 0x479   :  { %411 = vadd.xlane.f32.xlu1 %v410_v33  ;;  %v407_v34 = vsel %vm54_vm0, %v405_v32, 0.0 }
 0x47a   :  { %408 = vadd.xlane.f32.xlu0 %v407_v34 }
 0x506   :  { %v412_v35 = vpop.xlane.xlu1 %411 }
 0x507   :  { %v414_v36 = vmul.f32 0.032258064, %v412_v35  ;;  %v409_v37 = vpop.xlane.xlu0 %408 }
 0x508   :  { %v413_v38 = vmul.f32 0.032258064, %v409_v37 }
 0x509   :  { %573 = vrsqrt.f32 %v414_v36  ;;  %vm424_vm6 = vcmp.eq.f32.partialorder %v414_v36, inf  ;;  %v427_v42 = vand.u32 2147483648, %v414_v36  ;;  %vm426_vm7 = vcmp.eq.f32.partialorder %v414_v36, 0.0 }
 0x50a   :  { %575 = vrsqrt.f32 %v413_v38  ;;  %vm417_vm8 = vcmp.eq.f32.partialorder %v413_v38, inf  ;;  %v420_v45 = vand.u32 2147483648, %v413_v38  ;;  %vm419_vm9 = vcmp.eq.f32.partialorder %v413_v38, 0.0 }
 0x513   :  { %v574_v39 = vpop.eup %573 }
 0x514   :  { %v576_v40 = vpop.eup %575  ;;  %v423_v41 = vmul.f32 %v574_v39, %v414_v36 }
 0x515   :  { %v416_v43 = vmul.f32 %v576_v40, %v413_v38 }
 0x516   :  { %v425_v44 = vsel %vm424_vm6, %v414_v36, %v423_v41 }
 0x517   :  { %v428_v46 = vsel %vm426_vm7, %v427_v42, %v425_v44  ;;  %v418_v47 = vsel %vm417_vm8, %v413_v38, %v416_v43 }
 0x518   :  { %v430_v48 = vadd.f32 1e-12, %v428_v46  ;;  %v421_v49 = vsel %vm419_vm9, %v420_v45, %v418_v47 }
 0x519   :  { %v429_v50 = vadd.f32 1e-12, %v421_v49 }
 0x51a   :  { %577 = vrcp.f32 %v430_v48 }
 0x51b   :  { %579 = vrcp.f32 %v429_v50 }
 0x524   :  { %v578_v51 = vpop.eup %577 }
 0x525   :  { %v580_v53 = vpop.eup %579  ;;  %v434_v54 = vmul.f32 %v578_v51, %v404_v29 }
 0x526   :  { %v432_v56 = vmul.f32 %v580_v53, %v403_v30 }
 0x527   :  { %v442_v57 = vmul.f32 %v468_v52, %v434_v54 }
 0x528   :  { %v441_v58 = vmul.f32 %v468_v52, %v432_v56 }
 0x529   :  { %v450_v59 = vadd.f32 %v469_v55, %v442_v57 }
 0x52a   :  { %v449_v60 = vadd.f32 %v469_v55, %v441_v58 }
 0x52b   :  { %452 = vst.msk [vmem:[%s769_s12 + $0x8] sm:$0xff] %vm54_vm0, %v450_v59 }
 0x52c   :  { %451 = vst.msk [vmem:[%s769_s12] sm:$0xff] %vm54_vm0, %v449_v60 }

// kernel: predictor_forward.30
= control target key start
LH: loop header
LB: loop body
LE: loop exit
PB: predicated region body
PF: predicated region fallthrough
CT: control target
= control target key end

     0   :  { %v168_v0 = vmov 0.0|0.0   ;;  %vm169_vm0 = vmmov 0   ;;  %v170_v6 = vmov 0.0   ;;  %vm28_vm1 = vcmask 261120   ;;  %s227_s1 = inlined_call_operand.vmem [shape: f32[32,96], index: 1, kind: input, shape index: {}]   ;;  %s228_s0 = inlined_call_operand.vmem [shape: f32[20,32], index: 0, kind: input, shape index: {}]   ;;  %s229_s2 = inlined_call_operand.vmem [shape: f32[1,96], index: 2, kind: input, shape index: {}]   ;;  %s230_s3 = inlined_call_operand.vmem [shape: f32[20,96], index: 3, kind: output, shape index: {}]  }
   0x1   :  { %161 = vmatprep.subr.bf16.mxu1 %v168_v0  ;;  %v17_v1 = vld [vmem:[%s227_s1] sm:$0xff]  ;;  %v18_v2 = vld [vmem:[%s227_s1 + $0x8] sm:$0xff]  ;;  %155 = vmatprep.subr.bf16.mxu0 %v168_v0  ;;  %v19_v3 = vld [vmem:[%s227_s1 + $0x10] sm:$0xff]  ;;  %vm118_vm2 = vcmask 785408   ;;  %vm121_vm3 = vcmask 781312  }
   0x2   :  { %v156_v4 = vpack.c.bf16 %v18_v2, %v17_v1  ;;  %v20_v5 = vld [vmem:[%s227_s1 + $0x18] sm:$0xff]  ;;  %149 = vmatprep.mubr.msk.f32.mxu1 %vm169_vm0, %v170_v6  ;;  %146 = vmatprep.mubr.msk.f32.mxu0 %vm169_vm0, %v170_v6  ;;  %v15_v8 = vld [vmem:[%s228_s0 + $0x8] sm:$0xff]  ;;  %v14_v9 = vld [vmem:[%s228_s0] sm:$0xff] }
   0x3   :  { %v159_v7 = vpack.c.bf16 %v20_v5, %v19_v3  ;;  %v16_v10 = vld [vmem:[%s228_s0 + $0x10] sm:$0xf]  ;;  %v127_v11 = vld [vmem:[%s229_s2] ss:$0 sm:$0xff] }
   0x4   :  { %163 = vmatpush3.bf16.msra.mxu1 %v156_v4  ;;  %157 = vmatpush3.bf16.msra.mxu0 %v156_v4 }
   0x5   :  { %162 = vmatprep.subr.bf16.mxu1 %v168_v0  ;;  %158 = vmatprep.subr.bf16.mxu0 %v168_v0 }
   0x8   :  { %164 = vmatpush3.bf16.msra.mxu1 %v159_v7  ;;  %160 = vmatpush3.bf16.msra.mxu0 %v159_v7 }
   0xb   :  { %150 = vmatmul.mubr.msk.f32.vlgmr.msra.gmra.mrb[0].mxu1 %vm28_vm1, %v15_v8  ;;  %147 = vmatmul.mubr.msk.f32.vlgmr.msra.gmra.mrb[0].mxu0 %vm28_vm1, %v14_v9 }
   0xc   :  { %152 = vmatprep.mubr.msk.f32.mxu1 %vm169_vm0, %v170_v6 }
   0xf   :  { %153 = vmatmul.mubr.msk.f32.gmra.mrb[2].mxu1 %vm28_vm1, %v16_v10 }
  0xde   :  { %v109_v12 = vpop.f32.mrb[0].mxu1  ;;  %v104_v13 = vpop.f32.mrb[0].mxu0 }
  0xdf   :  { %v110_v14 = vadd.f32 %v127_v11, %v109_v12  ;;  %v151_v15 = vpop.f32.mrb[1].mxu1  ;;  %v105_v16 = vadd.f32 %v127_v11, %v104_v13  ;;  %v148_v17 = vpop.f32.mrb[1].mxu0 }
  0xe1   :  { %120 = vst.msk [vmem:[%s230_s3 + $0x8] sm:$0xff] %vm118_vm2, %v110_v14  ;;  %119 = vst.msk [vmem:[%s230_s3] sm:$0xff] %vm118_vm2, %v105_v16 }
  0xe2   :  { %v114_v18 = vpop.f32.mrb[2].mxu1 }
  0xe3   :  { %v115_v19 = vadd.f32 %v127_v11, %v114_v18  ;;  %v154_v20 = vpop.f32.mrb[3].mxu1 }
  0xe5   :  { %122 = vst.msk [vmem:[%s230_s3 + $0x10] sm:$0xf] %vm121_vm3, %v115_v19 }

// kernel: predictor_forward.29
= control target key start
LH: loop header
LB: loop body
LE: loop exit
PB: predicated region body
PF: predicated region fallthrough
CT: control target
= control target key end

     0   :  { %vm36_vm0 = vcmask 1043456   ;;  %v162_v0 = vmov 0.0|0.0   ;;  %vm163_vm1 = vmmov 1   ;;  %vm164_vm3 = vmmov 0   ;;  %s213_s1 = inlined_call_operand.vmem [shape: f32[12,32], index: 1, kind: input, shape index: {}]   ;;  %s214_s0 = inlined_call_operand.vmem [shape: f32[20,12], index: 0, kind: input, shape index: {}]   ;;  %s215_s2 = inlined_call_operand.vmem [shape: f32[1,32], index: 2, kind: input, shape index: {}]   ;;  %s216_s3 = inlined_call_operand.vmem [shape: f32[20,32], index: 3, kind: output, shape index: {}]  }
   0x1   :  { %156 = vmatprep.subr.bf16.mxu1 %v162_v0  ;;  %v17_v1 = vld [vmem:[%s213_s1] sm:$0xff]  ;;  %v18_v2 = vld [vmem:[%s213_s1 + $0x8] sm:$0xf]  ;;  %vm154_vm2 = vmpackc.low %vm36_vm0, %vm163_vm1  ;;  %152 = vmatprep.subr.bf16.mxu0 %v162_v0  ;;  %v165_v4 = vmov 0.0   ;;  %vm26_vm4 = vcmask 97280   ;;  %vm120_vm5 = vcmask 261120  }
   0x2   :  { %v153_v3 = vpack.c.bf16 %v18_v2, %v17_v1  ;;  %146 = vmatprep.mubr.msk.f32.mxu1 %vm164_vm3, %v165_v4  ;;  %143 = vmatprep.mubr.msk.f32.mxu0 %vm164_vm3, %v165_v4  ;;  %v15_v5 = vld [vmem:[%s214_s0 + $0x8] sm:$0xff]  ;;  %v14_v6 = vld [vmem:[%s214_s0] sm:$0xff]  ;;  %v16_v7 = vld [vmem:[%s214_s0 + $0x10] sm:$0xf]  ;;  %vm123_vm6 = vcmask 257024  }
   0x3   :  { %v129_v8 = vld [vmem:[%s215_s2] ss:$0 sm:$0xff] }
   0x4   :  { %157 = vmatpush3.bf16.msk.msra.mxu1 %vm154_vm2, %v153_v3  ;;  %155 = vmatpush3.bf16.msk.msra.mxu0 %vm154_vm2, %v153_v3 }
   0x7   :  { %147 = vmatmul.mubr.msk.f32.vlgmr.msra.gmra.mrb[0].mxu1 %vm26_vm4, %v15_v5  ;;  %144 = vmatmul.mubr.msk.f32.vlgmr.msra.gmra.mrb[0].mxu0 %vm26_vm4, %v14_v6 }
   0x8   :  { %149 = vmatprep.mubr.msk.f32.mxu1 %vm164_vm3, %v165_v4 }
   0xb   :  { %150 = vmatmul.mubr.msk.f32.gmra.mrb[2].mxu1 %vm26_vm4, %v16_v7 }
  0xda   :  { %v111_v9 = vpop.f32.mrb[0].mxu1  ;;  %v106_v10 = vpop.f32.mrb[0].mxu0 }
  0xdb   :  { %v112_v11 = vadd.f32 %v129_v8, %v111_v9  ;;  %v148_v12 = vpop.f32.mrb[1].mxu1  ;;  %v107_v13 = vadd.f32 %v129_v8, %v106_v10  ;;  %v145_v14 = vpop.f32.mrb[1].mxu0 }
  0xdd   :  { %122 = vst.msk [vmem:[%s216_s3 + $0x8] sm:$0xff] %vm120_vm5, %v112_v11  ;;  %121 = vst.msk [vmem:[%s216_s3] sm:$0xff] %vm120_vm5, %v107_v13 }
  0xde   :  { %v116_v15 = vpop.f32.mrb[2].mxu1 }
  0xdf   :  { %v117_v16 = vadd.f32 %v129_v8, %v116_v15  ;;  %v151_v17 = vpop.f32.mrb[3].mxu1 }
  0xe1   :  { %124 = vst.msk [vmem:[%s216_s3 + $0x10] sm:$0xf] %vm123_vm6, %v117_v16 }

// kernel: predictor_forward.31
= control target key start
LH: loop header
LB: loop body
LE: loop exit
PB: predicated region body
PF: predicated region fallthrough
CT: control target
= control target key end

     0   :  { %s1431_s15 = smov 0   ;;  %s1587_s0 = inlined_call_operand.vmem [shape: f32[2,4,10,8], index: 0, kind: input, shape index: {}]   ;;  %s1588_s1 = inlined_call_operand.vmem [shape: f32[2,4,10,8], index: 1, kind: input, shape index: {}]   ;;  %s1589_s2 = inlined_call_operand.vmem [shape: f32[2,4,10,8], index: 2, kind: input, shape index: {}]   ;;  %s1590_s3 = inlined_call_operand.vmem [shape: f32[2,1,10], index: 3, kind: input, shape index: {}]   ;;  %s1591_s4 = inlined_call_operand.vmem [shape: f32[2,4,10,8], index: 4, kind: output, shape index: {}]  }
   0x1 LB: > { %s1172_s16 = sadd.s32 4294967295, %s1403_s15   ;;  %p1176_p0 = scmp.ge.s32.totalorder %s1403_s15, 1  ;;  %s1403_s15 = sphi %s1431_s15, %s14_s15  }
   0x2   : > { %p190_p1 = scmp.lt.s32.totalorder %s1403_s15, 3 }
   0x4   : > { %p191_p2 = pnand %p1176_p0, %p190_p1 }
   0x5   : > { %p229_p3 = scmp.lt.s32.totalorder (!%p191_p2), %s1172_s16, 1  ;;  %vm277_vm0 = vcmask (!%p191_p2), 64512   ;;  %vm652_vm2 = vcmask (!%p191_p2), 74752   ;;  %vm648_vm3 = vcmask (!%p191_p2), 80896   ;;  %vm744_vm4 = vcmask (!%p191_p2), 1041408  }
   0x6   : > { %194 = sbr.rel (%p191_p2) target bundleno = 787 (0x313), region = 36  ;;  %vm1450_vm1 = vmpackc.low (!%p191_p2), %vm277_vm0, %vm277_vm0  ;;  %vm1405_vm5 = vmmov (!%p191_p2), 1   ;;  %vm1076_vm7 = vcmask (!%p191_p2), 58368  }
   0x7   : > { %vm1540_vm6 = vmpackc.low (!%p191_p2), %vm744_vm4, %vm1405_vm5 }
   0xd   : > { %s1597_s16 = smov (!%p229_p3, %s1172_s16), 1 }
   0xe   : > { %s1442_s17 = sshll.u32 %s1597_s16, 6  ;;  %s246_s26 = scalar_lea.vmem %s1590_s3, %s1597_s16 }
   0xf   : > { %s238_s20 = scalar_lea.vmem %s1588_s1, %s1442_s17  ;;  %s1458_s23 = scalar_lea.vmem %s1587_s0, %s1442_s17  ;;  %v1201_v22 = vld [vmem:[%s246_s26] ss:$0 sm:$0xff] }
  0x10   : > { %v260_v1 = vld [vmem:[%s238_s20] sm:$0xff]  ;;  %v261_v2 = vld [vmem:[%s238_s20 + $0x8] sm:$0x3]  ;;  %v262_v3 = vld [vmem:[%s238_s20 + $0x10] sm:$0xff]  ;;  %s243_s29 = scalar_lea.vmem %s1589_s2, %s1442_s17  ;;  %s251_s6 = scalar_lea.vmem %s1591_s4, %s1442_s17 }
  0x11   : > { %v1308_v4 = vpack.c.bf16 %v261_v2, %v260_v1  ;;  %v263_v5 = vld [vmem:[%s238_s20 + $0x18] sm:$0x3]  ;;  %v252_v6 = vld [vmem:[%s1458_s23] sm:$0xff]  ;;  %v254_v8 = vld [vmem:[%s1458_s23 + $0x10] sm:$0xff] }
  0x12   : > { %v1314_v7 = vpack.c.bf16 %v263_v5, %v262_v3  ;;  %1256 = vmatprep.mubr.msk.f32.mxu0 %vm277_vm0, %v252_v6  ;;  %v264_v9 = vld [vmem:[%s238_s20 + $0x20] sm:$0xff]  ;;  %v265_v10 = vld [vmem:[%s238_s20 + $0x28] sm:$0x3]  ;;  %1263 = vmatprep.mubr.msk.f32.mxu1 %vm277_vm0, %v254_v8  ;;  %v266_v12 = vld [vmem:[%s238_s20 + $0x30] sm:$0xff] }
  0x13   : > { %1310 = vmatprep.subr.msk.bf16.mxu0 %vm1450_vm1, %v1308_v4  ;;  %v1320_v11 = vpack.c.bf16 %v265_v10, %v264_v9  ;;  %v267_v13 = vld [vmem:[%s238_s20 + $0x38] sm:$0x3]  ;;  %v253_v15 = vld [vmem:[%s1458_s23 + $0x8] sm:$0x3]  ;;  %v256_v17 = vld [vmem:[%s1458_s23 + $0x20] sm:$0xff] }
  0x14   : > { %1316 = vmatprep.subr.msk.bf16.mxu1 %vm1450_vm1, %v1314_v7  ;;  %1313 = vmatpush3.bf16.xpose.msk.msra.mxu0 %vm1450_vm1, %v1308_v4  ;;  %v1326_v14 = vpack.c.bf16 %v267_v13, %v266_v12  ;;  %v255_v16 = vld [vmem:[%s1458_s23 + $0x18] sm:$0x3]  ;;  %v258_v18 = vld [vmem:[%s1458_s23 + $0x30] sm:$0xff]  ;;  %v257_v19 = vld [vmem:[%s1458_s23 + $0x28] sm:$0x3] }
  0x15   : > { %1319 = vmatpush3.bf16.xpose.msk.msra.mxu1 %vm1450_vm1, %v1314_v7  ;;  %1322 = vmatprep.subr.msk.bf16.mxu0 %vm1450_vm1, %v1320_v11  ;;  %v259_v20 = vld [vmem:[%s1458_s23 + $0x38] sm:$0x3] }
  0x16   : > { %1328 = vmatprep.subr.msk.bf16.mxu1 %vm1450_vm1, %v1326_v14 }
  0x1b   : > { %1257 = vmatmul.mubr.msk.f32.vlgmr.msra.gmra.mrb[0].mxu0 %vm277_vm0, %v253_v15 }
  0x1c   : > { %1264 = vmatmul.mubr.msk.f32.vlgmr.msra.gmra.mrb[0].mxu1 %vm277_vm0, %v255_v16  ;;  %1325 = vmatpush3.bf16.xpose.msk.msra.mxu0 %vm1450_vm1, %v1320_v11 }
  0x1d   : > { %1331 = vmatpush3.bf16.xpose.msk.msra.mxu1 %vm1450_vm1, %v1326_v14  ;;  %1270 = vmatprep.mubr.msk.f32.mxu0 %vm277_vm0, %v256_v17 }
  0x1e   : > { %1277 = vmatprep.mubr.msk.f32.mxu1 %vm277_vm0, %v258_v18 }
  0x23   : > { %1271 = vmatmul.mubr.msk.f32.vlgmr.msra.gmra.mrb[2].mxu0 %vm277_vm0, %v257_v19 }
  0x24   : > { %1278 = vmatmul.mubr.msk.f32.vlgmr.msra.gmra.mrb[2].mxu1 %vm277_vm0, %v259_v20 }
  0xee   : > { %v1258_v21 = vpop.f32.mrb[0].mxu0 }
  0xef   : > { %v627_v23 = vmul.f32 0.35355338, %v1258_v21  ;;  %v356_v24 = vpop.f32.mrb[1].mxu0  ;;  %v1265_v25 = vpop.f32.mrb[0].mxu1 }
  0xf0   : > { %v626_v26 = vmul.f32 0.35355338, %v356_v24  ;;  %v629_v27 = vmul.f32 0.35355338, %v1265_v25  ;;  %v443_v28 = vpop.f32.mrb[1].mxu1 }
  0xf1   : > { %v628_v29 = vmul.f32 0.35355338, %v443_v28  ;;  %v641_v30 = vadd.f32 %v1201_v22, %v627_v23 }
  0xf2   : > { %v640_v31 = vadd.f32 %v1201_v22, %v626_v26  ;;  %v643_v32 = vadd.f32 %v1201_v22, %v629_v27 }
  0xf3   : > { %v653_v33 = vsel %vm652_vm2, %v641_v30, -inf  ;;  %v642_v34 = vadd.f32 %v1201_v22, %v628_v29 }
  0xf4   : > { %654 = vmax.xlane.f32.xlu1 %v653_v33  ;;  %v649_v35 = vsel %vm648_vm3, %v640_v31, -inf  ;;  %v659_v36 = vsel %vm652_vm2, %v643_v32, -inf }
  0xf5   : > { %650 = vmax.xlane.f32.xlu0 %v649_v35  ;;  %v656_v38 = vsel %vm648_vm3, %v642_v34, -inf  ;;  %v271_v35 = vld [vmem:[%s243_s29 + $0x18] sm:$0x3] }
  0xf6   : > { %v1272_v37 = vpop.f32.mrb[2].mxu0 }
  0xf7   : > { %v1279_v39 = vpop.f32.mrb[2].mxu1  ;;  %v530_v40 = vpop.f32.mrb[3].mxu0  ;;  %v631_v41 = vmul.f32 0.35355338, %v1272_v37  ;;  %v272_v37 = vld [vmem:[%s243_s29 + $0x20] sm:$0xff] }
  0xf8   : > { %v630_v42 = vmul.f32 0.35355338, %v530_v40  ;;  %v617_v43 = vpop.f32.mrb[3].mxu1  ;;  %660 = vmax.xlane.f32.xlu1 %v659_v36  ;;  %v633_v44 = vmul.f32 0.35355338, %v1279_v39  ;;  %v274_v40 = vld [vmem:[%s243_s29 + $0x30] sm:$0xff] }
  0xf9   : > { %v632_v45 = vmul.f32 0.35355338, %v617_v43  ;;  %657 = vmax.xlane.f32.xlu0 %v656_v38  ;;  %v645_v49 = vadd.f32 %v1201_v22, %v631_v41  ;;  %v273_v38 = vld [vmem:[%s243_s29 + $0x28] sm:$0x3]  ;;  %v275_v41 = vld [vmem:[%s243_s29 + $0x38] sm:$0x3] }
  0xfa   : > { %v644_v46 = vadd.f32 %v1201_v22, %v630_v42  ;;  %v647_v51 = vadd.f32 %v1201_v22, %v633_v44  ;;  %v1344_v39 = vpack.c.bf16 %v273_v38, %v272_v37  ;;  %v1350_v42 = vpack.c.bf16 %v275_v41, %v274_v40 }
  0xfb   : > { %v646_v47 = vadd.f32 %v1201_v22, %v632_v45  ;;  %v665_v52 = vsel %vm652_vm2, %v645_v49, -inf }
  0xfc   : > { %v662_v48 = vsel %vm648_vm3, %v644_v46, -inf  ;;  %v671_v53 = vsel %vm652_vm2, %v647_v51, -inf }
  0xfd   : > { %v668_v50 = vsel %vm648_vm3, %v646_v47, -inf  ;;  %663 = vmax.xlane.f32.xlu0 %v662_v48 }
  0xfe   : > { %669 = vmax.xlane.f32.xlu1 %v668_v50 }
 0x101   : > { %666 = vmax.xlane.f32.xlu0 %v665_v52 }
 0x102   : > { %672 = vmax.xlane.f32.xlu1 %v671_v53 }
 0x181   : > { %v655_v54 = vpop.xlane.xlu1 %654 }
 0x182   : > { %v675_v55 = vsub.f32 %v641_v30, %v655_v54  ;;  %v651_v56 = vpop.xlane.xlu0 %650  ;;  %v268_v30 = vld [vmem:[%s243_s29] sm:$0xff] }
 0x183   : > { %v674_v57 = vsub.f32 %v640_v31, %v651_v56  ;;  %v269_v31 = vld [vmem:[%s243_s29 + $0x8] sm:$0x3] }
 0x184   : > { %v684_v58 = vmul.f32 1.442695, %v675_v55 }
 0x185   : > { %v682_v59 = vmul.f32 1.442695, %v674_v57  ;;  %v661_v60 = vpop.xlane.xlu1 %660 }
 0x186   : > { %1365 = vpow2.f32 %v684_v58  ;;  %v677_v61 = vsub.f32 %v643_v32, %v661_v60  ;;  %v658_v62 = vpop.xlane.xlu0 %657  ;;  %v1332_v32 = vpack.c.bf16 %v269_v31, %v268_v30 }
 0x187   : > { %v676_v63 = vsub.f32 %v642_v34, %v658_v62  ;;  %1367 = vpow2.f32 %v682_v59  ;;  %v270_v34 = vld [vmem:[%s243_s29 + $0x10] sm:$0xff] }
 0x188   : > { %v688_v0 = vmul.f32 1.442695, %v677_v61  ;;  %1334 = vmatprep.subr.msk.bf16.mxu0 %vm1540_vm6, %v1332_v32  ;;  %v1338_v36 = vpack.c.bf16 %v271_v35, %v270_v34 }
 0x189   : > { %v686_v1 = vmul.f32 1.442695, %v676_v63  ;;  %1337 = vmatpush3.bf16.msk.msra.mxu0 %vm1540_vm6, %v1332_v32 }
 0x18a   : > { %1369 = vpow2.f32 %v688_v0  ;;  %v664_v2 = vpop.xlane.xlu0 %663  ;;  %1340 = vmatprep.subr.msk.bf16.mxu1 %vm1540_vm6, %v1338_v36  ;;  %1346 = vmatprep.subr.msk.bf16.mxu0 %vm1540_vm6, %v1344_v39 }
 0x18b   : > { %v670_v3 = vpop.xlane.xlu1 %669  ;;  %v678_v4 = vsub.f32 %v644_v46, %v664_v2  ;;  %1371 = vpow2.f32 %v686_v1  ;;  %1343 = vmatpush3.bf16.msk.msra.mxu1 %vm1540_vm6, %v1338_v36 }
 0x18c   : > { %v680_v5 = vsub.f32 %v646_v47, %v670_v3  ;;  %1352 = vmatprep.subr.msk.bf16.mxu1 %vm1540_vm6, %v1350_v42 }
 0x18d   : > { %v690_v6 = vmul.f32 1.442695, %v678_v4 }
 0x18e   : > { %v694_v7 = vmul.f32 1.442695, %v680_v5  ;;  %v667_v8 = vpop.xlane.xlu0 %666 }
 0x18f   : > { %1373 = vpow2.f32 %v690_v6  ;;  %v673_v9 = vpop.xlane.xlu1 %672  ;;  %v679_v10 = vsub.f32 %v645_v49, %v667_v8 }
 0x190   : > { %v1504_v11 = vpop.eup %1365  ;;  %1375 = vpow2.f32 %v694_v7  ;;  %v681_v12 = vsub.f32 %v647_v51, %v673_v9 }
 0x191   : > { %v692_v13 = vmul.f32 1.442695, %v679_v10  ;;  %v701_v14 = vsel %vm652_vm2, %v1504_v11, 0.0  ;;  %v1508_v15 = vpop.eup %1367 }
 0x192   : > { %v696_v16 = vmul.f32 1.442695, %v681_v12  ;;  %702 = vadd.xlane.f32.xlu0 %v701_v14  ;;  %v698_v19 = vsel %vm648_vm3, %v1508_v15, 0.0 }
 0x193   : > { %1377 = vpow2.f32 %v692_v13 }
 0x194   : > { %v1510_v17 = vpop.eup %1369  ;;  %1379 = vpow2.f32 %v696_v16 }
 0x195   : > { %v707_v18 = vsel %vm652_vm2, %v1510_v17, 0.0  ;;  %v1516_v20 = vpop.eup %1371 }
 0x196   : > { %708 = vadd.xlane.f32.xlu1 %v707_v18  ;;  %699 = vadd.xlane.f32.xlu0 %v698_v19  ;;  %v704_v22 = vsel %vm648_vm3, %v1516_v20, 0.0 }
 0x199   : > { %v1518_v21 = vpop.eup %1373 }
 0x19a   : > { %v1522_v23 = vpop.eup %1375  ;;  %705 = vadd.xlane.f32.xlu1 %v704_v22  ;;  %v710_v24 = vsel %vm648_vm3, %v1518_v21, 0.0 }
 0x19b   : > { %711 = vadd.xlane.f32.xlu0 %v710_v24  ;;  %v716_v26 = vsel %vm648_vm3, %v1522_v23, 0.0 }
 0x19d   : > { %v1526_v25 = vpop.eup %1377 }
 0x19e   : > { %v1530_v27 = vpop.eup %1379  ;;  %717 = vadd.xlane.f32.xlu1 %v716_v26  ;;  %v713_v28 = vsel %vm652_vm2, %v1526_v25, 0.0 }
 0x19f   : > { %714 = vadd.xlane.f32.xlu0 %v713_v28  ;;  %v719_v29 = vsel %vm652_vm2, %v1530_v27, 0.0 }
 0x1a2   : > { %720 = vadd.xlane.f32.xlu1 %v719_v29 }
 0x21f   : > { %v703_v43 = vpop.xlane.xlu0 %702 }
 0x220   : > { %1381 = vrcp.f32 %v703_v43 }
 0x223   : > { %v709_v44 = vpop.xlane.xlu1 %708  ;;  %v700_v45 = vpop.xlane.xlu0 %699 }
 0x224   : > { %1383 = vrcp.f32 %v700_v45 }
 0x225   : > { %1385 = vrcp.f32 %v709_v44 }
 0x227   : > { %v706_v46 = vpop.xlane.xlu1 %705 }
 0x228   : > { %1387 = vrcp.f32 %v706_v46  ;;  %v712_v47 = vpop.xlane.xlu0 %711 }
 0x229   : > { %1389 = vrcp.f32 %v712_v47 }
 0x22a   : > { %v1382_v50 = vpop.eup %1381 }
 0x22b   : > { %v718_v48 = vpop.xlane.xlu1 %717  ;;  %v731_v55 = vmul.f32 %v1382_v50, %v1504_v11 }
 0x22c   : > { %1391 = vrcp.f32 %v718_v48  ;;  %v715_v49 = vpop.xlane.xlu0 %714 }
 0x22d   : > { %1393 = vrcp.f32 %v715_v49 }
 0x22e   : > { %v1384_v51 = vpop.eup %1383 }
 0x22f   : > { %v721_v52 = vpop.xlane.xlu1 %720  ;;  %v730_v53 = vmul.f32 %v1384_v51, %v1508_v15  ;;  %v1386_v54 = vpop.eup %1385 }
 0x230   : > { %1395 = vrcp.f32 %v721_v52  ;;  %v733_v59 = vmul.f32 %v1386_v54, %v1510_v17 }
 0x231   : > { %1284 = vmatprep.mubr.msk.f32.mxu0 %vm648_vm3, %v730_v53 }
 0x232   : > { %v1388_v56 = vpop.eup %1387  ;;  %1285 = vmatmul.mubr.msk.f32.vlgmr.msra.gmra.mrb[4].mxu0 %vm648_vm3, %v731_v55 }
 0x233   : > { %v1390_v57 = vpop.eup %1389  ;;  %v732_v58 = vmul.f32 %v1388_v56, %v1516_v20  ;;  %1349 = vmatpush3.bf16.msk.msra.mxu0 %vm1540_vm6, %v1344_v39 }
 0x234   : > { %v734_v60 = vmul.f32 %v1390_v57, %v1518_v21 }
 0x235   : > { %1291 = vmatprep.mubr.msk.f32.mxu1 %vm648_vm3, %v732_v58 }
 0x236   : > { %v1392_v61 = vpop.eup %1391  ;;  %1292 = vmatmul.mubr.msk.f32.vlgmr.msra.gmra.mrb[4].mxu1 %vm648_vm3, %v733_v59  ;;  %1298 = vmatprep.mubr.msk.f32.mxu0 %vm648_vm3, %v734_v60 }
 0x237   : > { %v1394_v62 = vpop.eup %1393  ;;  %1355 = vmatpush3.bf16.msk.msra.mxu1 %vm1540_vm6, %v1350_v42  ;;  %v736_v63 = vmul.f32 %v1392_v61, %v1522_v23 }
 0x238   : > { %v735_v0 = vmul.f32 %v1394_v62, %v1526_v25 }
 0x239   : > { %1305 = vmatprep.mubr.msk.f32.mxu1 %vm648_vm3, %v736_v63 }
 0x23a   : > { %v1396_v1 = vpop.eup %1395  ;;  %1299 = vmatmul.mubr.msk.f32.vlgmr.msra.gmra.mrb[6].mxu0 %vm648_vm3, %v735_v0 }
 0x23b   : > { %v737_v2 = vmul.f32 %v1396_v1, %v1530_v27 }
 0x23d   : > { %1306 = vmatmul.mubr.msk.f32.vlgmr.msra.gmra.mrb[6].mxu1 %vm648_vm3, %v737_v2 }
 0x305   : > { %v1286_v3 = vpop.f32.mrb[4].mxu0 }
 0x306   : > { %1077 = vst.msk [vmem:[%s251_s6 + $0x8] sm:$0x3] %vm1076_vm7, %v1286_v3  ;;  %v814_v4 = vpop.f32.mrb[5].mxu0 }
 0x307   : > { %1075 = vst.msk [vmem:[%s251_s6] sm:$0xff] %vm277_vm0, %v814_v4 }
 0x309   : > { %v1293_v5 = vpop.f32.mrb[4].mxu1 }
 0x30a   : > { %1079 = vst.msk [vmem:[%s251_s6 + $0x18] sm:$0x3] %vm1076_vm7, %v1293_v5  ;;  %v898_v6 = vpop.f32.mrb[5].mxu1 }
 0x30b   : > { %1078 = vst.msk [vmem:[%s251_s6 + $0x10] sm:$0xff] %vm277_vm0, %v898_v6 }
 0x30d   : > { %v1300_v7 = vpop.f32.mrb[6].mxu0 }
 0x30e   : > { %1081 = vst.msk [vmem:[%s251_s6 + $0x28] sm:$0x3] %vm1076_vm7, %v1300_v7  ;;  %v982_v8 = vpop.f32.mrb[7].mxu0 }
 0x30f   : > { %1080 = vst.msk [vmem:[%s251_s6 + $0x20] sm:$0xff] %vm277_vm0, %v982_v8 }
 0x310   : > { %v1307_v9 = vpop.f32.mrb[6].mxu1 }
 0x311   : > { %1083 = vst.msk [vmem:[%s251_s6 + $0x38] sm:$0x3] %vm1076_vm7, %v1307_v9  ;;  %v1066_v10 = vpop.f32.mrb[7].mxu1 }
 0x312   : > { %1082 = vst.msk [vmem:[%s251_s6 + $0x30] sm:$0xff] %vm277_vm0, %v1066_v10 }
 0x313 PF: > { %s14_s15 = sadd.s32 1, %s1403_s15  }
 0x314   : > { %p11_p4 = scmp.ge.s32.totalorder %s14_s15, 4  }
 0x316   :  { %13 = sbr.rel (!%p11_p4) target bundleno = 1 (0x1), region = 75 }

// kernel: predictor_forward.32
= control target key start
LH: loop header
LB: loop body
LE: loop exit
PB: predicated region body
PF: predicated region fallthrough
CT: control target
= control target key end

     0   :  { %v683_v0 = vmov 0.0|0.0   ;;  %vm684_vm0 = vmmov 0   ;;  %v685_v4 = vmov 0.0   ;;  %vm55_vm1 = vcmask 261120   ;;  %s909_s1 = inlined_call_operand.vmem [shape: f32[32,32], index: 1, kind: input, shape index: {}]   ;;  %s910_s0 = inlined_call_operand.vmem [shape: f32[20,32], index: 0, kind: input, shape index: {}]   ;;  %s911_s2 = inlined_call_operand.vmem [shape: f32[1,32], index: 2, kind: input, shape index: {}]   ;;  %s912_s3 = inlined_call_operand.vmem [shape: f32[20,32], index: 3, kind: input, shape index: {}]   ;;  %s913_s6 = inlined_call_operand.vmem [shape: f32[32,64], index: 6, kind: input, shape index: {}]   ;;  %s914_s8 = inlined_call_operand.vmem [shape: f32[64,32], index: 8, kind: input, shape index: {}]   ;;  %s915_s4 = inlined_call_operand.vmem [shape: f32[1,32], index: 4, kind: input, shape index: {}]   ;;  %s916_s5 = inlined_call_operand.vmem [shape: f32[1,32], index: 5, kind: input, shape index: {}]   ;;  %s917_s7 = inlined_call_operand.vmem [shape: f32[1,64], index: 7, kind: input, shape index: {}]   ;;  %s918_s9 = inlined_call_operand.vmem [shape: f32[1,32], index: 9, kind: input, shape index: {}]   ;;  %s919_s10 = inlined_call_operand.vmem [shape: f32[1,32], index: 10, kind: input, shape index: {}]   ;;  %s920_s11 = inlined_call_operand.vmem [shape: f32[1,32], index: 11, kind: input, shape index: {}]   ;;  %s921_s12 = inlined_call_operand.vmem [shape: f32[20,32], index: 12, kind: output, shape index: {}]  }
   0x1   :  { %632 = vmatprep.subr.bf16.mxu1 %v683_v0  ;;  %v44_v1 = vld [vmem:[%s909_s1] sm:$0xff]  ;;  %v45_v2 = vld [vmem:[%s909_s1 + $0x8] sm:$0xff]  ;;  %v46_v3 = vld [vmem:[%s909_s1 + $0x10] sm:$0xff]  ;;  %581 = vmatprep.mubr.msk.f32.mxu1 %vm684_vm0, %v685_v4  ;;  %vm159_vm2 = vcmask 257024   ;;  %vm352_vm9 = vcmask 523264  }
   0x2   :  { %v633_v5 = vpack.c.bf16 %v45_v2, %v44_v1  ;;  %v47_v6 = vld [vmem:[%s909_s1 + $0x18] sm:$0xff]  ;;  %644 = vmatprep.subr.bf16.mxu0 %v683_v0  ;;  %623 = vmatprep.mubr.msk.f32.mxu0 %vm684_vm0, %v685_v4  ;;  %v41_v8 = vld [vmem:[%s910_s0] sm:$0xff]  ;;  %v42_v9 = vld [vmem:[%s910_s0 + $0x8] sm:$0xff] }
   0x3   :  { %v636_v7 = vpack.c.bf16 %v47_v6, %v46_v3  ;;  %v43_v10 = vld [vmem:[%s910_s0 + $0x10] sm:$0xf]  ;;  %v532_v11 = vld [vmem:[%s911_s2] ss:$0 sm:$0xff]  ;;  %v146_v18 = vld [vmem:[%s912_s3 + $0x8] sm:$0xff] }
   0x4   :  { %634 = vmatpush3.bf16.msra.mxu1 %v633_v5  ;;  %v145_v13 = vld [vmem:[%s912_s3] sm:$0xff]  ;;  %v147_v24 = vld [vmem:[%s912_s3 + $0x10] sm:$0xf]  ;;  %v235_v46 = vld [vmem:[%s913_s6 + $0x8] sm:$0xff] }
   0x5   :  { %635 = vmatprep.subr.bf16.mxu1 %v683_v0  ;;  %v234_v45 = vld [vmem:[%s913_s6] sm:$0xff]  ;;  %v236_v48 = vld [vmem:[%s913_s6 + $0x10] sm:$0xff]  ;;  %v237_v49 = vld [vmem:[%s913_s6 + $0x18] sm:$0xff] }
   0x6   :  { %v639_v47 = vpack.c.bf16 %v235_v46, %v234_v45  ;;  %v642_v50 = vpack.c.bf16 %v237_v49, %v236_v48  ;;  %v337_v51 = vld [vmem:[%s914_s8] sm:$0xff]  ;;  %v338_v52 = vld [vmem:[%s914_s8 + $0x8] sm:$0xff]  ;;  %v339_v53 = vld [vmem:[%s914_s8 + $0x10] sm:$0xff] }
   0x7   :  { %v645_v54 = vpack.c.bf16 %v338_v52, %v337_v51  ;;  %v340_v55 = vld [vmem:[%s914_s8 + $0x18] sm:$0xff]  ;;  %v341_v57 = vld [vmem:[%s914_s8 + $0x20] sm:$0xff]  ;;  %v342_v58 = vld [vmem:[%s914_s8 + $0x28] sm:$0xff] }
   0x8   :  { %637 = vmatpush3.bf16.msra.mxu1 %v636_v7  ;;  %v648_v56 = vpack.c.bf16 %v340_v55, %v339_v53  ;;  %v651_v59 = vpack.c.bf16 %v342_v58, %v341_v57  ;;  %v542_v51 = vld [vmem:[%s918_s9] ss:$0 sm:$0xff] }
   0x9   :  { %638 = vmatprep.subr.bf16.mxu1 %v683_v0  ;;  %646 = vmatpush3.bf16.msra.mxu0 %v645_v54 }
   0xa   :  { %647 = vmatprep.subr.bf16.mxu0 %v683_v0 }
   0xb   :  { %582 = vmatmul.mubr.msk.f32.vlgmr.msra.gmra.mrb[0].mxu1 %vm55_vm1, %v41_v8 }
   0xc   :  { %584 = vmatprep.mubr.msk.f32.mxu1 %vm684_vm0, %v685_v4  ;;  %640 = vmatpush3.bf16.msra.mxu1 %v639_v47 }
   0xd   :  { %641 = vmatprep.subr.bf16.mxu1 %v683_v0  ;;  %649 = vmatpush3.bf16.msra.mxu0 %v648_v56 }
   0xe   :  { %650 = vmatprep.subr.bf16.mxu0 %v683_v0 }
   0xf   :  { %585 = vmatmul.mubr.msk.f32.gmra.mrb[2].mxu1 %vm55_vm1, %v42_v9 }
  0x10   :  { %587 = vmatprep.mubr.msk.f32.mxu1 %vm684_vm0, %v685_v4  ;;  %643 = vmatpush3.bf16.msra.mxu1 %v642_v50 }
  0x11   :  { %652 = vmatpush3.bf16.msra.mxu0 %v651_v59 }
  0x12   :  { %653 = vmatprep.subr.bf16.mxu0 %v683_v0 }
  0x13   :  { %588 = vmatmul.mubr.msk.f32.gmra.mrb[4].mxu1 %vm55_vm1, %v43_v10 }
  0x14   :  { %598 = vmatprep.mubr.msk.f32.mxu1 %vm684_vm0, %v685_v4 }
  0xde   :  { %v131_v12 = vpop.f32.mrb[0].mxu1 }
  0xdf   :  { %v132_v14 = vadd.f32 %v532_v11, %v131_v12  ;;  %v583_v15 = vpop.f32.mrb[1].mxu1 }
  0xe1   :  { %v148_v16 = vadd.f32 %v145_v13, %v132_v14 }
  0xe2   :  { %v136_v17 = vpop.f32.mrb[2].mxu1 }
  0xe3   :  { %v137_v19 = vadd.f32 %v532_v11, %v136_v17  ;;  %v586_v20 = vpop.f32.mrb[3].mxu1  ;;  %v153_v21 = vsel %vm55_vm1, %v148_v16, 0.0 }
  0xe4   :  { %154 = vadd.xlane.f32.xlu0 %v153_v21 }
  0xe5   :  { %v149_v22 = vadd.f32 %v146_v18, %v137_v19 }
  0xe6   :  { %v141_v23 = vpop.f32.mrb[4].mxu1 }
  0xe7   :  { %v142_v25 = vadd.f32 %v532_v11, %v141_v23  ;;  %v589_v26 = vpop.f32.mrb[5].mxu1  ;;  %v156_v27 = vsel %vm55_vm1, %v149_v22, 0.0 }
  0xe8   :  { %157 = vadd.xlane.f32.xlu0 %v156_v27 }
  0xe9   :  { %v150_v28 = vadd.f32 %v147_v24, %v142_v25  ;;  %v537_v24 = vld [vmem:[%s916_s5] ss:$0 sm:$0xff] }
  0xeb   :  { %v160_v29 = vsel %vm159_vm2, %v150_v28, 0.0 }
  0xec   :  { %161 = vadd.xlane.f32.xlu1 %v160_v29 }
 0x171   :  { %v155_v30 = vpop.xlane.xlu0 %154 }
 0x172   :  { %v164_v31 = vmul.f32 0.03125, %v155_v30 }
 0x174   :  { %v804_v32 = vsub.f32 %v148_v16, %v164_v31 }
 0x175   :  { %v158_v33 = vpop.xlane.xlu0 %157 }
 0x176   :  { %v165_v34 = vmul.f32 0.03125, %v158_v33  ;;  %v170_v35 = vmul.f32 %v804_v32, %v804_v32 }
 0x178   :  { %v808_v36 = vsub.f32 %v149_v22, %v165_v34  ;;  %v173_v37 = vsel %vm55_vm1, %v170_v35, 0.0  ;;  %v536_v22 = vld [vmem:[%s915_s4] ss:$0 sm:$0xff]  ;;  %v343_v35 = vld [vmem:[%s914_s8 + $0x30] sm:$0xff] }
 0x179   :  { %174 = vadd.xlane.f32.xlu1 %v173_v37  ;;  %v162_v38 = vpop.xlane.xlu1 %161 }
 0x17a   :  { %v166_v39 = vmul.f32 0.03125, %v162_v38  ;;  %v171_v40 = vmul.f32 %v808_v36, %v808_v36  ;;  %v538_v38 = vld [vmem:[%s917_s7] ss:$0 sm:$0xff] }
 0x17c   :  { %v813_v41 = vsub.f32 %v150_v28, %v166_v39  ;;  %v176_v42 = vsel %vm55_vm1, %v171_v40, 0.0 }
 0x17d   :  { %177 = vadd.xlane.f32.xlu0 %v176_v42 }
 0x17e   :  { %v172_v43 = vmul.f32 %v813_v41, %v813_v41 }
 0x180   :  { %v179_v44 = vsel %vm159_vm2, %v172_v43, 0.0 }
 0x181   :  { %180 = vadd.xlane.f32.xlu1 %v179_v44 }
 0x206   :  { %v175_v60 = vpop.xlane.xlu1 %174 }
 0x207   :  { %v183_v61 = vmul.f32 0.032258064, %v175_v60 }
 0x209   :  { %659 = vrsqrt.f32 %v183_v61  ;;  %vm188_vm3 = vcmp.eq.f32.partialorder %v183_v61, inf  ;;  %v191_v6 = vand.u32 2147483648, %v183_v61  ;;  %vm190_vm4 = vcmp.eq.f32.partialorder %v183_v61, 0.0 }
 0x20a   :  { %v178_v62 = vpop.xlane.xlu0 %177 }
 0x20b   :  { %v184_v63 = vmul.f32 0.032258064, %v178_v62 }
 0x20d   :  { %661 = vrsqrt.f32 %v184_v63  ;;  %vm195_vm5 = vcmp.eq.f32.partialorder %v184_v63, inf  ;;  %v198_v0 = vand.u32 2147483648, %v184_v63  ;;  %vm197_vm6 = vcmp.eq.f32.partialorder %v184_v63, 0.0 }
 0x20e   :  { %v181_v1 = vpop.xlane.xlu1 %180 }
 0x20f   :  { %v185_v2 = vmul.f32 0.032258064, %v181_v1 }
 0x211   :  { %663 = vrsqrt.f32 %v185_v2  ;;  %vm202_vm7 = vcmp.eq.f32.partialorder %v185_v2, inf  ;;  %v205_v17 = vand.u32 2147483648, %v185_v2  ;;  %vm204_vm8 = vcmp.eq.f32.partialorder %v185_v2, 0.0 }
 0x213   :  { %v660_v3 = vpop.eup %659 }
 0x214   :  { %v187_v5 = vmul.f32 %v660_v3, %v183_v61 }
 0x216   :  { %v189_v7 = vsel %vm188_vm3, %v183_v61, %v187_v5 }
 0x217   :  { %v662_v8 = vpop.eup %661  ;;  %v192_v9 = vsel %vm190_vm4, %v191_v6, %v189_v7 }
 0x218   :  { %v207_v10 = vadd.f32 1e-12, %v192_v9  ;;  %v194_v11 = vmul.f32 %v662_v8, %v184_v63 }
 0x21a   :  { %665 = vrcp.f32 %v207_v10  ;;  %v196_v12 = vsel %vm195_vm5, %v184_v63, %v194_v11 }
 0x21b   :  { %v664_v13 = vpop.eup %663  ;;  %v199_v14 = vsel %vm197_vm6, %v198_v0, %v196_v12 }
 0x21c   :  { %v208_v15 = vadd.f32 1e-12, %v199_v14  ;;  %v201_v16 = vmul.f32 %v664_v13, %v185_v2 }
 0x21e   :  { %667 = vrcp.f32 %v208_v15  ;;  %v203_v18 = vsel %vm202_vm7, %v185_v2, %v201_v16 }
 0x21f   :  { %v206_v19 = vsel %vm204_vm8, %v205_v17, %v203_v18 }
 0x220   :  { %v209_v20 = vadd.f32 1e-12, %v206_v19 }
 0x222   :  { %669 = vrcp.f32 %v209_v20 }
 0x224   :  { %v666_v21 = vpop.eup %665 }
 0x225   :  { %v211_v23 = vmul.f32 %v666_v21, %v804_v32 }
 0x227   :  { %v222_v25 = vmul.f32 %v536_v22, %v211_v23 }
 0x228   :  { %v668_v26 = vpop.eup %667 }
 0x229   :  { %v231_v27 = vadd.f32 %v537_v24, %v222_v25  ;;  %v213_v28 = vmul.f32 %v668_v26, %v808_v36  ;;  %v344_v36 = vld [vmem:[%s914_s8 + $0x38] sm:$0xff] }
 0x22a   :  { %v654_v37 = vpack.c.bf16 %v344_v36, %v343_v35 }
 0x22b   :  { %599 = vmatmul.mubr.msk.f32.vlgmr.msra.gmra.mrb[6].mxu1 %vm55_vm1, %v231_v27  ;;  %v223_v29 = vmul.f32 %v536_v22, %v213_v28 }
 0x22c   :  { %v670_v30 = vpop.eup %669  ;;  %601 = vmatprep.mubr.msk.f32.mxu1 %vm684_vm0, %v685_v4  ;;  %655 = vmatpush3.bf16.msra.mxu0 %v654_v37 }
 0x22d   :  { %v232_v31 = vadd.f32 %v537_v24, %v223_v29  ;;  %v215_v33 = vmul.f32 %v670_v30, %v813_v41 }
 0x22f   :  { %602 = vmatmul.mubr.msk.f32.gmra.mrb[8].mxu1 %vm55_vm1, %v232_v31  ;;  %v224_v32 = vmul.f32 %v536_v22, %v215_v33 }
 0x230   :  { %604 = vmatprep.mubr.msk.f32.mxu1 %vm684_vm0, %v685_v4 }
 0x231   :  { %v233_v34 = vadd.f32 %v537_v24, %v224_v32 }
 0x233   :  { %605 = vmatmul.mubr.msk.f32.gmra.mrb[10].mxu1 %vm55_vm1, %v233_v34 }
 0x2fe   :  { %v320_v39 = vpop.f32.mrb[6].mxu1 }
 0x2ff   :  { %v321_v40 = vadd.f32 %v538_v38, %v320_v39  ;;  %v600_v41 = vpop.f32.mrb[7].mxu1 }
 0x301   :  { %v334_v42 = vmax.f32 %v321_v40, 0.0 }
 0x302   :  { %v325_v43 = vpop.f32.mrb[8].mxu1 }
 0x303   :  { %v326_v44 = vadd.f32 %v538_v38, %v325_v43  ;;  %v603_v45 = vpop.f32.mrb[9].mxu1  ;;  %624 = vmatmul.mubr.msk.f32.vlgmr.msra.gmra.mrb[0].mxu0 %vm352_vm9, %v334_v42  ;;  %v546_v43 = vld [vmem:[%s919_s10] ss:$0 sm:$0xff] }
 0x304   :  { %626 = vmatprep.mubr.msk.f32.mxu0 %vm684_vm0, %v685_v4  ;;  %v547_v45 = vld [vmem:[%s920_s11] ss:$0 sm:$0xff] }
 0x305   :  { %v335_v46 = vmax.f32 %v326_v44, 0.0 }
 0x306   :  { %v330_v47 = vpop.f32.mrb[10].mxu1 }
 0x307   :  { %v331_v48 = vadd.f32 %v538_v38, %v330_v47  ;;  %v606_v49 = vpop.f32.mrb[11].mxu1  ;;  %627 = vmatmul.mubr.msk.f32.gmra.mrb[2].mxu0 %vm352_vm9, %v335_v46 }
 0x308   :  { %629 = vmatprep.mubr.msk.f32.mxu0 %vm684_vm0, %v685_v4 }
 0x309   :  { %v336_v50 = vmax.f32 %v331_v48, 0.0 }
 0x30b   :  { %630 = vmatmul.mubr.msk.f32.gmra.mrb[4].mxu0 %vm352_vm9, %v336_v50 }
 0x3d6   :  { %v428_v52 = vpop.f32.mrb[0].mxu0 }
 0x3d7   :  { %v429_v53 = vadd.f32 %v542_v51, %v428_v52  ;;  %v625_v54 = vpop.f32.mrb[1].mxu0 }
 0x3d9   :  { %v442_v55 = vadd.f32 %v429_v53, %v231_v27 }
 0x3da   :  { %v433_v56 = vpop.f32.mrb[2].mxu0 }
 0x3db   :  { %v434_v57 = vadd.f32 %v542_v51, %v433_v56  ;;  %v628_v58 = vpop.f32.mrb[3].mxu0  ;;  %v447_v59 = vsel %vm55_vm1, %v442_v55, 0.0 }
 0x3dc   :  { %448 = vadd.xlane.f32.xlu0 %v447_v59 }
 0x3dd   :  { %v443_v60 = vadd.f32 %v434_v57, %v232_v31 }
 0x3de   :  { %v438_v61 = vpop.f32.mrb[4].mxu0 }
 0x3df   :  { %v439_v62 = vadd.f32 %v542_v51, %v438_v61  ;;  %v631_v4 = vpop.f32.mrb[5].mxu0  ;;  %v450_v63 = vsel %vm55_vm1, %v443_v60, 0.0 }
 0x3e0   :  { %451 = vadd.xlane.f32.xlu1 %v450_v63 }
 0x3e1   :  { %v444_v1 = vadd.f32 %v439_v62, %v233_v34 }
 0x3e3   :  { %v453_v2 = vsel %vm159_vm2, %v444_v1, 0.0 }
 0x3e4   :  { %454 = vadd.xlane.f32.xlu0 %v453_v2 }
 0x469   :  { %v449_v3 = vpop.xlane.xlu0 %448 }
 0x46a   :  { %v456_v5 = vmul.f32 0.03125, %v449_v3 }
 0x46c   :  { %v459_v6 = vsub.f32 %v442_v55, %v456_v5 }
 0x46d   :  { %v452_v7 = vpop.xlane.xlu1 %451 }
 0x46e   :  { %v457_v8 = vmul.f32 0.03125, %v452_v7  ;;  %v462_v9 = vmul.f32 %v459_v6, %v459_v6 }
 0x470   :  { %v460_v10 = vsub.f32 %v443_v60, %v457_v8  ;;  %v465_v11 = vsel %vm55_vm1, %v462_v9, 0.0 }
 0x471   :  { %466 = vadd.xlane.f32.xlu1 %v465_v11  ;;  %v455_v0 = vpop.xlane.xlu0 %454 }
 0x472   :  { %v458_v12 = vmul.f32 0.03125, %v455_v0  ;;  %v463_v13 = vmul.f32 %v460_v10, %v460_v10 }
 0x474   :  { %v461_v14 = vsub.f32 %v444_v1, %v458_v12  ;;  %v468_v15 = vsel %vm55_vm1, %v463_v13, 0.0 }
 0x475   :  { %469 = vadd.xlane.f32.xlu0 %v468_v15 }
 0x476   :  { %v464_v16 = vmul.f32 %v461_v14, %v461_v14 }
 0x478   :  { %v471_v17 = vsel %vm159_vm2, %v464_v16, 0.0 }
 0x479   :  { %472 = vadd.xlane.f32.xlu1 %v471_v17 }
 0x4fe   :  { %v467_v18 = vpop.xlane.xlu1 %466 }
 0x4ff   :  { %v474_v19 = vmul.f32 0.032258064, %v467_v18 }
 0x501   :  { %671 = vrsqrt.f32 %v474_v19  ;;  %vm479_vm10 = vcmp.eq.f32.partialorder %v474_v19, inf  ;;  %v482_v26 = vand.u32 2147483648, %v474_v19  ;;  %vm481_vm11 = vcmp.eq.f32.partialorder %v474_v19, 0.0 }
 0x502   :  { %v470_v20 = vpop.xlane.xlu0 %469 }
 0x503   :  { %v475_v21 = vmul.f32 0.032258064, %v470_v20 }
 0x505   :  { %673 = vrsqrt.f32 %v475_v21  ;;  %vm486_vm12 = vcmp.eq.f32.partialorder %v475_v21, inf  ;;  %v489_v33 = vand.u32 2147483648, %v475_v21  ;;  %vm488_vm13 = vcmp.eq.f32.partialorder %v475_v21, 0.0 }
 0x506   :  { %v473_v22 = vpop.xlane.xlu1 %472 }
 0x507   :  { %v476_v23 = vmul.f32 0.032258064, %v473_v22 }
 0x509   :  { %675 = vrsqrt.f32 %v476_v23  ;;  %vm493_vm14 = vcmp.eq.f32.partialorder %v476_v23, inf  ;;  %v496_v38 = vand.u32 2147483648, %v476_v23  ;;  %vm495_vm15 = vcmp.eq.f32.partialorder %v476_v23, 0.0 }
 0x50b   :  { %v672_v24 = vpop.eup %671 }
 0x50c   :  { %v478_v25 = vmul.f32 %v672_v24, %v474_v19 }
 0x50e   :  { %v480_v27 = vsel %vm479_vm10, %v474_v19, %v478_v25 }
 0x50f   :  { %v674_v28 = vpop.eup %673  ;;  %v483_v29 = vsel %vm481_vm11, %v482_v26, %v480_v27 }
 0x510   :  { %v498_v30 = vadd.f32 1e-12, %v483_v29  ;;  %v485_v31 = vmul.f32 %v674_v28, %v475_v21 }
 0x512   :  { %677 = vrcp.f32 %v498_v30  ;;  %v487_v32 = vsel %vm486_vm12, %v475_v21, %v485_v31 }
 0x513   :  { %v676_v34 = vpop.eup %675  ;;  %v490_v35 = vsel %vm488_vm13, %v489_v33, %v487_v32 }
 0x514   :  { %v499_v36 = vadd.f32 1e-12, %v490_v35  ;;  %v492_v37 = vmul.f32 %v676_v34, %v476_v23 }
 0x516   :  { %679 = vrcp.f32 %v499_v36  ;;  %v494_v39 = vsel %vm493_vm14, %v476_v23, %v492_v37 }
 0x517   :  { %v497_v40 = vsel %vm495_vm15, %v496_v38, %v494_v39 }
 0x518   :  { %v500_v41 = vadd.f32 1e-12, %v497_v40 }
 0x51a   :  { %681 = vrcp.f32 %v500_v41 }
 0x51c   :  { %v678_v42 = vpop.eup %677 }
 0x51d   :  { %v502_v44 = vmul.f32 %v678_v42, %v459_v6 }
 0x51f   :  { %v513_v46 = vmul.f32 %v546_v43, %v502_v44 }
 0x520   :  { %v680_v47 = vpop.eup %679 }
 0x521   :  { %v522_v48 = vadd.f32 %v547_v45, %v513_v46  ;;  %v504_v49 = vmul.f32 %v680_v47, %v460_v10 }
 0x523   :  { %525 = vst.msk [vmem:[%s921_s12] sm:$0xff] %vm55_vm1, %v522_v48  ;;  %v514_v50 = vmul.f32 %v546_v43, %v504_v49 }
 0x524   :  { %v682_v51 = vpop.eup %681 }
 0x525   :  { %v523_v52 = vadd.f32 %v547_v45, %v514_v50  ;;  %v506_v53 = vmul.f32 %v682_v51, %v461_v14 }
 0x527   :  { %526 = vst.msk [vmem:[%s921_s12 + $0x8] sm:$0xff] %vm55_vm1, %v523_v52  ;;  %v515_v54 = vmul.f32 %v546_v43, %v506_v53 }
 0x529   :  { %v524_v55 = vadd.f32 %v547_v45, %v515_v54 }
 0x52b   :  { %527 = vst.msk [vmem:[%s921_s12 + $0x10] sm:$0xf] %vm159_vm2, %v524_v55 }

// kernel: predictor_forward.48
= control target key start
LH: loop header
LB: loop body
LE: loop exit
PB: predicated region body
PF: predicated region fallthrough
CT: control target
= control target key end

     0   :  { %v168_v0 = vmov 0.0|0.0   ;;  %vm169_vm0 = vmmov 0   ;;  %v170_v6 = vmov 0.0   ;;  %vm28_vm1 = vcmask 261120   ;;  %s227_s1 = inlined_call_operand.vmem [shape: f32[32,64], index: 1, kind: input, shape index: {}]   ;;  %s228_s0 = inlined_call_operand.vmem [shape: f32[20,32], index: 0, kind: input, shape index: {}]   ;;  %s229_s2 = inlined_call_operand.vmem [shape: f32[1,64], index: 2, kind: input, shape index: {}]   ;;  %s230_s3 = inlined_call_operand.vmem [shape: f32[20,64], index: 3, kind: output, shape index: {}]  }
   0x1   :  { %161 = vmatprep.subr.bf16.mxu1 %v168_v0  ;;  %v17_v1 = vld [vmem:[%s227_s1] sm:$0xff]  ;;  %v18_v2 = vld [vmem:[%s227_s1 + $0x8] sm:$0xff]  ;;  %155 = vmatprep.subr.bf16.mxu0 %v168_v0  ;;  %v19_v3 = vld [vmem:[%s227_s1 + $0x10] sm:$0xff]  ;;  %vm118_vm2 = vcmask 523264   ;;  %vm121_vm3 = vcmask 519168  }
   0x2   :  { %v156_v4 = vpack.c.bf16 %v18_v2, %v17_v1  ;;  %v20_v5 = vld [vmem:[%s227_s1 + $0x18] sm:$0xff]  ;;  %149 = vmatprep.mubr.msk.f32.mxu1 %vm169_vm0, %v170_v6  ;;  %146 = vmatprep.mubr.msk.f32.mxu0 %vm169_vm0, %v170_v6  ;;  %v15_v8 = vld [vmem:[%s228_s0 + $0x8] sm:$0xff]  ;;  %v14_v9 = vld [vmem:[%s228_s0] sm:$0xff] }
   0x3   :  { %v159_v7 = vpack.c.bf16 %v20_v5, %v19_v3  ;;  %v16_v10 = vld [vmem:[%s228_s0 + $0x10] sm:$0xf]  ;;  %v127_v11 = vld [vmem:[%s229_s2] ss:$0 sm:$0xff] }
   0x4   :  { %163 = vmatpush3.bf16.msra.mxu1 %v156_v4  ;;  %157 = vmatpush3.bf16.msra.mxu0 %v156_v4 }
   0x5   :  { %162 = vmatprep.subr.bf16.mxu1 %v168_v0  ;;  %158 = vmatprep.subr.bf16.mxu0 %v168_v0 }
   0x8   :  { %164 = vmatpush3.bf16.msra.mxu1 %v159_v7  ;;  %160 = vmatpush3.bf16.msra.mxu0 %v159_v7 }
   0xb   :  { %150 = vmatmul.mubr.msk.f32.vlgmr.msra.gmra.mrb[0].mxu1 %vm28_vm1, %v15_v8  ;;  %147 = vmatmul.mubr.msk.f32.vlgmr.msra.gmra.mrb[0].mxu0 %vm28_vm1, %v14_v9 }
   0xc   :  { %152 = vmatprep.mubr.msk.f32.mxu1 %vm169_vm0, %v170_v6 }
   0xf   :  { %153 = vmatmul.mubr.msk.f32.gmra.mrb[2].mxu1 %vm28_vm1, %v16_v10 }
  0xde   :  { %v109_v12 = vpop.f32.mrb[0].mxu1  ;;  %v104_v13 = vpop.f32.mrb[0].mxu0 }
  0xdf   :  { %v110_v14 = vadd.f32 %v127_v11, %v109_v12  ;;  %v151_v15 = vpop.f32.mrb[1].mxu1  ;;  %v105_v16 = vadd.f32 %v127_v11, %v104_v13  ;;  %v148_v17 = vpop.f32.mrb[1].mxu0 }
  0xe1   :  { %120 = vst.msk [vmem:[%s230_s3 + $0x8] sm:$0xff] %vm118_vm2, %v110_v14  ;;  %119 = vst.msk [vmem:[%s230_s3] sm:$0xff] %vm118_vm2, %v105_v16 }
  0xe2   :  { %v114_v18 = vpop.f32.mrb[2].mxu1 }
  0xe3   :  { %v115_v19 = vadd.f32 %v127_v11, %v114_v18  ;;  %v154_v20 = vpop.f32.mrb[3].mxu1 }
  0xe5   :  { %122 = vst.msk [vmem:[%s230_s3 + $0x10] sm:$0xf] %vm121_vm3, %v115_v19 }

// kernel: predictor_forward.34
= control target key start
LH: loop header
LB: loop body
LE: loop exit
PB: predicated region body
PF: predicated region fallthrough
CT: control target
= control target key end

     0   :  { %s1520_s18 = smov 0   ;;  %s1698_s0 = inlined_call_operand.vmem [shape: f32[2,4,10,8], index: 0, kind: input, shape index: {}]   ;;  %s1699_s1 = inlined_call_operand.vmem [shape: f32[2,4,10,8], index: 1, kind: input, shape index: {}]   ;;  %s1700_s2 = inlined_call_operand.vmem [shape: f32[2,4,10,8], index: 2, kind: input, shape index: {}]   ;;  %s1701_s3 = inlined_call_operand.vmem [shape: f32[2,1,10], index: 3, kind: input, shape index: {}]   ;;  %s1702_s4 = inlined_call_operand.vmem [shape: f32[2,4,10,8], index: 4, kind: output, shape index: {0}]   ;;  %s1703_s5 = inlined_call_operand.vmem [shape: f32[2,4,10,10], index: 5, kind: output, shape index: {1}]  }
   0x1 LB: > { %s1253_s19 = sadd.s32 4294967295, %s1487_s18   ;;  %p1257_p0 = scmp.ge.s32.totalorder %s1487_s18, 1  ;;  %s1487_s18 = sphi %s1520_s18, %s16_s18  }
   0x2   : > { %p218_p1 = scmp.lt.s32.totalorder %s1487_s18, 3 }
   0x4   : > { %p219_p2 = pnand %p1257_p0, %p218_p1 }
   0x5   : > { %p264_p3 = scmp.lt.s32.totalorder (!%p219_p2), %s1253_s19, 1  ;;  %vm317_vm0 = vcmask (!%p219_p2), 64512   ;;  %vm692_vm2 = vcmask (!%p219_p2), 74752   ;;  %vm688_vm3 = vcmask (!%p219_p2), 80896   ;;  %vm784_vm4 = vcmask (!%p219_p2), 1041408  }
   0x6   : > { %222 = sbr.rel (%p219_p2) target bundleno = 787 (0x313), region = 36  ;;  %vm1539_vm1 = vmpackc.low (!%p219_p2), %vm317_vm0, %vm317_vm0  ;;  %vm1489_vm5 = vmmov (!%p219_p2), 1   ;;  %vm1116_vm7 = vcmask (!%p219_p2), 58368  }
   0x7   : > { %vm1629_vm6 = vmpackc.low (!%p219_p2), %vm784_vm4, %vm1489_vm5 }
   0xd   : > { %s1709_s19 = smov (!%p264_p3, %s1253_s19), 1 }
   0xe   : > { %s1531_s20 = sshll.u32 %s1709_s19, 6  ;;  %s281_s29 = scalar_lea.vmem %s1701_s3, %s1709_s19 }
   0xf   : > { %s273_s23 = scalar_lea.vmem %s1699_s1, %s1531_s20  ;;  %s1547_s26 = scalar_lea.vmem %s1698_s0, %s1531_s20  ;;  %v1284_v22 = vld [vmem:[%s281_s29] ss:$0 sm:$0xff] }
  0x10   : > { %v300_v1 = vld [vmem:[%s273_s23] sm:$0xff]  ;;  %v301_v2 = vld [vmem:[%s273_s23 + $0x8] sm:$0x3]  ;;  %v302_v3 = vld [vmem:[%s273_s23 + $0x10] sm:$0xff]  ;;  %s278_s7 = scalar_lea.vmem %s1700_s2, %s1531_s20  ;;  %s1649_s10 = scalar_lea.vmem %s1703_s5, %s1531_s20 }
  0x11   : > { %v1392_v4 = vpack.c.bf16 %v301_v2, %v300_v1  ;;  %v303_v5 = vld [vmem:[%s273_s23 + $0x18] sm:$0x3]  ;;  %v292_v6 = vld [vmem:[%s1547_s26] sm:$0xff]  ;;  %v294_v8 = vld [vmem:[%s1547_s26 + $0x10] sm:$0xff]  ;;  %s286_s13 = scalar_lea.vmem %s1702_s4, %s1531_s20 }
  0x12   : > { %v1398_v7 = vpack.c.bf16 %v303_v5, %v302_v3  ;;  %1340 = vmatprep.mubr.msk.f32.mxu0 %vm317_vm0, %v292_v6  ;;  %v304_v9 = vld [vmem:[%s273_s23 + $0x20] sm:$0xff]  ;;  %v305_v10 = vld [vmem:[%s273_s23 + $0x28] sm:$0x3]  ;;  %1347 = vmatprep.mubr.msk.f32.mxu1 %vm317_vm0, %v294_v8  ;;  %v306_v12 = vld [vmem:[%s273_s23 + $0x30] sm:$0xff] }
  0x13   : > { %1394 = vmatprep.subr.msk.bf16.mxu0 %vm1539_vm1, %v1392_v4  ;;  %v1404_v11 = vpack.c.bf16 %v305_v10, %v304_v9  ;;  %v307_v13 = vld [vmem:[%s273_s23 + $0x38] sm:$0x3]  ;;  %v293_v15 = vld [vmem:[%s1547_s26 + $0x8] sm:$0x3]  ;;  %v296_v17 = vld [vmem:[%s1547_s26 + $0x20] sm:$0xff] }
  0x14   : > { %1400 = vmatprep.subr.msk.bf16.mxu1 %vm1539_vm1, %v1398_v7  ;;  %1397 = vmatpush3.bf16.xpose.msk.msra.mxu0 %vm1539_vm1, %v1392_v4  ;;  %v1410_v14 = vpack.c.bf16 %v307_v13, %v306_v12  ;;  %v295_v16 = vld [vmem:[%s1547_s26 + $0x18] sm:$0x3]  ;;  %v298_v18 = vld [vmem:[%s1547_s26 + $0x30] sm:$0xff]  ;;  %v297_v19 = vld [vmem:[%s1547_s26 + $0x28] sm:$0x3] }
  0x15   : > { %1403 = vmatpush3.bf16.xpose.msk.msra.mxu1 %vm1539_vm1, %v1398_v7  ;;  %1406 = vmatprep.subr.msk.bf16.mxu0 %vm1539_vm1, %v1404_v11  ;;  %v299_v20 = vld [vmem:[%s1547_s26 + $0x38] sm:$0x3] }
  0x16   : > { %1412 = vmatprep.subr.msk.bf16.mxu1 %vm1539_vm1, %v1410_v14 }
  0x1b   : > { %1341 = vmatmul.mubr.msk.f32.vlgmr.msra.gmra.mrb[0].mxu0 %vm317_vm0, %v293_v15 }
  0x1c   : > { %1348 = vmatmul.mubr.msk.f32.vlgmr.msra.gmra.mrb[0].mxu1 %vm317_vm0, %v295_v16  ;;  %1409 = vmatpush3.bf16.xpose.msk.msra.mxu0 %vm1539_vm1, %v1404_v11 }
  0x1d   : > { %1415 = vmatpush3.bf16.xpose.msk.msra.mxu1 %vm1539_vm1, %v1410_v14  ;;  %1354 = vmatprep.mubr.msk.f32.mxu0 %vm317_vm0, %v296_v17 }
  0x1e   : > { %1361 = vmatprep.mubr.msk.f32.mxu1 %vm317_vm0, %v298_v18 }
  0x23   : > { %1355 = vmatmul.mubr.msk.f32.vlgmr.msra.gmra.mrb[2].mxu0 %vm317_vm0, %v297_v19 }
  0x24   : > { %1362 = vmatmul.mubr.msk.f32.vlgmr.msra.gmra.mrb[2].mxu1 %vm317_vm0, %v299_v20 }
  0xee   : > { %v1342_v21 = vpop.f32.mrb[0].mxu0 }
  0xef   : > { %v667_v23 = vmul.f32 0.35355338, %v1342_v21  ;;  %v396_v24 = vpop.f32.mrb[1].mxu0  ;;  %v1349_v25 = vpop.f32.mrb[0].mxu1 }
  0xf0   : > { %v666_v26 = vmul.f32 0.35355338, %v396_v24  ;;  %v669_v27 = vmul.f32 0.35355338, %v1349_v25  ;;  %v483_v28 = vpop.f32.mrb[1].mxu1 }
  0xf1   : > { %v668_v29 = vmul.f32 0.35355338, %v483_v28  ;;  %v681_v30 = vadd.f32 %v1284_v22, %v667_v23 }
  0xf2   : > { %v680_v31 = vadd.f32 %v1284_v22, %v666_v26  ;;  %v683_v32 = vadd.f32 %v1284_v22, %v669_v27 }
  0xf3   : > { %v693_v33 = vsel %vm692_vm2, %v681_v30, -inf  ;;  %v682_v34 = vadd.f32 %v1284_v22, %v668_v29 }
  0xf4   : > { %694 = vmax.xlane.f32.xlu1 %v693_v33  ;;  %v689_v35 = vsel %vm688_vm3, %v680_v31, -inf  ;;  %v699_v36 = vsel %vm692_vm2, %v683_v32, -inf }
  0xf5   : > { %690 = vmax.xlane.f32.xlu0 %v689_v35  ;;  %v696_v38 = vsel %vm688_vm3, %v682_v34, -inf  ;;  %v311_v35 = vld [vmem:[%s278_s7 + $0x18] sm:$0x3] }
  0xf6   : > { %v1356_v37 = vpop.f32.mrb[2].mxu0 }
  0xf7   : > { %v1363_v39 = vpop.f32.mrb[2].mxu1  ;;  %v570_v40 = vpop.f32.mrb[3].mxu0  ;;  %v671_v41 = vmul.f32 0.35355338, %v1356_v37  ;;  %v312_v37 = vld [vmem:[%s278_s7 + $0x20] sm:$0xff] }
  0xf8   : > { %v670_v42 = vmul.f32 0.35355338, %v570_v40  ;;  %v657_v43 = vpop.f32.mrb[3].mxu1  ;;  %700 = vmax.xlane.f32.xlu1 %v699_v36  ;;  %v673_v44 = vmul.f32 0.35355338, %v1363_v39  ;;  %v314_v40 = vld [vmem:[%s278_s7 + $0x30] sm:$0xff] }
  0xf9   : > { %v672_v45 = vmul.f32 0.35355338, %v657_v43  ;;  %697 = vmax.xlane.f32.xlu0 %v696_v38  ;;  %v685_v49 = vadd.f32 %v1284_v22, %v671_v41  ;;  %v313_v38 = vld [vmem:[%s278_s7 + $0x28] sm:$0x3]  ;;  %v315_v41 = vld [vmem:[%s278_s7 + $0x38] sm:$0x3] }
  0xfa   : > { %v684_v46 = vadd.f32 %v1284_v22, %v670_v42  ;;  %v687_v51 = vadd.f32 %v1284_v22, %v673_v44  ;;  %v1428_v39 = vpack.c.bf16 %v313_v38, %v312_v37  ;;  %v1434_v42 = vpack.c.bf16 %v315_v41, %v314_v40 }
  0xfb   : > { %v686_v47 = vadd.f32 %v1284_v22, %v672_v45  ;;  %v705_v52 = vsel %vm692_vm2, %v685_v49, -inf }
  0xfc   : > { %v702_v48 = vsel %vm688_vm3, %v684_v46, -inf  ;;  %v711_v53 = vsel %vm692_vm2, %v687_v51, -inf }
  0xfd   : > { %v708_v50 = vsel %vm688_vm3, %v686_v47, -inf  ;;  %703 = vmax.xlane.f32.xlu0 %v702_v48 }
  0xfe   : > { %709 = vmax.xlane.f32.xlu1 %v708_v50 }
 0x101   : > { %706 = vmax.xlane.f32.xlu0 %v705_v52 }
 0x102   : > { %712 = vmax.xlane.f32.xlu1 %v711_v53 }
 0x181   : > { %v695_v54 = vpop.xlane.xlu1 %694 }
 0x182   : > { %v715_v55 = vsub.f32 %v681_v30, %v695_v54  ;;  %v691_v56 = vpop.xlane.xlu0 %690  ;;  %v308_v30 = vld [vmem:[%s278_s7] sm:$0xff] }
 0x183   : > { %v714_v57 = vsub.f32 %v680_v31, %v691_v56  ;;  %v309_v31 = vld [vmem:[%s278_s7 + $0x8] sm:$0x3] }
 0x184   : > { %v724_v58 = vmul.f32 1.442695, %v715_v55 }
 0x185   : > { %v722_v59 = vmul.f32 1.442695, %v714_v57  ;;  %v701_v60 = vpop.xlane.xlu1 %700 }
 0x186   : > { %1449 = vpow2.f32 %v724_v58  ;;  %v717_v61 = vsub.f32 %v683_v32, %v701_v60  ;;  %v698_v62 = vpop.xlane.xlu0 %697  ;;  %v1416_v32 = vpack.c.bf16 %v309_v31, %v308_v30 }
 0x187   : > { %v716_v63 = vsub.f32 %v682_v34, %v698_v62  ;;  %1451 = vpow2.f32 %v722_v59  ;;  %v310_v34 = vld [vmem:[%s278_s7 + $0x10] sm:$0xff] }
 0x188   : > { %v728_v0 = vmul.f32 1.442695, %v717_v61  ;;  %1418 = vmatprep.subr.msk.bf16.mxu0 %vm1629_vm6, %v1416_v32  ;;  %v1422_v36 = vpack.c.bf16 %v311_v35, %v310_v34 }
 0x189   : > { %v726_v1 = vmul.f32 1.442695, %v716_v63  ;;  %1421 = vmatpush3.bf16.msk.msra.mxu0 %vm1629_vm6, %v1416_v32 }
 0x18a   : > { %1453 = vpow2.f32 %v728_v0  ;;  %v704_v2 = vpop.xlane.xlu0 %703  ;;  %1424 = vmatprep.subr.msk.bf16.mxu1 %vm1629_vm6, %v1422_v36  ;;  %1430 = vmatprep.subr.msk.bf16.mxu0 %vm1629_vm6, %v1428_v39 }
 0x18b   : > { %v710_v3 = vpop.xlane.xlu1 %709  ;;  %v718_v4 = vsub.f32 %v684_v46, %v704_v2  ;;  %1455 = vpow2.f32 %v726_v1  ;;  %1427 = vmatpush3.bf16.msk.msra.mxu1 %vm1629_vm6, %v1422_v36 }
 0x18c   : > { %v720_v5 = vsub.f32 %v686_v47, %v710_v3  ;;  %1436 = vmatprep.subr.msk.bf16.mxu1 %vm1629_vm6, %v1434_v42 }
 0x18d   : > { %v730_v6 = vmul.f32 1.442695, %v718_v4 }
 0x18e   : > { %v734_v7 = vmul.f32 1.442695, %v720_v5  ;;  %v707_v8 = vpop.xlane.xlu0 %706 }
 0x18f   : > { %1457 = vpow2.f32 %v730_v6  ;;  %v713_v9 = vpop.xlane.xlu1 %712  ;;  %v719_v10 = vsub.f32 %v685_v49, %v707_v8 }
 0x190   : > { %v1593_v11 = vpop.eup %1449  ;;  %1459 = vpow2.f32 %v734_v7  ;;  %v721_v12 = vsub.f32 %v687_v51, %v713_v9 }
 0x191   : > { %v732_v13 = vmul.f32 1.442695, %v719_v10  ;;  %v741_v14 = vsel %vm692_vm2, %v1593_v11, 0.0  ;;  %v1597_v15 = vpop.eup %1451 }
 0x192   : > { %v736_v16 = vmul.f32 1.442695, %v721_v12  ;;  %742 = vadd.xlane.f32.xlu0 %v741_v14  ;;  %v738_v19 = vsel %vm688_vm3, %v1597_v15, 0.0 }
 0x193   : > { %1461 = vpow2.f32 %v732_v13 }
 0x194   : > { %v1599_v17 = vpop.eup %1453  ;;  %1463 = vpow2.f32 %v736_v16 }
 0x195   : > { %v747_v18 = vsel %vm692_vm2, %v1599_v17, 0.0  ;;  %v1605_v20 = vpop.eup %1455 }
 0x196   : > { %748 = vadd.xlane.f32.xlu1 %v747_v18  ;;  %739 = vadd.xlane.f32.xlu0 %v738_v19  ;;  %v744_v22 = vsel %vm688_vm3, %v1605_v20, 0.0 }
 0x199   : > { %v1607_v21 = vpop.eup %1457 }
 0x19a   : > { %v1611_v23 = vpop.eup %1459  ;;  %745 = vadd.xlane.f32.xlu1 %v744_v22  ;;  %v750_v24 = vsel %vm688_vm3, %v1607_v21, 0.0 }
 0x19b   : > { %751 = vadd.xlane.f32.xlu0 %v750_v24  ;;  %v756_v26 = vsel %vm688_vm3, %v1611_v23, 0.0 }
 0x19d   : > { %v1615_v25 = vpop.eup %1461 }
 0x19e   : > { %v1619_v27 = vpop.eup %1463  ;;  %757 = vadd.xlane.f32.xlu1 %v756_v26  ;;  %v753_v28 = vsel %vm692_vm2, %v1615_v25, 0.0 }
 0x19f   : > { %754 = vadd.xlane.f32.xlu0 %v753_v28  ;;  %v759_v29 = vsel %vm692_vm2, %v1619_v27, 0.0 }
 0x1a2   : > { %760 = vadd.xlane.f32.xlu1 %v759_v29 }
 0x21f   : > { %v743_v43 = vpop.xlane.xlu0 %742 }
 0x220   : > { %1465 = vrcp.f32 %v743_v43 }
 0x223   : > { %v749_v44 = vpop.xlane.xlu1 %748  ;;  %v740_v45 = vpop.xlane.xlu0 %739 }
 0x224   : > { %1467 = vrcp.f32 %v749_v44 }
 0x225   : > { %1469 = vrcp.f32 %v740_v45 }
 0x227   : > { %v746_v46 = vpop.xlane.xlu1 %745 }
 0x228   : > { %1471 = vrcp.f32 %v746_v46  ;;  %v752_v47 = vpop.xlane.xlu0 %751 }
 0x229   : > { %1473 = vrcp.f32 %v752_v47 }
 0x22a   : > { %v1466_v48 = vpop.eup %1465 }
 0x22b   : > { %v771_v49 = vmul.f32 %v1466_v48, %v1593_v11  ;;  %v758_v50 = vpop.xlane.xlu1 %757 }
 0x22c   : > { %1475 = vrcp.f32 %v758_v50  ;;  %v755_v51 = vpop.xlane.xlu0 %754 }
 0x22d   : > { %1125 = vst.msk [vmem:[%s1649_s10 + $0x8] sm:$0x3] %vm692_vm2, %v771_v49  ;;  %1477 = vrcp.f32 %v755_v51 }
 0x22e   : > { %v1468_v52 = vpop.eup %1467 }
 0x22f   : > { %v1470_v53 = vpop.eup %1469  ;;  %v773_v54 = vmul.f32 %v1468_v52, %v1599_v17  ;;  %v761_v55 = vpop.xlane.xlu1 %760 }
 0x230   : > { %1479 = vrcp.f32 %v761_v55  ;;  %v770_v56 = vmul.f32 %v1470_v53, %v1597_v15 }
 0x231   : > { %1127 = vst.msk [vmem:[%s1649_s10 + $0x18] sm:$0x3] %vm692_vm2, %v773_v54 }
 0x232   : > { %v1472_v57 = vpop.eup %1471  ;;  %1368 = vmatprep.mubr.msk.f32.mxu0 %vm688_vm3, %v770_v56  ;;  %1124 = vst.msk [vmem:[%s1649_s10] sm:$0xff] %vm688_vm3, %v770_v56 }
 0x233   : > { %v1474_v58 = vpop.eup %1473  ;;  %1369 = vmatmul.mubr.msk.f32.vlgmr.msra.gmra.mrb[4].mxu0 %vm688_vm3, %v771_v49  ;;  %v772_v59 = vmul.f32 %v1472_v57, %v1605_v20 }
 0x234   : > { %v774_v60 = vmul.f32 %v1474_v58, %v1607_v21  ;;  %1433 = vmatpush3.bf16.msk.msra.mxu0 %vm1629_vm6, %v1428_v39 }
 0x235   : > { %1375 = vmatprep.mubr.msk.f32.mxu1 %vm688_vm3, %v772_v59  ;;  %1126 = vst.msk [vmem:[%s1649_s10 + $0x10] sm:$0xff] %vm688_vm3, %v772_v59 }
 0x236   : > { %v1476_v61 = vpop.eup %1475  ;;  %1376 = vmatmul.mubr.msk.f32.vlgmr.msra.gmra.mrb[4].mxu1 %vm688_vm3, %v773_v54  ;;  %1382 = vmatprep.mubr.msk.f32.mxu0 %vm688_vm3, %v774_v60  ;;  %1128 = vst.msk [vmem:[%s1649_s10 + $0x20] sm:$0xff] %vm688_vm3, %v774_v60 }
 0x237   : > { %v1478_v62 = vpop.eup %1477  ;;  %1439 = vmatpush3.bf16.msk.msra.mxu1 %vm1629_vm6, %v1434_v42  ;;  %v776_v63 = vmul.f32 %v1476_v61, %v1611_v23 }
 0x238   : > { %v775_v0 = vmul.f32 %v1478_v62, %v1615_v25 }
 0x239   : > { %1389 = vmatprep.mubr.msk.f32.mxu1 %vm688_vm3, %v776_v63  ;;  %1130 = vst.msk [vmem:[%s1649_s10 + $0x30] sm:$0xff] %vm688_vm3, %v776_v63 }
 0x23a   : > { %v1480_v1 = vpop.eup %1479  ;;  %1129 = vst.msk [vmem:[%s1649_s10 + $0x28] sm:$0x3] %vm692_vm2, %v775_v0  ;;  %1383 = vmatmul.mubr.msk.f32.vlgmr.msra.gmra.mrb[6].mxu0 %vm688_vm3, %v775_v0 }
 0x23b   : > { %v777_v2 = vmul.f32 %v1480_v1, %v1619_v27 }
 0x23d   : > { %1131 = vst.msk [vmem:[%s1649_s10 + $0x38] sm:$0x3] %vm692_vm2, %v777_v2  ;;  %1390 = vmatmul.mubr.msk.f32.vlgmr.msra.gmra.mrb[6].mxu1 %vm688_vm3, %v777_v2 }
 0x306   : > { %v1370_v3 = vpop.f32.mrb[4].mxu0 }
 0x307   : > { %1117 = vst.msk [vmem:[%s286_s13 + $0x8] sm:$0x3] %vm1116_vm7, %v1370_v3  ;;  %v854_v4 = vpop.f32.mrb[5].mxu0 }
 0x308   : > { %1115 = vst.msk [vmem:[%s286_s13] sm:$0xff] %vm317_vm0, %v854_v4 }
 0x309   : > { %v1377_v5 = vpop.f32.mrb[4].mxu1 }
 0x30a   : > { %1119 = vst.msk [vmem:[%s286_s13 + $0x18] sm:$0x3] %vm1116_vm7, %v1377_v5  ;;  %v938_v6 = vpop.f32.mrb[5].mxu1 }
 0x30b   : > { %1118 = vst.msk [vmem:[%s286_s13 + $0x10] sm:$0xff] %vm317_vm0, %v938_v6 }
 0x30d   : > { %v1384_v7 = vpop.f32.mrb[6].mxu0 }
 0x30e   : > { %1121 = vst.msk [vmem:[%s286_s13 + $0x28] sm:$0x3] %vm1116_vm7, %v1384_v7  ;;  %v1022_v8 = vpop.f32.mrb[7].mxu0 }
 0x30f   : > { %1120 = vst.msk [vmem:[%s286_s13 + $0x20] sm:$0xff] %vm317_vm0, %v1022_v8 }
 0x310   : > { %v1391_v9 = vpop.f32.mrb[6].mxu1 }
 0x311   : > { %1123 = vst.msk [vmem:[%s286_s13 + $0x38] sm:$0x3] %vm1116_vm7, %v1391_v9  ;;  %v1106_v10 = vpop.f32.mrb[7].mxu1 }
 0x312   : > { %1122 = vst.msk [vmem:[%s286_s13 + $0x30] sm:$0xff] %vm317_vm0, %v1106_v10 }
 0x313 PF: > { %s16_s18 = sadd.s32 1, %s1487_s18  }
 0x314   : > { %p13_p4 = scmp.ge.s32.totalorder %s16_s18, 4  }
 0x316   :  { %15 = sbr.rel (!%p13_p4) target bundleno = 1 (0x1), region = 87 }

// kernel: predictor_forward.49
= control target key start
LH: loop header
LB: loop body
LE: loop exit
PB: predicated region body
PF: predicated region fallthrough
CT: control target
= control target key end

     0   :  { %s1263_s15 = smov 0   ;;  %s1372_s0 = inlined_call_operand.vmem [shape: f32[2,4,8,8], index: 0, kind: input, shape index: {}]   ;;  %s1373_s1 = inlined_call_operand.vmem [shape: f32[2,4,10,8], index: 1, kind: input, shape index: {}]   ;;  %s1374_s2 = inlined_call_operand.vmem [shape: f32[2,4,10,8], index: 2, kind: input, shape index: {}]   ;;  %s1375_s3 = inlined_call_operand.vmem [shape: f32[2,1,10], index: 3, kind: input, shape index: {}]   ;;  %s1376_s4 = inlined_call_operand.vmem [shape: f32[2,4,8,8], index: 4, kind: output, shape index: {}]  }
   0x1 LB: > { %s1046_s16 = sadd.s32 4294967295, %s1232_s15   ;;  %p1050_p0 = scmp.ge.s32.totalorder %s1232_s15, 1  ;;  %s1232_s15 = sphi %s1263_s15, %s14_s15  }
   0x2   : > { %p190_p1 = scmp.lt.s32.totalorder %s1232_s15, 3 }
   0x4   : > { %p191_p2 = pnand %p1050_p0, %p190_p1 }
   0x5   : > { %p229_p3 = scmp.lt.s32.totalorder (!%p191_p2), %s1046_s16, 1  ;;  %v1234_v0 = vmov (!%p191_p2), 0.0|0.0   ;;  %vm273_vm0 = vcmask (!%p191_p2), 64512   ;;  %vm1235_vm1 = vmmov (!%p191_p2), 0   ;;  %v1236_v1 = vmov (!%p191_p2), 0.0  }
   0x6   : > { %194 = sbr.rel (%p191_p2) target bundleno = 781 (0x30d), region = 36  ;;  %1166 = vmatprep.subr.bf16.mxu0 (!%p191_p2), %v1234_v0  ;;  %1170 = vmatprep.subr.bf16.mxu1 (!%p191_p2), %v1234_v0  ;;  %vm1287_vm2 = vmpackc.low (!%p191_p2), %vm273_vm0, %vm273_vm0  ;;  %vm604_vm3 = vcmask (!%p191_p2), 80896   ;;  %vm652_vm4 = vcmask (!%p191_p2), 1041408   ;;  %vm1237_vm5 = vmmov (!%p191_p2), 1  }
   0x7   : > { %1114 = vmatprep.mubr.msk.f32.mxu0 (!%p191_p2), %vm1235_vm1, %v1236_v1  ;;  %1121 = vmatprep.mubr.msk.f32.mxu1 (!%p191_p2), %vm1235_vm1, %v1236_v1  ;;  %vm1338_vm6 = vmpackc.low (!%p191_p2), %vm652_vm4, %vm1237_vm5 }
   0xd   : > { %s1382_s16 = smov (!%p229_p3, %s1046_s16), 1 }
   0xe   : > { %s1083_s17 = sshll.u32 %s1382_s16, 6  ;;  %s1082_s21 = sshll.u32 %s1382_s16, 5 }
   0xf   : > { %s238_s20 = scalar_lea.vmem %s1373_s1, %s1083_s17  ;;  %s233_s24 = scalar_lea.vmem %s1372_s0, %s1082_s21 }
  0x10   : > { %v256_v3 = vld [vmem:[%s238_s20] sm:$0xff]  ;;  %v257_v4 = vld [vmem:[%s238_s20 + $0x8] sm:$0x3]  ;;  %v258_v5 = vld [vmem:[%s238_s20 + $0x10] sm:$0xff]  ;;  %s246_s27 = scalar_lea.vmem %s1375_s3, %s1382_s16  ;;  %s243_s30 = scalar_lea.vmem %s1374_s2, %s1083_s17 }
  0x11   : > { %v1167_v6 = vpack.c.bf16 %v257_v4, %v256_v3  ;;  %v259_v7 = vld [vmem:[%s238_s20 + $0x18] sm:$0x3]  ;;  %v260_v9 = vld [vmem:[%s238_s20 + $0x20] sm:$0xff]  ;;  %v261_v10 = vld [vmem:[%s238_s20 + $0x28] sm:$0x3]  ;;  %s251_s7 = scalar_lea.vmem %s1376_s4, %s1082_s21 }
  0x12   : > { %v1171_v8 = vpack.c.bf16 %v259_v7, %v258_v5  ;;  %v262_v11 = vld [vmem:[%s238_s20 + $0x30] sm:$0xff]  ;;  %v263_v12 = vld [vmem:[%s238_s20 + $0x38] sm:$0x3]  ;;  %v252_v13 = vld [vmem:[%s233_s24] sm:$0xff]  ;;  %v1175_v14 = vpack.c.bf16 %v261_v10, %v260_v9 }
  0x13   : > { %1169 = vmatpush3.bf16.xpose.msk.msra.mxu0 %vm1287_vm2, %v1167_v6  ;;  %v253_v15 = vld [vmem:[%s233_s24 + $0x8] sm:$0xff]  ;;  %v1179_v16 = vpack.c.bf16 %v263_v12, %v262_v11  ;;  %v254_v17 = vld [vmem:[%s233_s24 + $0x10] sm:$0xff]  ;;  %v255_v18 = vld [vmem:[%s233_s24 + $0x18] sm:$0xff] }
  0x14   : > { %1173 = vmatpush3.bf16.xpose.msk.msra.mxu1 %vm1287_vm2, %v1171_v8  ;;  %1174 = vmatprep.subr.bf16.mxu0 %v1234_v0  ;;  %v1071_v20 = vld [vmem:[%s246_s27] ss:$0 sm:$0xff]  ;;  %v265_v61 = vld [vmem:[%s243_s30 + $0x8] sm:$0x3]  ;;  %v266_v2 = vld [vmem:[%s243_s30 + $0x10] sm:$0xff] }
  0x15   : > { %1178 = vmatprep.subr.bf16.mxu1 %v1234_v0  ;;  %v264_v60 = vld [vmem:[%s243_s30] sm:$0xff]  ;;  %v267_v3 = vld [vmem:[%s243_s30 + $0x18] sm:$0x3]  ;;  %v269_v9 = vld [vmem:[%s243_s30 + $0x28] sm:$0x3] }
  0x16   : > { %v1183_v62 = vpack.c.bf16 %v265_v61, %v264_v60  ;;  %v1187_v4 = vpack.c.bf16 %v267_v3, %v266_v2  ;;  %v268_v8 = vld [vmem:[%s243_s30 + $0x20] sm:$0xff] }
  0x17   : > { %v1191_v11 = vpack.c.bf16 %v269_v9, %v268_v8 }
  0x1a   : > { %1115 = vmatmul.mubr.msk.f32.vlgmr.msra.gmra.mrb[0].mxu0 %vm273_vm0, %v252_v13 }
  0x1b   : > { %1177 = vmatpush3.bf16.xpose.msk.msra.mxu0 %vm1287_vm2, %v1175_v14  ;;  %1122 = vmatmul.mubr.msk.f32.vlgmr.msra.gmra.mrb[0].mxu1 %vm273_vm0, %v253_v15  ;;  %v270_v14 = vld [vmem:[%s243_s30 + $0x30] sm:$0xff]  ;;  %v271_v15 = vld [vmem:[%s243_s30 + $0x38] sm:$0x3] }
  0x1c   : > { %1181 = vmatpush3.bf16.xpose.msk.msra.mxu1 %vm1287_vm2, %v1179_v16  ;;  %1128 = vmatprep.mubr.msk.f32.mxu0 %vm1235_vm1, %v1236_v1 }
  0x1d   : > { %1135 = vmatprep.mubr.msk.f32.mxu1 %vm1235_vm1, %v1236_v1  ;;  %1182 = vmatprep.subr.bf16.mxu0 %v1234_v0 }
  0x1e   : > { %1186 = vmatprep.subr.bf16.mxu1 %v1234_v0 }
  0x22   : > { %1129 = vmatmul.mubr.msk.f32.vlgmr.msra.gmra.mrb[2].mxu0 %vm273_vm0, %v254_v17 }
  0x23   : > { %1136 = vmatmul.mubr.msk.f32.vlgmr.msra.gmra.mrb[2].mxu1 %vm273_vm0, %v255_v18  ;;  %1142 = vmatprep.mubr.msk.f32.mxu0 %vm1235_vm1, %v1236_v1 }
  0x24   : > { %1149 = vmatprep.mubr.msk.f32.mxu1 %vm1235_vm1, %v1236_v1  ;;  %1185 = vmatpush3.bf16.msk.msra.mxu0 %vm1338_vm6, %v1183_v62 }
  0x25   : > { %1190 = vmatprep.subr.bf16.mxu0 %v1234_v0  ;;  %1189 = vmatpush3.bf16.msk.msra.mxu1 %vm1338_vm6, %v1187_v4 }
  0x26   : > { %1194 = vmatprep.subr.bf16.mxu1 %v1234_v0  ;;  %v1195_v0 = vpack.c.bf16 %v271_v15, %v270_v14 }
  0xed   : > { %v349_v19 = vpop.f32.mrb[0].mxu0 }
  0xee   : > { %v590_v21 = vmul.f32 0.35355338, %v349_v19  ;;  %v1116_v22 = vpop.f32.mrb[1].mxu0  ;;  %v428_v23 = vpop.f32.mrb[0].mxu1 }
  0xef   : > { %v591_v24 = vmul.f32 0.35355338, %v428_v23  ;;  %v1123_v25 = vpop.f32.mrb[1].mxu1 }
  0xf0   : > { %v600_v26 = vadd.f32 %v1071_v20, %v590_v21 }
  0xf1   : > { %v601_v27 = vadd.f32 %v1071_v20, %v591_v24 }
  0xf2   : > { %v605_v28 = vsel %vm604_vm3, %v600_v26, -inf }
  0xf3   : > { %606 = vmax.xlane.f32.xlu0 %v605_v28  ;;  %v608_v29 = vsel %vm604_vm3, %v601_v27, -inf }
  0xf5   : > { %v507_v30 = vpop.f32.mrb[2].mxu0 }
  0xf6   : > { %v592_v31 = vmul.f32 0.35355338, %v507_v30  ;;  %v1130_v32 = vpop.f32.mrb[3].mxu0  ;;  %v586_v33 = vpop.f32.mrb[2].mxu1 }
  0xf7   : > { %609 = vmax.xlane.f32.xlu0 %v608_v29  ;;  %v593_v34 = vmul.f32 0.35355338, %v586_v33  ;;  %v1137_v35 = vpop.f32.mrb[3].mxu1 }
  0xf8   : > { %v602_v36 = vadd.f32 %v1071_v20, %v592_v31 }
  0xf9   : > { %v603_v37 = vadd.f32 %v1071_v20, %v593_v34 }
  0xfa   : > { %v611_v38 = vsel %vm604_vm3, %v602_v36, -inf }
  0xfb   : > { %612 = vmax.xlane.f32.xlu1 %v611_v38  ;;  %v614_v39 = vsel %vm604_vm3, %v603_v37, -inf }
  0xff   : > { %615 = vmax.xlane.f32.xlu1 %v614_v39 }
 0x180   : > { %v607_v40 = vpop.xlane.xlu0 %606 }
 0x181   : > { %v617_v41 = vsub.f32 %v600_v26, %v607_v40 }
 0x183   : > { %v621_v42 = vmul.f32 1.442695, %v617_v41 }
 0x184   : > { %v610_v43 = vpop.xlane.xlu0 %609 }
 0x185   : > { %1210 = vpow2.f32 %v621_v42  ;;  %v618_v44 = vsub.f32 %v601_v27, %v610_v43 }
 0x187   : > { %v623_v45 = vmul.f32 1.442695, %v618_v44 }
 0x188   : > { %v613_v46 = vpop.xlane.xlu1 %612 }
 0x189   : > { %1212 = vpow2.f32 %v623_v45  ;;  %v619_v47 = vsub.f32 %v602_v36, %v613_v46 }
 0x18b   : > { %v625_v48 = vmul.f32 1.442695, %v619_v47 }
 0x18c   : > { %v616_v49 = vpop.xlane.xlu1 %615 }
 0x18d   : > { %1214 = vpow2.f32 %v625_v48  ;;  %v620_v50 = vsub.f32 %v603_v37, %v616_v49 }
 0x18f   : > { %v1211_v51 = vpop.eup %1210  ;;  %v627_v52 = vmul.f32 1.442695, %v620_v50 }
 0x190   : > { %v629_v53 = vsel %vm604_vm3, %v1211_v51, 0.0 }
 0x191   : > { %1216 = vpow2.f32 %v627_v52  ;;  %630 = vadd.xlane.f32.xlu0 %v629_v53 }
 0x193   : > { %v1213_v54 = vpop.eup %1212 }
 0x194   : > { %v632_v55 = vsel %vm604_vm3, %v1213_v54, 0.0 }
 0x195   : > { %633 = vadd.xlane.f32.xlu1 %v632_v55 }
 0x197   : > { %v1215_v56 = vpop.eup %1214 }
 0x198   : > { %v635_v57 = vsel %vm604_vm3, %v1215_v56, 0.0 }
 0x199   : > { %636 = vadd.xlane.f32.xlu0 %v635_v57 }
 0x19b   : > { %v1217_v58 = vpop.eup %1216 }
 0x19c   : > { %v638_v59 = vsel %vm604_vm3, %v1217_v58, 0.0 }
 0x19d   : > { %639 = vadd.xlane.f32.xlu1 %v638_v59 }
 0x21e   : > { %v631_v5 = vpop.xlane.xlu0 %630 }
 0x21f   : > { %1218 = vrcp.f32 %v631_v5 }
 0x222   : > { %v634_v6 = vpop.xlane.xlu1 %633 }
 0x223   : > { %1220 = vrcp.f32 %v634_v6 }
 0x226   : > { %v637_v7 = vpop.xlane.xlu0 %636 }
 0x227   : > { %1222 = vrcp.f32 %v637_v7 }
 0x229   : > { %v1219_v10 = vpop.eup %1218 }
 0x22a   : > { %v645_v12 = vmul.f32 %v1219_v10, %v1211_v51  ;;  %v640_v13 = vpop.xlane.xlu1 %639 }
 0x22b   : > { %1224 = vrcp.f32 %v640_v13 }
 0x22c   : > { %1143 = vmatmul.mubr.msk.f32.vlgmr.msra.gmra.mrb[4].mxu0 %vm604_vm3, %v645_v12 }
 0x22d   : > { %v1221_v16 = vpop.eup %1220  ;;  %1193 = vmatpush3.bf16.msk.msra.mxu0 %vm1338_vm6, %v1191_v11  ;;  %1156 = vmatprep.mubr.msk.f32.mxu0 %vm1235_vm1, %v1236_v1 }
 0x22e   : > { %v646_v17 = vmul.f32 %v1221_v16, %v1213_v54 }
 0x230   : > { %1150 = vmatmul.mubr.msk.f32.vlgmr.msra.gmra.mrb[4].mxu1 %vm604_vm3, %v646_v17 }
 0x231   : > { %v1223_v18 = vpop.eup %1222  ;;  %1197 = vmatpush3.bf16.msk.msra.mxu1 %vm1338_vm6, %v1195_v0  ;;  %1163 = vmatprep.mubr.msk.f32.mxu1 %vm1235_vm1, %v1236_v1 }
 0x232   : > { %v647_v19 = vmul.f32 %v1223_v18, %v1215_v56 }
 0x234   : > { %1157 = vmatmul.mubr.msk.f32.vlgmr.msra.gmra.mrb[6].mxu0 %vm604_vm3, %v647_v19 }
 0x235   : > { %v1225_v20 = vpop.eup %1224 }
 0x236   : > { %v648_v21 = vmul.f32 %v1225_v20, %v1217_v58 }
 0x238   : > { %1164 = vmatmul.mubr.msk.f32.vlgmr.msra.gmra.mrb[6].mxu1 %vm604_vm3, %v648_v21 }
 0x2ff   : > { %v722_v22 = vpop.f32.mrb[4].mxu0 }
 0x300   : > { %954 = vst.msk [vmem:[%s251_s7] sm:$0xff] %vm273_vm0, %v722_v22  ;;  %v1144_v23 = vpop.f32.mrb[5].mxu0 }
 0x303   : > { %v798_v24 = vpop.f32.mrb[4].mxu1 }
 0x304   : > { %955 = vst.msk [vmem:[%s251_s7 + $0x8] sm:$0xff] %vm273_vm0, %v798_v24  ;;  %v1151_v1 = vpop.f32.mrb[5].mxu1 }
 0x307   : > { %v874_v25 = vpop.f32.mrb[6].mxu0 }
 0x308   : > { %956 = vst.msk [vmem:[%s251_s7 + $0x10] sm:$0xff] %vm273_vm0, %v874_v25  ;;  %v1158_v26 = vpop.f32.mrb[7].mxu0 }
 0x30b   : > { %v950_v27 = vpop.f32.mrb[6].mxu1 }
 0x30c   : > { %957 = vst.msk [vmem:[%s251_s7 + $0x18] sm:$0xff] %vm273_vm0, %v950_v27  ;;  %v1165_v28 = vpop.f32.mrb[7].mxu1 }
 0x30d PF: > { %s14_s15 = sadd.s32 1, %s1232_s15  }
 0x30e   : > { %p11_p4 = scmp.ge.s32.totalorder %s14_s15, 4  }
 0x310   :  { %13 = sbr.rel (!%p11_p4) target bundleno = 1 (0x1), region = 75 }

// kernel: predictor_forward.56
= control target key start
LH: loop header
LB: loop body
LE: loop exit
PB: predicated region body
PF: predicated region fallthrough
CT: control target
= control target key end

     0   :  { %11 = vsyncpa [#allocation3], 0  ;;  %s1660_s0 = inlined_call_operand.vmem [shape: f32[2,4,8,8], index: 0, kind: input, shape index: {}]   ;;  %s1661_s1 = inlined_call_operand.vmem [shape: f32[2,4,10,8], index: 1, kind: input, shape index: {}]   ;;  %s1662_s2 = inlined_call_operand.vmem [shape: f32[2,4,10,8], index: 2, kind: input, shape index: {}]   ;;  %s1663_s3 = inlined_call_operand.vmem [shape: f32[2,1,10], index: 3, kind: input, shape index: {}]   ;;  %s1664_s4 = inlined_call_operand.hbm [shape: f32[2,4,8,8], index: 4, kind: output, shape index: {0}]   ;;  %s1665_s5 = inlined_call_operand.vmem [shape: f32[2,1,8,10], index: 5, kind: output, shape index: {1}]  }
   0x1   :  { %13 = vsyncpa [#allocation3 + $0x1], 0  ;;  %s1460_s18 = smov 0   ;;  %s1462_s19 = smov 0  }
   0x2   :  { %s1464_s20 = smov 0   ;;  %s1466_s21 = smov 0  }
   0x3 LB: > { %s1481_s22 = sadd.s32 4294967295, %s1421_s21   ;;  %s1144_s23 = sadd.s32 4294967294, %s1421_s21   ;;  %s1421_s21 = sphi %s1466_s21, %s1675_s21   ;;  %s1417_s20 = sphi %s1464_s20, %s1674_s20   ;;  %s1413_s19 = sphi %s1462_s19, %s1673_s19   ;;  %s1409_s18 = sphi %s1460_s18, %s1672_s18  }
   0x4   : > { %s1485_s24 = sadd.s32 1, %s1421_s21   ;;  %s130_s25 = sadd.s32 1, %s1417_s20 }
   0x5   : > { %s127_s26 = ssub.s32 %s1421_s21, %s1485_s24  ;;  %p140_p0 = scmp.ne.s32.totalorder %s1417_s20, %s1413_s19 }
   0x6   : > { %p128_p1 = scmp.eq.s32.totalorder %s127_s26, 0  ;;  %p141_p2 = scmp.eq.s32.totalorder %s1481_s22, 1 }
   0x7   : > { %p146_p3 = scmp.ne.s32.totalorder %s1413_s19, %s1409_s18  ;;  %p147_p4 = scmp.eq.s32.totalorder %s1144_s23, 1 }
   0x8   : > { %s1496_s27 = scalar_select %p128_p1, %s1417_s20, %s130_s25  }
   0x9   : > { %p1498_p5 = por %p141_p2, %p140_p0  ;;  %p1502_p6 = por %p147_p4, %p146_p3 }
   0xa   : > { %p1147_p7 = scmp.ge.s32.totalorder %s1421_s21, 1  ;;  %p221_p8 = scmp.lt.s32.totalorder %s1421_s21, 3 }
   0xc   : > { %p222_p9 = pnand %p1147_p7, %p221_p8 }
   0xd   : > { %p266_p10 = scmp.lt.s32.totalorder (!%p222_p9), %s1481_s22, 1  ;;  %v1423_v0 = vmov (!%p222_p9), 0.0|0.0   ;;  %vm309_vm0 = vcmask (!%p222_p9), 64512   ;;  %vm1424_vm1 = vmmov (!%p222_p9), 0   ;;  %v1425_v1 = vmov (!%p222_p9), 0.0   ;;  %s1185_s12 = sshll.u32 (!%p222_p9), %s1481_s22, 9 }
   0xe   : > { %225 = sbr.rel (%p222_p9) target bundleno = 804 (0x324), region = 36  ;;  %1266 = vmatprep.subr.bf16.mxu0 (!%p222_p9), %v1423_v0  ;;  %1270 = vmatprep.subr.bf16.mxu1 (!%p222_p9), %v1423_v0  ;;  %vm1526_vm2 = vmpackc.low (!%p222_p9), %vm309_vm0, %vm309_vm0  ;;  %vm640_vm3 = vcmask (!%p222_p9), 80896   ;;  %vm688_vm4 = vcmask (!%p222_p9), 1041408   ;;  %vm1426_vm5 = vmmov (!%p222_p9), 1   ;;  %s1616_s15 = scalar_lea.hbm (!%p222_p9), %s1664_s4, %s1185_s12 }
   0xf   : > { %1214 = vmatprep.mubr.msk.f32.mxu0 (!%p222_p9), %vm1424_vm1, %v1425_v1  ;;  %1221 = vmatprep.mubr.msk.f32.mxu1 (!%p222_p9), %vm1424_vm1, %v1425_v1  ;;  %vm1575_vm6 = vmpackc.low (!%p222_p9), %vm688_vm4, %vm1426_vm5  ;;  %s1427_s17 = smov (!%p222_p9), [#allocation2]  }
  0x10   : > { %s1363_s23 = sshll.u32 (!%p222_p9), %s1427_s17, 4  ;;  %s1364_s23 = int_to_ptr.vmem [resolvable:$false] %s1363_s23 }
  0x15   : > { %s1512_s30 = scalar_select %p266_p10, %s1481_s22, 1 }
  0x17   : > { %s1183_s6 = sshll.u32 %s1512_s30, 6  ;;  %s1182_s10 = sshll.u32 %s1512_s30, 5 }
  0x18   : > { %s275_s9 = scalar_lea.vmem %s1661_s1, %s1183_s6  ;;  %s270_s13 = scalar_lea.vmem %s1660_s0, %s1182_s10 }
  0x19   : > { %v292_v3 = vld [vmem:[%s275_s9] sm:$0xff]  ;;  %v293_v4 = vld [vmem:[%s275_s9 + $0x8] sm:$0x3]  ;;  %v294_v5 = vld [vmem:[%s275_s9 + $0x10] sm:$0xff]  ;;  %s283_s16 = scalar_lea.vmem %s1663_s3, %s1512_s30  ;;  %s280_s25 = scalar_lea.vmem %s1662_s2, %s1183_s6 }
  0x1a   : > { %v1267_v6 = vpack.c.bf16 %v293_v4, %v292_v3  ;;  %v295_v7 = vld [vmem:[%s275_s9 + $0x18] sm:$0x3]  ;;  %v296_v9 = vld [vmem:[%s275_s9 + $0x20] sm:$0xff]  ;;  %v297_v10 = vld [vmem:[%s275_s9 + $0x28] sm:$0x3]  ;;  %s1155_s26 = sshll.u32 %s1512_s30, 3 }
  0x1b   : > { %v1271_v8 = vpack.c.bf16 %v295_v7, %v294_v5  ;;  %v298_v11 = vld [vmem:[%s275_s9 + $0x30] sm:$0xff]  ;;  %v299_v12 = vld [vmem:[%s275_s9 + $0x38] sm:$0x3]  ;;  %v288_v13 = vld [vmem:[%s270_s13] sm:$0xff]  ;;  %v1275_v14 = vpack.c.bf16 %v297_v10, %v296_v9  ;;  %s287_s8 = scalar_lea.vmem %s1665_s5, %s1155_s26  ;;  %s257_s9 = sand.u32 1, %s1413_s19  }
  0x1c   : > { %1269 = vmatpush3.bf16.xpose.msk.msra.mxu0 %vm1526_vm2, %v1267_v6  ;;  %v289_v15 = vld [vmem:[%s270_s13 + $0x8] sm:$0xff]  ;;  %v1279_v16 = vpack.c.bf16 %v299_v12, %v298_v11  ;;  %v290_v17 = vld [vmem:[%s270_s13 + $0x10] sm:$0xff]  ;;  %v291_v18 = vld [vmem:[%s270_s13 + $0x18] sm:$0xff]  ;;  %s1148_s10 = sshll.u32 %s257_s9, 5 }
  0x1d   : > { %1273 = vmatpush3.bf16.xpose.msk.msra.mxu1 %vm1526_vm2, %v1271_v8  ;;  %1274 = vmatprep.subr.bf16.mxu0 %v1423_v0  ;;  %v1168_v20 = vld [vmem:[%s283_s16] ss:$0 sm:$0xff]  ;;  %v301_v61 = vld [vmem:[%s280_s25 + $0x8] sm:$0x3]  ;;  %v302_v2 = vld [vmem:[%s280_s25 + $0x10] sm:$0xff]  ;;  %s259_s11 = scalar_lea.vmem [#allocation2], %s1148_s10 }
  0x1e   : > { %1278 = vmatprep.subr.bf16.mxu1 %v1423_v0  ;;  %v300_v60 = vld [vmem:[%s280_s25] sm:$0xff]  ;;  %v303_v3 = vld [vmem:[%s280_s25 + $0x18] sm:$0x3]  ;;  %v305_v9 = vld [vmem:[%s280_s25 + $0x28] sm:$0x3]  ;;  %s1022_s30 = sshll.u32 %s259_s11, 4  ;;  %s1611_s30 = int_to_ptr.vmem [resolvable:$true] %s1022_s30 }
  0x1f   : > { %v1283_v62 = vpack.c.bf16 %v301_v61, %v300_v60  ;;  %v1287_v4 = vpack.c.bf16 %v303_v3, %v302_v2  ;;  %v304_v8 = vld [vmem:[%s280_s25 + $0x20] sm:$0xff]  ;;  %s1619_s16 = scalar_lea.sflag [#allocation3], %s257_s9  ;;  %s1359_s22 = scalar_lea.vmem %s1611_s30, 512 }
  0x20   : > { %v1291_v11 = vpack.c.bf16 %v305_v9, %v304_v8  ;;  %p1360_p11 = scmp.ne.s32.totalorder %s1611_s30, %s1359_s22  ;;  %p1366_p0 = scmp.lt.s32.totalorder %s1611_s30, %s1364_s23 }
  0x22   : > { %p1361_p12 = pnand %p1360_p11, %p1498_p5 }
  0x23   : > { %1215 = vmatmul.mubr.msk.f32.vlgmr.msra.gmra.mrb[0].mxu0 %vm309_vm0, %v288_v13 }
  0x24   : > { %1277 = vmatpush3.bf16.xpose.msk.msra.mxu0 %vm1526_vm2, %v1275_v14  ;;  %1222 = vmatmul.mubr.msk.f32.vlgmr.msra.gmra.mrb[0].mxu1 %vm309_vm0, %v289_v15  ;;  %v306_v14 = vld [vmem:[%s280_s25 + $0x30] sm:$0xff]  ;;  %v307_v15 = vld [vmem:[%s280_s25 + $0x38] sm:$0x3]  ;;  %p1362_p13 = pneg %p1361_p12  ;;  %s1365_s25 = scalar_lea.vmem %s1364_s23, 1024 }
  0x25   : > { %1281 = vmatpush3.bf16.xpose.msk.msra.mxu1 %vm1526_vm2, %v1279_v16  ;;  %1228 = vmatprep.mubr.msk.f32.mxu0 %vm1424_vm1, %v1425_v1  ;;  %p1367_p1 = scmp.lt.s32.totalorder %s1365_s25, %s1359_s22 }
  0x26   : > { %1235 = vmatprep.mubr.msk.f32.mxu1 %vm1424_vm1, %v1425_v1  ;;  %1282 = vmatprep.subr.bf16.mxu0 %v1423_v0 }
  0x27   : > { %1286 = vmatprep.subr.bf16.mxu1 %v1423_v0  ;;  %p1368_p2 = por %p1367_p1, %p1366_p0 }
  0x29   : > { %p1369_p3 = pnand %p1368_p2, %p1362_p13 }
  0x2b   : > { %1229 = vmatmul.mubr.msk.f32.vlgmr.msra.gmra.mrb[2].mxu0 %vm309_vm0, %v290_v17 }
  0x2c   : > { %1236 = vmatmul.mubr.msk.f32.vlgmr.msra.gmra.mrb[2].mxu1 %vm309_vm0, %v291_v18  ;;  %1242 = vmatprep.mubr.msk.f32.mxu0 %vm1424_vm1, %v1425_v1 }
  0x2d   : > { %1249 = vmatprep.mubr.msk.f32.mxu1 %vm1424_vm1, %v1425_v1  ;;  %1285 = vmatpush3.bf16.msk.msra.mxu0 %vm1575_vm6, %v1283_v62 }
  0x2e   : > { %1290 = vmatprep.subr.bf16.mxu0 %v1423_v0  ;;  %1289 = vmatpush3.bf16.msk.msra.mxu1 %vm1575_vm6, %v1287_v4 }
  0x2f   : > { %1294 = vmatprep.subr.bf16.mxu1 %v1423_v0  ;;  %v1295_v0 = vpack.c.bf16 %v307_v15, %v306_v14 }
  0xf6   : > { %v385_v19 = vpop.f32.mrb[0].mxu0 }
  0xf7   : > { %v626_v21 = vmul.f32 0.35355338, %v385_v19  ;;  %v1216_v22 = vpop.f32.mrb[1].mxu0  ;;  %v464_v23 = vpop.f32.mrb[0].mxu1 }
  0xf8   : > { %v627_v24 = vmul.f32 0.35355338, %v464_v23  ;;  %v1223_v25 = vpop.f32.mrb[1].mxu1 }
  0xf9   : > { %v636_v26 = vadd.f32 %v1168_v20, %v626_v21 }
  0xfa   : > { %v637_v27 = vadd.f32 %v1168_v20, %v627_v24 }
  0xfb   : > { %v641_v28 = vsel %vm640_vm3, %v636_v26, -inf }
  0xfc   : > { %642 = vmax.xlane.f32.xlu0 %v641_v28  ;;  %v644_v29 = vsel %vm640_vm3, %v637_v27, -inf }
  0xfe   : > { %v543_v30 = vpop.f32.mrb[2].mxu0 }
  0xff   : > { %v628_v31 = vmul.f32 0.35355338, %v543_v30  ;;  %v1230_v32 = vpop.f32.mrb[3].mxu0  ;;  %v622_v33 = vpop.f32.mrb[2].mxu1 }
 0x100   : > { %645 = vmax.xlane.f32.xlu0 %v644_v29  ;;  %v629_v34 = vmul.f32 0.35355338, %v622_v33  ;;  %v1237_v35 = vpop.f32.mrb[3].mxu1 }
 0x101   : > { %v638_v36 = vadd.f32 %v1168_v20, %v628_v31 }
 0x102   : > { %v639_v37 = vadd.f32 %v1168_v20, %v629_v34 }
 0x103   : > { %v647_v38 = vsel %vm640_vm3, %v638_v36, -inf }
 0x104   : > { %648 = vmax.xlane.f32.xlu1 %v647_v38  ;;  %v650_v39 = vsel %vm640_vm3, %v639_v37, -inf }
 0x108   : > { %651 = vmax.xlane.f32.xlu1 %v650_v39 }
 0x189   : > { %v643_v40 = vpop.xlane.xlu0 %642 }
 0x18a   : > { %v653_v41 = vsub.f32 %v636_v26, %v643_v40 }
 0x18c   : > { %v657_v42 = vmul.f32 1.442695, %v653_v41 }
 0x18d   : > { %v646_v43 = vpop.xlane.xlu0 %645 }
 0x18e   : > { %1343 = vpow2.f32 %v657_v42  ;;  %v654_v44 = vsub.f32 %v637_v27, %v646_v43 }
 0x190   : > { %v659_v45 = vmul.f32 1.442695, %v654_v44 }
 0x191   : > { %v649_v46 = vpop.xlane.xlu1 %648 }
 0x192   : > { %1345 = vpow2.f32 %v659_v45  ;;  %v655_v47 = vsub.f32 %v638_v36, %v649_v46 }
 0x194   : > { %v661_v48 = vmul.f32 1.442695, %v655_v47 }
 0x195   : > { %v652_v49 = vpop.xlane.xlu1 %651 }
 0x196   : > { %1347 = vpow2.f32 %v661_v48  ;;  %v656_v50 = vsub.f32 %v639_v37, %v652_v49 }
 0x198   : > { %v1344_v51 = vpop.eup %1343  ;;  %v663_v52 = vmul.f32 1.442695, %v656_v50 }
 0x199   : > { %v665_v53 = vsel %vm640_vm3, %v1344_v51, 0.0 }
 0x19a   : > { %1349 = vpow2.f32 %v663_v52  ;;  %666 = vadd.xlane.f32.xlu0 %v665_v53 }
 0x19c   : > { %v1346_v54 = vpop.eup %1345 }
 0x19d   : > { %v668_v55 = vsel %vm640_vm3, %v1346_v54, 0.0 }
 0x19e   : > { %669 = vadd.xlane.f32.xlu1 %v668_v55 }
 0x1a0   : > { %v1348_v56 = vpop.eup %1347 }
 0x1a1   : > { %v671_v57 = vsel %vm640_vm3, %v1348_v56, 0.0 }
 0x1a2   : > { %672 = vadd.xlane.f32.xlu0 %v671_v57 }
 0x1a4   : > { %v1350_v58 = vpop.eup %1349 }
 0x1a5   : > { %v674_v59 = vsel %vm640_vm3, %v1350_v58, 0.0 }
 0x1a6   : > { %675 = vadd.xlane.f32.xlu1 %v674_v59 }
 0x227   : > { %v667_v5 = vpop.xlane.xlu0 %666 }
 0x228   : > { %1351 = vrcp.f32 %v667_v5 }
 0x22b   : > { %v670_v6 = vpop.xlane.xlu1 %669 }
 0x22c   : > { %1353 = vrcp.f32 %v670_v6 }
 0x22f   : > { %v673_v7 = vpop.xlane.xlu0 %672 }
 0x230   : > { %1355 = vrcp.f32 %v673_v7 }
 0x232   : > { %v1352_v10 = vpop.eup %1351 }
 0x233   : > { %v681_v12 = vmul.f32 %v1352_v10, %v1344_v51  ;;  %v676_v13 = vpop.xlane.xlu1 %675 }
 0x234   : > { %1357 = vrcp.f32 %v676_v13 }
 0x235   : > { %1243 = vmatmul.mubr.msk.f32.vlgmr.msra.gmra.mrb[4].mxu0 %vm640_vm3, %v681_v12  ;;  %v994_v21 = vsel %vm640_vm3, %v681_v12, 0.0 }
 0x236   : > { %v1354_v16 = vpop.eup %1353  ;;  %1293 = vmatpush3.bf16.msk.msra.mxu0 %vm1575_vm6, %v1291_v11  ;;  %1256 = vmatprep.mubr.msk.f32.mxu0 %vm1424_vm1, %v1425_v1 }
 0x237   : > { %v682_v17 = vmul.f32 %v1354_v16, %v1346_v54 }
 0x239   : > { %1250 = vmatmul.mubr.msk.f32.vlgmr.msra.gmra.mrb[4].mxu1 %vm640_vm3, %v682_v17  ;;  %v995_v19 = vsel %vm640_vm3, %v682_v17, 0.0 }
 0x23a   : > { %v1356_v18 = vpop.eup %1355  ;;  %1297 = vmatpush3.bf16.msk.msra.mxu1 %vm1575_vm6, %v1295_v0  ;;  %1263 = vmatprep.mubr.msk.f32.mxu1 %vm1424_vm1, %v1425_v1  ;;  %v996_v24 = vadd.f32 %v995_v19, %v994_v21 }
 0x23b   : > { %v683_v20 = vmul.f32 %v1356_v18, %v1348_v56 }
 0x23d   : > { %v997_v22 = vsel %vm640_vm3, %v683_v20, 0.0  ;;  %1257 = vmatmul.mubr.msk.f32.vlgmr.msra.gmra.mrb[6].mxu0 %vm640_vm3, %v683_v20 }
 0x23e   : > { %v1358_v23 = vpop.eup %1357  ;;  %v998_v26 = vadd.f32 %v997_v22, %v996_v24 }
 0x23f   : > { %v684_v25 = vmul.f32 %v1358_v23, %v1350_v58 }
 0x241   : > { %v999_v27 = vsel %vm640_vm3, %v684_v25, 0.0  ;;  %1264 = vmatmul.mubr.msk.f32.vlgmr.msra.gmra.mrb[6].mxu1 %vm640_vm3, %v684_v25 }
 0x242   : > { %v1000_v1 = vadd.f32 %v999_v27, %v998_v26 }
 0x244   : > { %v1002_v28 = vmul.f32 0.25, %v1000_v1 }
 0x246   : > { %1003 = vst.msk [vmem:[%s287_s8] sm:$0xff] %vm640_vm3, %v1002_v28 }
 0x308   : > { %v758_v29 = vpop.f32.mrb[4].mxu0 }
 0x309   : > { %990 = vst.msk [vmem:[%s259_s11] sm:$0xff] %vm309_vm0, %v758_v29  ;;  %v1244_v30 = vpop.f32.mrb[5].mxu0 }
 0x30c   : > { %v834_v31 = vpop.f32.mrb[4].mxu1 }
 0x30d   : > { %991 = vst.msk [vmem:[%s259_s11 + $0x8] sm:$0xff] %vm309_vm0, %v834_v31  ;;  %v1251_v32 = vpop.f32.mrb[5].mxu1 }
 0x310   : > { %v910_v33 = vpop.f32.mrb[6].mxu0 }
 0x311   : > { %992 = vst.msk [vmem:[%s259_s11 + $0x10] sm:$0xff] %vm309_vm0, %v910_v33  ;;  %v1258_v34 = vpop.f32.mrb[7].mxu0 }
 0x314   : > { %v986_v35 = vpop.f32.mrb[6].mxu1 }
 0x315   : > { %993 = vst.msk [vmem:[%s259_s11 + $0x18] sm:$0xff] %vm309_vm0, %v986_v35  ;;  %v1265_v36 = vpop.f32.mrb[7].mxu1 }
 0x316   : > { %1372 = shalt.err (!%p1369_p3)
}
 0x317   : > { %s1373_s26 = scalar_lea.hbm %s1616_s15, 512  ;;  %s1377_s8 = scalar_lea.hbm %s1664_s4, 1024 }
 0x318   : > { %p1374_p4 = scmp.ne.s32.totalorder %s1616_s15, %s1373_s26  ;;  %p1378_p9 = scmp.lt.u32.totalorder %s1616_s15, %s1664_s4 }
 0x319   : > { %p1379_p10 = scmp.lt.u32.totalorder %s1377_s8, %s1373_s26  ;;  %p1381_p12 = scmp.lt.u32.totalorder %s1373_s26, %s1616_s15 }
 0x31a   : > { %p1375_p7 = pnand %p1374_p4, %p1498_p5 }
 0x31b   : > { %p1380_p11 = por %p1379_p10, %p1378_p9 }
 0x31c   : > { %p1376_p8 = pneg %p1375_p7 }
 0x31d   : > { %p1382_p13 = por %p1381_p12, %p1380_p11 }
 0x31f   : > { %p1383_p0 = pnand %p1382_p13, %p1376_p8 }
 0x321   : > { %1386 = shalt.err (!%p1383_p0)
}
 0x322   : > { %s1428_s11 = smov 128   ;;  %s1429_s12 = smov 8  }
 0x323   : > { %1298 = dma.vmem_to_hbm [thread:$0]  (%p1498_p5), %s1611_s30, 512, %s1616_s15, %s1619_s16, %s1428_s11, %s1428_s11, %s1429_s12  }
 0x324 PF: > { %p1304_p1 = scmp.ge.s32.totalorder %s1421_s21, 2  ;;  %s1040_s13 = sand.u32 1, %s1409_s18  }
 0x325   : > { %s1041_s14 = scalar_lea.sflag [#allocation3], %s1040_s13 }
 0x326   : > { %p1301_p2 = pnand %p1304_p1, %p1502_p6 }
 0x328   : > { %1404 = dma.done.wait (!%p1301_p2), %s1041_s14, 512  }
 0x329   : > { %1406 = vsyncadd (!%p1301_p2), %s1041_s14, 4294966784  ;;  %p16_p3 = scmp.ge.s32.totalorder %s1485_s24, 4   ;;  %s1672_s18 = smov %s1413_s19 }
 0x32a   : > { %s1673_s19 = smov %s1417_s20  ;;  %s1674_s20 = smov %s1496_s27 }
 0x32b   : > { %s1675_s21 = smov %s1485_s24  ;;  %18 = sbr.rel (!%p16_p3) target bundleno = 3 (0x3), region = 92 }
 0x332   :  { %1053 = vsyncpa [#allocation3], 1 }
 0x333   :  { %1055 = vsyncpa [#allocation3 + $0x1], 1 }

// kernel: predictor_forward.57
= control target key start
LH: loop header
LB: loop body
LE: loop exit
PB: predicated region body
PF: predicated region fallthrough
CT: control target
= control target key end

     0   :  { %v572_v3 = vmov 0.0   ;;  %vm57_vm0 = vcmask 1041408   ;;  %vm53_vm1 = vcmask 146432   ;;  %v573_v58 = vmov 0.0|0.0   ;;  %s800_s1 = inlined_call_operand.vmem [shape: f32[18,256], index: 1, kind: input, shape index: {}]   ;;  %s801_s3 = inlined_call_operand.vmem [shape: f32[256,64], index: 3, kind: input, shape index: {}]   ;;  %s802_s0 = inlined_call_operand.vmem [shape: f32[2,18], index: 0, kind: input, shape index: {}]   ;;  %s803_s5 = inlined_call_operand.vmem [shape: f32[64,32], index: 5, kind: input, shape index: {}]   ;;  %s804_s2 = inlined_call_operand.vmem [shape: f32[1,256], index: 2, kind: input, shape index: {}]   ;;  %s805_s4 = inlined_call_operand.vmem [shape: f32[1,64], index: 4, kind: input, shape index: {}]   ;;  %s806_s7 = inlined_call_operand.vmem [shape: f32[32,1], index: 7, kind: input, shape index: {}]   ;;  %s807_s8 = inlined_call_operand.<no memory space> [shape: f32[1,1], index: 8, kind: input, shape index: {}]   ;;  %s808_s6 = inlined_call_operand.vmem [shape: f32[1,32], index: 6, kind: input, shape index: {}]   ;;  %s809_s9 = inlined_call_operand.vmem [shape: f32[2,1], index: 9, kind: output, shape index: {}]  }
   0x1   :  { %v36_v0 = vld [vmem:[%s800_s1 + $0x8] sm:$0xff]  ;;  %v38_v1 = vld [vmem:[%s800_s1 + $0x18] sm:$0xff]  ;;  %v35_v2 = vld [vmem:[%s800_s1] sm:$0xff]  ;;  %128 = vmatprep.mubr.f32.mxu0 %v572_v3  ;;  %vm574_vm2 = vmmov 0   ;;  %vm262_vm3 = vcmask 523264   ;;  %vm348_vm4 = vcmask 261120  }
   0x2   :  { %v515_v4 = vpack.c.bf16 %v38_v1, %v36_v0  ;;  %v37_v5 = vld [vmem:[%s800_s1 + $0x10] sm:$0xff]  ;;  %v40_v7 = vld [vmem:[%s800_s1 + $0x28] sm:$0x3]  ;;  %v153_v8 = vld [vmem:[%s801_s3 + $0x80] sm:$0xff]  ;;  %v43_v1 = vlaneseq  ;;  %vm422_vm5 = vcmask 1024  }
   0x3   :  { %v517_v6 = vpack.c.bf16 %v37_v5, %v35_v2  ;;  %v154_v9 = vld [vmem:[%s801_s3 + $0x88] sm:$0xff]  ;;  %v137_v11 = vld [vmem:[%s801_s3] sm:$0xff]  ;;  %v155_v13 = vld [vmem:[%s801_s3 + $0x90] sm:$0xff] }
   0x4   :  { %516 = vmatprep.subr.bf16.mxu0 %v515_v4  ;;  %v519_v10 = vpack.c.bf16 %v154_v9, %v153_v8  ;;  %v138_v12 = vld [vmem:[%s801_s3 + $0x8] sm:$0xff]  ;;  %v156_v15 = vld [vmem:[%s801_s3 + $0x98] sm:$0xff]  ;;  %v139_v16 = vld [vmem:[%s801_s3 + $0x10] sm:$0xff]  ;;  %v44_v2 = vshrl.u32 %v43_v1, 7 }
   0x5   :  { %518 = vmatpush1.bf16.msra.mxu0 %v517_v6  ;;  %v521_v14 = vpack.c.bf16 %v138_v12, %v137_v11  ;;  %v140_v17 = vld [vmem:[%s801_s3 + $0x18] sm:$0xff]  ;;  %v39_v18 = vld [vmem:[%s800_s1 + $0x20] sm:$0x3]  ;;  %v523_v19 = vpack.c.bf16 %v156_v15, %v155_v13  ;;  %v158_v21 = vld [vmem:[%s801_s3 + $0xa8] sm:$0xff] }
   0x6   :  { %428 = vmatprep.subr.msk.mxu0 %vm57_vm0, %v40_v7  ;;  %520 = vmatprep.subr.bf16.mxu1 %v519_v10  ;;  %v157_v20 = vld [vmem:[%s801_s3 + $0xa0] sm:$0xff]  ;;  %v525_v23 = vpack.c.bf16 %v140_v17, %v139_v16  ;;  %v142_v26 = vld [vmem:[%s801_s3 + $0x28] sm:$0xff]  ;;  %v159_v27 = vld [vmem:[%s801_s3 + $0xb0] sm:$0xff]  ;;  %v45_v4 = vsub.s32 0, %v44_v2  ;;  %v49_v6 = vsub.s32 1, %v44_v2 }
   0x7   :  { %v34_v22 = vld [vmem:[%s802_s0] sm:$0x3]  ;;  %522 = vmatpush3.bf16.msra.mxu1 %v521_v14  ;;  %v527_v24 = vpack.c.bf16 %v158_v21, %v157_v20  ;;  %v160_v28 = vld [vmem:[%s801_s3 + $0xb8] sm:$0xff]  ;;  %v143_v31 = vld [vmem:[%s801_s3 + $0x30] sm:$0xff] }
   0x8   :  { %524 = vmatprep.subr.bf16.mxu1 %v523_v19  ;;  %v141_v25 = vld [vmem:[%s801_s3 + $0x20] sm:$0xff]  ;;  %v531_v30 = vpack.c.bf16 %v160_v28, %v159_v27  ;;  %v144_v32 = vld [vmem:[%s801_s3 + $0x38] sm:$0xff]  ;;  %v162_v34 = vld [vmem:[%s801_s3 + $0xc8] sm:$0xff] }
   0x9   :  { %429 = vmatpush1.msk.msra.mxu0 %vm57_vm0, %v39_v18  ;;  %v529_v29 = vpack.c.bf16 %v142_v26, %v141_v25  ;;  %v161_v33 = vld [vmem:[%s801_s3 + $0xc0] sm:$0xff]  ;;  %v533_v35 = vpack.c.bf16 %v144_v32, %v143_v31  ;;  %v146_v38 = vld [vmem:[%s801_s3 + $0x48] sm:$0xff]  ;;  %v163_v39 = vld [vmem:[%s801_s3 + $0xd0] sm:$0xff] }
   0xa   :  { %430 = vmatmul.mubr.msk.f32.vlgmr.msra.gmra.mrb[0].mxu0 %vm53_vm1, %v34_v22  ;;  %v535_v36 = vpack.c.bf16 %v162_v34, %v161_v33  ;;  %v145_v37 = vld [vmem:[%s801_s3 + $0x40] sm:$0xff]  ;;  %v164_v40 = vld [vmem:[%s801_s3 + $0xd8] sm:$0xff]  ;;  %v147_v43 = vld [vmem:[%s801_s3 + $0x50] sm:$0xff]  ;;  %551 = vmatprep.subr.bf16.mxu0 %v573_v58  ;;  %v14_v33 = vstv %s807_s8 }
   0xb   :  { %526 = vmatpush3.bf16.msra.mxu1 %v525_v23  ;;  %v537_v41 = vpack.c.bf16 %v146_v38, %v145_v37  ;;  %v539_v42 = vpack.c.bf16 %v164_v40, %v163_v39  ;;  %v148_v44 = vld [vmem:[%s801_s3 + $0x58] sm:$0xff]  ;;  %v165_v45 = vld [vmem:[%s801_s3 + $0xe0] sm:$0xff]  ;;  %v166_v46 = vld [vmem:[%s801_s3 + $0xe8] sm:$0xff]  ;;  %501 = vmatprep.mubr.msk.f32.mxu0 %vm574_vm2, %v572_v3  ;;  %15 = vst [vmem:[#allocation2] sm:$0x1] %v14_v33 }
   0xc   :  { %528 = vmatprep.subr.bf16.mxu1 %v527_v24  ;;  %v541_v47 = vpack.c.bf16 %v148_v44, %v147_v43  ;;  %v543_v48 = vpack.c.bf16 %v166_v46, %v165_v45  ;;  %v149_v49 = vld [vmem:[%s801_s3 + $0x60] sm:$0xff]  ;;  %v150_v50 = vld [vmem:[%s801_s3 + $0x68] sm:$0xff]  ;;  %v167_v52 = vld [vmem:[%s801_s3 + $0xf0] sm:$0xff] }
   0xd   :  { %v545_v51 = vpack.c.bf16 %v150_v50, %v149_v49  ;;  %v168_v53 = vld [vmem:[%s801_s3 + $0xf8] sm:$0xff]  ;;  %v151_v55 = vld [vmem:[%s801_s3 + $0x70] sm:$0xff]  ;;  %v247_v59 = vld [vmem:[%s803_s5] sm:$0xff] }
   0xe   :  { %v547_v54 = vpack.c.bf16 %v168_v53, %v167_v52  ;;  %v152_v56 = vld [vmem:[%s801_s3 + $0x78] sm:$0xff]  ;;  %v248_v60 = vld [vmem:[%s803_s5 + $0x8] sm:$0xff]  ;;  %v249_v61 = vld [vmem:[%s803_s5 + $0x10] sm:$0xff] }
   0xf   :  { %530 = vmatpush3.bf16.msra.mxu1 %v529_v29  ;;  %v549_v57 = vpack.c.bf16 %v152_v56, %v151_v55  ;;  %v552_v62 = vpack.c.bf16 %v248_v60, %v247_v59  ;;  %v250_v63 = vld [vmem:[%s803_s5 + $0x18] sm:$0xff]  ;;  %v41_v5 = vld [vmem:[%s804_s2] sm:$0x3]  ;;  %v252_v16 = vld [vmem:[%s803_s5 + $0x28] sm:$0xff] }
  0x10   :  { %532 = vmatprep.subr.bf16.mxu1 %v531_v30  ;;  %v555_v0 = vpack.c.bf16 %v250_v63, %v249_v61  ;;  %v46_v7 = vrot.slane %v41_v5, %v45_v4  ;;  %v50_v8 = vrot.slane %v41_v5, %v49_v6  ;;  %v251_v15 = vld [vmem:[%s803_s5 + $0x20] sm:$0xff]  ;;  %v253_v18 = vld [vmem:[%s803_s5 + $0x30] sm:$0xff]  ;;  %v254_v19 = vld [vmem:[%s803_s5 + $0x38] sm:$0xff] }
  0x11   :  { %553 = vmatpush3.bf16.msra.mxu0 %v552_v62  ;;  %v558_v17 = vpack.c.bf16 %v252_v16, %v251_v15  ;;  %v561_v20 = vpack.c.bf16 %v254_v19, %v253_v18  ;;  %v431_v22 = vld [vmem:[%s805_s4] ss:$0 sm:$0xff]  ;;  %v338_v26 = vld [vmem:[%s806_s7 + $0x8] sm:$0xff]  ;;  %v339_v30 = vld [vmem:[%s806_s7 + $0x10] sm:$0xff] }
  0x12   :  { %554 = vmatprep.subr.bf16.mxu0 %v573_v58  ;;  %v337_v25 = vld [vmem:[%s806_s7] sm:$0xff]  ;;  %v340_v31 = vld [vmem:[%s806_s7 + $0x18] sm:$0xff] }
  0x13   :  { %534 = vmatpush3.bf16.msra.mxu1 %v533_v35  ;;  %v564_v28 = vpack.c.bf16 %v338_v26, %v337_v25  ;;  %v567_v32 = vpack.c.bf16 %v340_v31, %v339_v30  ;;  %v434_v38 = vld [vmem:[#allocation2] ss:$0 sm:$0xff] }
  0x14   :  { %536 = vmatprep.subr.bf16.mxu1 %v535_v36 }
  0x15   :  { %556 = vmatpush3.bf16.msra.mxu0 %v555_v0 }
  0x16   :  { %557 = vmatprep.subr.bf16.mxu0 %v573_v58 }
  0x17   :  { %538 = vmatpush3.bf16.msra.mxu1 %v537_v41 }
  0x18   :  { %540 = vmatprep.subr.bf16.mxu1 %v539_v42 }
  0x19   :  { %559 = vmatpush3.bf16.msra.mxu0 %v558_v17 }
  0x1a   :  { %560 = vmatprep.subr.bf16.mxu0 %v573_v58 }
  0x1b   :  { %542 = vmatpush3.bf16.msra.mxu1 %v541_v47 }
  0x1c   :  { %544 = vmatprep.subr.bf16.mxu1 %v543_v48 }
  0x1d   :  { %562 = vmatpush3.bf16.msra.mxu0 %v561_v20 }
  0x1e   :  { %563 = vmatprep.subr.bf16.mxu0 %v573_v58 }
  0x1f   :  { %546 = vmatpush3.bf16.msra.mxu1 %v545_v51 }
  0x20   :  { %548 = vmatprep.subr.bf16.mxu1 %v547_v54 }
  0x23   :  { %550 = vmatpush3.bf16.msra.mxu1 %v549_v57 }
  0xdd   :  { %v130_v9 = vpop.f32.mrb[0].mxu0 }
  0xde   :  { %v131_v10 = vadd.f32 %v130_v9, %v46_v7  ;;  %v132_v11 = vpop.f32.mrb[1].mxu0 }
  0xdf   :  { %v133_v12 = vadd.f32 %v132_v11, %v50_v8 }
  0xe0   :  { %v135_v14 = vmax.f32 %v131_v10, 0.0 }
  0xe1   :  { %v136_v13 = vmax.f32 %v133_v12, 0.0 }
  0xe3   :  { %240 = vmatprep.mubr.f32.mxu1 %v136_v13 }
  0xe4   :  { %241 = vmatmul.mubr.f32.vlgmr.msra.gmra.mrb[0].mxu1 %v135_v14 }
 0x1b7   :  { %v468_v21 = vpop.f32.mrb[0].mxu1 }
 0x1b8   :  { %v469_v23 = vpop.f32.mrb[1].mxu1 }
 0x1b9   :  { %v470_v24 = vadd.f32 %v469_v23, %v468_v21 }
 0x1bb   :  { %v243_v27 = vadd.f32 %v470_v24, %v431_v22 }
 0x1bd   :  { %v246_v29 = vmax.f32 %v243_v27, 0.0 }
 0x1bf   :  { %502 = vmatmul.mubr.msk.f32.vlgmr.msra.gmra.mrb[2].mxu0 %vm262_vm3, %v246_v29 }
 0x1c0   :  { %565 = vmatpush3.bf16.msra.mxu0 %v564_v28  ;;  %512 = vmatprep.mubr.msk.f32.mxu0 %vm574_vm2, %v572_v3  ;;  %v432_v3 = vld [vmem:[%s808_s6] ss:$0 sm:$0xff] }
 0x1c1   :  { %566 = vmatprep.subr.bf16.mxu0 %v573_v58 }
 0x1c4   :  { %568 = vmatpush3.bf16.msra.mxu0 %v567_v32 }
 0x292   :  { %v332_v34 = vpop.f32.mrb[2].mxu0 }
 0x293   :  { %v333_v35 = vadd.f32 %v432_v3, %v332_v34  ;;  %v503_v36 = vpop.f32.mrb[3].mxu0 }
 0x295   :  { %v336_v37 = vmax.f32 %v333_v35, 0.0 }
 0x297   :  { %513 = vmatmul.mubr.msk.f32.vlgmr.msra.gmra.mrb[4].mxu0 %vm348_vm4, %v336_v37 }
 0x36a   :  { %v418_v39 = vpop.f32.mrb[4].mxu0 }
 0x36b   :  { %v419_v40 = vadd.f32 %v434_v38, %v418_v39  ;;  %v514_v41 = vpop.f32.mrb[5].mxu0 }
 0x36d   :  { %423 = vst.msk [vmem:[%s809_s9] sm:$0x3] %vm422_vm5, %v419_v40 }

</bundles_post_ra>
